<compile_context>
chip_gen: v7x
topology: tpu7x:2x2x1
jax: 0.10.0
libtpu: 0.0.40
codegen_flags: <defaults>
</compile_context>

<pallas_src>
import numpy as np
import jax
import jax.numpy as jnp
from jax.experimental import pallas as pl
from jax.experimental.pallas import tpu as pltpu

_BIG = 1e30          # finite stand-in for +/- inf inside the kernel
_PAD_KEY = -1.0      # label-key sentinel marking padded rows / columns


def _round_up(x, m):
    return ((x + m - 1) // m) * m


def _padded_sizes(n_contrast, dim):
    """Pad N (anchors) and D (features) to MXU/vreg friendly sizes, pick tiles."""
    n_pad = _round_up(max(n_contrast, 128), 128)
    d_pad = _round_up(max(dim, 128), 128)
    tq = 256 if n_pad % 256 == 0 else 128          # anchor-row tile
    if n_pad % 512 == 0:
        tk = 512                                   # contrast-column tile
    elif n_pad % 256 == 0:
        tk = 256
    else:
        tk = 128
    return n_pad, d_pad, tq, tk


def _build_supcon_call(n_pad, d_pad, tq, tk, temperature, base_temperature):
    """Pallas kernel for one SupConLoss.forward on padded, view-stacked features."""
    inv_temp = float(1.0 / temperature)                    # python floats -> literals
    neg_ratio = float(-(temperature / base_temperature))   # = -(T / base_T)
    n_row_tiles = n_pad // tq
    n_col_tiles = n_pad // tk

    def kernel(q_ref, k_ref, qkey_ref, kkeyT_ref, mll_ref,
               inst_ref, pmax_ref,
               m_scr, l_scr, cnt_scr, pmin_scr, s_scr):
        r = pl.program_id(0)      # anchor-row tile          ("parallel")
        p = pl.program_id(1)      # pass: 0 = lse, 1 = loss  ("arbitrary")
        c = pl.program_id(2)      # contrast-column tile     ("arbitrary")
        n_c = pl.num_programs(2)

        # (tq, tk) tile of anchor_dot_contrast / temperature: bf16 MXU, f32 acc.
        adc = jax.lax.dot_general(
            q_ref[...], k_ref[...],
            dimension_numbers=(((1,), (1,)), ((), ())),
            preferred_element_type=jnp.float32) * inv_temp

        qkey = qkey_ref[...]                        # [tq, 1]  (-1 => padded row)
        kkeyT = kkeyT_ref[...]                      # [1, tk]
        row_ids = r * tq + jax.lax.broadcasted_iota(jnp.int32, (tq, tk), 0)
        col_ids = c * tk + jax.lax.broadcasted_iota(jnp.int32, (tq, tk), 1)
        # fused logits_mask: drop self pairs + padded columns; reused for pos_mask
        lmask = jnp.logical_and(row_ids != col_ids, kkeyT != _PAD_KEY)
        pos = jnp.logical_and(qkey == kkeyT, lmask)

        @pl.when(jnp.logical_and(p == 0, c == 0))
        def _init():
            m_scr[...] = jnp.full((tq, 1), -_BIG, dtype=jnp.float32)
            l_scr[...] = jnp.zeros((tq, 1), dtype=jnp.float32)
            cnt_scr[...] = jnp.zeros((tq, 1), dtype=jnp.float32)
            pmin_scr[...] = jnp.full((tq, 1), _BIG, dtype=jnp.float32)

        @pl.when(p == 0)
        def _pass_lse():
            # online (flash-style) log-sum-exp over the masked columns
            tile_max = jnp.max(jnp.where(lmask, adc, -_BIG), axis=1, keepdims=True)
            m_new = jnp.maximum(m_scr[...], tile_max)
            alpha = jnp.exp(m_scr[...] - m_new)
            e = jnp.where(lmask, jnp.exp(adc - m_new), 0.0)
            l_scr[...] = alpha * l_scr[...] + jnp.sum(e, axis=1, keepdims=True)
            m_scr[...] = m_new
            # positive-pair statistics (independent of the normalizer)
            cnt_scr[...] = cnt_scr[...] + jnp.sum(pos.astype(jnp.float32),
                                                  axis=1, keepdims=True)
            pmin_scr[...] = jnp.minimum(
                pmin_scr[...],
                jnp.min(jnp.where(pos, adc, _BIG), axis=1, keepdims=True))

        @pl.when(p == 1)
        def _pass_loss():
            @pl.when(c == 0)
            def _():
                s_scr[...] = jnp.zeros((tq, 1), dtype=jnp.float32)

            lse = m_scr[...] + jnp.log(l_scr[...])          # [tq, 1]
            mll = mll_ref[0, 0]                             # max_loss_lower_layer
            # loss_pos_neg = -(T/base_T) * log_prob, clamped from below by mll
            clamped = jnp.maximum(neg_ratio * (adc - lse), mll)
            s_scr[...] = s_scr[...] + jnp.sum(jnp.where(pos, clamped, 0.0),
                                              axis=1, keepdims=True)

            @pl.when(c == n_c - 1)
            def _finalize():
                cnt = cnt_scr[...]
                has_pos = jnp.logical_and(cnt > 0.0, qkey != _PAD_KEY)
                # instance loss (0 for padded rows / anchors without positives)
                inst_ref[...] = jnp.where(
                    has_pos, s_scr[...] / jnp.maximum(cnt, 1.0), 0.0)
                # per-row max of loss_pos_neg over positive pairs:
                #   max_j  c*(adc_ij - lse_i) = c*(min_j adc_ij - lse_i)   (c < 0)
                pmax_ref[...] = jnp.where(
                    has_pos, neg_ratio * (pmin_scr[...] - lse), -_BIG)

    grid_spec = pltpu.PrefetchScalarGridSpec(
        num_scalar_prefetch=0,
        grid=(n_row_tiles, 2, n_col_tiles),
        in_specs=[
            pl.BlockSpec((tq, d_pad), lambda r, p, c: (r, 0)),   # anchor rows (bf16)
            pl.BlockSpec((tk, d_pad), lambda r, p, c: (c, 0)),   # contrast cols (bf16)
            pl.BlockSpec((tq, 1), lambda r, p, c: (r, 0)),       # row label keys
            pl.BlockSpec((1, tk), lambda r, p, c: (0, c)),       # col label keys
            pl.BlockSpec(memory_space=pltpu.MemorySpace.SMEM),   # mll scalar (1,1)
        ],
        out_specs=(
            pl.BlockSpec((tq, 1), lambda r, p, c: (r, 0)),       # per-anchor loss
            pl.BlockSpec((tq, 1), lambda r, p, c: (r, 0)),       # per-anchor pos max
        ),
        scratch_shapes=[pltpu.VMEM((tq, 1), jnp.float32) for _ in range(5)],
    )
    return pl.pallas_call(
        kernel,
        out_shape=(jax.ShapeDtypeStruct((n_pad, 1), jnp.float32),
                   jax.ShapeDtypeStruct((n_pad, 1), jnp.float32)),
        grid_spec=grid_spec,
        compiler_params=pltpu.CompilerParams(
            dimension_semantics=("parallel", "arbitrary", "arbitrary"),
            vmem_limit_bytes=48 * 1024 * 1024),
    )


def make_pallas_supcon(batch, n_views, dim, temperature=0.07, base_temperature=0.07):
    """SupConLoss.forward(features, mask, max_loss_lower_layer) as a Pallas kernel.

    `mask` is a [bsz, bsz] label-equality (equivalence) mask as HMLC passes it;
    it is packed host-side into one class key per sample.
    """
    n_max = batch * n_views
    n_pad, d_pad, tq, tk = _padded_sizes(n_max, dim)
    call = _build_supcon_call(n_pad, d_pad, tq, tk, temperature, base_temperature)

    @jax.jit
    def _run(cf, qkey, kkeyT, mll, inv_n):
        inst, pmax_row = call(cf, cf, qkey, kkeyT, mll)
        return jnp.sum(inst) * inv_n, jnp.max(pmax_row)

    def supcon(features, mask, max_loss_lower_layer=float('-inf')):
        features = np.asarray(features, np.float32)
        bc, v, d = features.shape
        nc = bc * v
        # contrast_feature = torch.cat(torch.unbind(features, dim=1), dim=0)
        cf = np.concatenate([features[:, i, :] for i in range(v)], axis=0)
        cf_pad = np.zeros((n_pad, d_pad), np.float32)
        cf_pad[:nc, :d] = cf
        # equivalence mask -> per-sample class key (identical rows <=> same class)
        # TODO(synk): an arbitrary / asymmetric [bsz,bsz] mask has no key form; it
        # would instead be streamed into the kernel as (tq, tk) mask tiles.
        _, inv = np.unique(np.asarray(mask, np.float32), axis=0, return_inverse=True)
        inv = np.asarray(inv).reshape(-1)
        keys = np.full((n_pad,), _PAD_KEY, np.float32)
        keys[:nc] = np.tile(inv.astype(np.float32), v)
        mll = np.float32(max(float(max_loss_lower_layer), -_BIG))
        bl, pm = _run(jnp.asarray(cf_pad, jnp.bfloat16),
                      jnp.asarray(keys.reshape(n_pad, 1)),
                      jnp.asarray(keys.reshape(1, n_pad)),
                      jnp.full((1, 1), mll, jnp.float32),
                      jnp.float32(1.0 / nc))
        bl, pm = jax.block_until_ready((bl, pm))
        return float(bl), float(pm)

    return supcon


def make_hmlc_pallas(batch, n_views, dim, n_levels, temperature=0.07,
                     base_temperature=0.07, loss_type='HMCE',
                     narrow_down_instances=True):
    """HMLC forward: one SupConLoss per hierarchy level, all levels in ONE jit."""
    n_max = batch * n_views
    n_pad, d_pad, tq, tk = _padded_sizes(n_max, dim)
    call = _build_supcon_call(n_pad, d_pad, tq, tk, temperature, base_temperature)
    n_lv = int(n_levels)
    penalties = [float(np.exp(1.0 / (lv + 1))) for lv in range(n_lv)]

    @jax.jit
    def _device(cf, gather_idx, keys, inv_counts):
        mll = jnp.full((1, 1), -_BIG, jnp.float32)
        cumulative = jnp.float32(0.0)
        layer_losses = []
        for lv in range(n_lv):
            f_lv = jnp.take(cf, gather_idx[lv], axis=0)         # [n_pad, d_pad] bf16
            qkey = keys[lv].reshape(n_pad, 1)
            kkeyT = keys[lv].reshape(1, n_pad)
            inst, pmax_row = call(f_lv, f_lv, qkey, kkeyT, mll)
            bl = jnp.sum(inst) * inv_counts[lv]
            pmax = jnp.max(pmax_row)
            if loss_type in ('HMCE', 'HMC'):
                layer_loss = penalties[lv] * bl
            else:                                               # 'HCE'
                layer_loss = bl
            if loss_type in ('HMCE', 'HCE'):
                mll = jnp.maximum(mll, pmax)                    # chained on device
            cumulative = cumulative + layer_loss
            layer_losses.append(layer_loss)
        return cumulative / n_lv, jnp.stack(layer_losses)

    def hmlc(features, labels):
        features = np.asarray(features, np.float32)             # [B, V, D]
        labels = np.asarray(labels, np.float32)                 # [B, L]
        b, v, d = features.shape
        lv_total = labels.shape[1]

        # view-major stacked contrast features, uploaded ONCE (bf16 MXU inputs)
        cf = np.concatenate([features[:, i, :] for i in range(v)], axis=0)
        cf_pad = np.zeros((n_pad, d_pad), np.float32)
        cf_pad[:b * v, :d] = cf
        cf_dev = jnp.asarray(cf_pad, jnp.bfloat16)

        gather_idx = np.zeros((n_lv, n_pad), np.int32)
        keys = np.full((n_lv, n_pad), _PAD_KEY, np.float32)
        inv_counts = np.zeros((n_lv,), np.float32)

        # TODO(synk): the torch.unique-based batch narrowing is data-dependent-shape
        # control flow; it stays host-side (labels are host data) and is fed to the
        # device as static-shape gather indices + padding keys.
        cur_idx = np.arange(b)
        for lv in range(n_lv):
            cur_labels = labels[cur_idx]
            layer_labels = cur_labels.copy()
            layer_labels[:, lv_total - lv:] = 0.0
            # pack all hierarchy levels into one class key (unique-row id)
            _, inv = np.unique(layer_labels, axis=0, return_inverse=True)
            inv = np.asarray(inv).reshape(-1)
            bc = cur_idx.shape[0]
            nc = bc * v
            rows = np.concatenate([i * b + cur_idx for i in range(v)])
            gather_idx[lv, :nc] = rows.astype(np.int32)
            keys[lv, :nc] = np.tile(inv.astype(np.float32), v)
            inv_counts[lv] = 1.0 / float(nc)
            if narrow_down_instances and lv != n_lv - 1:
                masked = cur_labels.copy()
                masked[:, lv_total - lv - 1:] = 0.0
                _, sel = np.unique(masked, axis=0, return_index=True)
                cur_idx = cur_idx[sel]

        loss, layer_losses = _device(cf_dev,
                                     jnp.asarray(gather_idx),
                                     jnp.asarray(keys),
                                     jnp.asarray(inv_counts))
        loss, layer_losses = jax.block_until_ready((loss, layer_losses))
        return float(loss), [float(x) for x in np.asarray(layer_losses)]

    return hmlc


# ----------------------------- numpy references ------------------------------

def _numpy_supcon(features_cur, layer_labels, mll, temperature, base_temperature):
    bc, v, _ = features_cur.shape
    cf = np.concatenate([features_cur[:, i, :] for i in range(v)], 0).astype(np.float64)
    adc = (cf @ cf.T) / temperature
    logits = adc - adc.max(axis=1, keepdims=True)
    mask_labels = (layer_labels[:, None, :] == layer_labels[None, :, :]).all(-1)
    mask = np.tile(mask_labels.astype(np.float64), (v, v))
    nc = bc * v
    logits_mask = 1.0 - np.eye(nc)
    mask = mask * logits_mask
    exp_logits = np.exp(logits) * logits_mask
    log_prob = logits - np.log(exp_logits.sum(1, keepdims=True))
    loss_pn = -(temperature / base_temperature) * log_prob
    loss_rep = np.where(loss_pn < mll, mll, loss_pn)
    pos = loss_rep * mask
    inst = pos.sum(1) / mask.sum(1)
    return float(inst.mean()), float(loss_pn[mask == 1].max())


def _numpy_hmlc(features, labels, temperature, base_temperature,
                loss_type='HMCE', narrow_down_instances=True):
    features = np.asarray(features, np.float64)
    labels = np.asarray(labels, np.float64)
    lv_total = labels.shape[1]
    cur_f, cur_l = features, labels
    mll = float('-inf')
    cumulative = 0.0
    layer_list = []
    for layer in range(lv_total):
        layer_labels = cur_l.copy()
        layer_labels[:, lv_total - layer:] = 0.0
        bl, pmax = _numpy_supcon(cur_f, layer_labels, mll, temperature, base_temperature)
        penalty = float(np.exp(1.0 / (layer + 1)))
        layer_loss = penalty * bl if loss_type in ('HMCE', 'HMC') else bl
        if loss_type in ('HMCE', 'HCE'):
            mll = max(mll, pmax)
        cumulative += layer_loss
        layer_list.append(layer_loss)
        if narrow_down_instances and layer != lv_total - 1:
            masked = cur_l.copy()
            masked[:, lv_total - layer - 1:] = 0.0
            _, idx = np.unique(masked, axis=0, return_index=True)
            cur_l = cur_l[idx]
            cur_f = cur_f[idx]
    return cumulative / lv_total, layer_list


if __name__ == "__main__":
    B, V, D, L = 8, 2, 64, 3
    T, BT = 0.07, 0.07

    key = jax.random.PRNGKey(0)
    feats = jax.random.normal(key, (B, V, D), dtype=jnp.float32)
    feats = feats / jnp.linalg.norm(feats, axis=-1, keepdims=True)
    feats_np = np.asarray(feats, np.float32)

    # hierarchical labels: col 0 coarsest ... col 2 finest (rows 0 & 1 duplicate)
    labels = np.array([[0, 0, 0],
                       [0, 0, 0],
                       [0, 0, 1],
                       [0, 1, 0],
                       [0, 1, 1],
                       [1, 0, 0],
                       [1, 1, 0],
                       [1, 1, 1]], np.float32)

    # fused HMLC forward (all hierarchy levels on device, one sync)
    hmlc = make_hmlc_pallas(B, V, D, L, temperature=T, base_temperature=BT)
    loss_pallas, layers_pallas = hmlc(feats_np, labels)
    loss_ref, layers_ref = _numpy_hmlc(feats_np, labels, T, BT)

    # standalone SupConLoss.forward (mask-style API, like the torch module)
    supcon = make_pallas_supcon(B, V, D, temperature=T, base_temperature=BT)
    mask0 = (labels[:, None, :] == labels[None, :, :]).all(-1).astype(np.float32)
    bl_p, pm_p = supcon(feats_np, mask0, float('-inf'))
    bl_r, pm_r = _numpy_supcon(feats_np, labels, float('-inf'), T, BT)

    tol = 2e-2   # bf16 MXU inputs perturb individual logits by ~1e-3
    assert np.isfinite(loss_pallas), loss_pallas
    assert abs(loss_pallas - loss_ref) <= tol * max(1.0, abs(loss_ref)), \
        (loss_pallas, loss_ref)
    for a, b in zip(layers_pallas, layers_ref):
        assert abs(a - b) <= tol * max(1.0, abs(b)), (a, b)
    assert abs(bl_p - bl_r) <= tol * max(1.0, abs(bl_r)), (bl_p, bl_r)
    assert abs(pm_p - pm_r) <= tol * max(1.0, abs(pm_r)), (pm_p, pm_r)

    print("KERNEL_OK")
</pallas_src>

<mosaic_0001>
module attributes {stable_mosaic.version = 11 : i64} {
  func.func @kernel(%arg0: i32, %arg1: i32, %arg2: i32, %arg3: memref<128x128xbf16, #tpu.memory_space<vmem>>, %arg4: memref<128x128xbf16, #tpu.memory_space<vmem>>, %arg5: memref<128x1xf32, #tpu.memory_space<vmem>>, %arg6: memref<1x128xf32, #tpu.memory_space<vmem>>, %arg7: memref<1x1xf32, #tpu.memory_space<smem>>, %arg8: memref<128x1xf32, #tpu.memory_space<vmem>>, %arg9: memref<128x1xf32, #tpu.memory_space<vmem>>, %arg10: memref<128x1xf32, #tpu.memory_space<vmem>>, %arg11: memref<128x1xf32, #tpu.memory_space<vmem>>, %arg12: memref<128x1xf32, #tpu.memory_space<vmem>>, %arg13: memref<128x1xf32, #tpu.memory_space<vmem>>, %arg14: memref<128x1xf32, #tpu.memory_space<vmem>>) attributes {dimension_semantics = [#tpu.dimension_semantics<parallel>, #tpu.dimension_semantics<arbitrary>, #tpu.dimension_semantics<arbitrary>], iteration_bounds = array<i64: 1, 2, 1>, scalar_prefetch = 0 : i64, scratch_operands = 5 : i64, tpu.core_type = #tpu.core_type<tc>, window_params = [{transform_indices = @transform_0, window_bounds = array<i64: 128, 128>}, {transform_indices = @transform_1, window_bounds = array<i64: 128, 128>}, {transform_indices = @transform_2, window_bounds = array<i64: 128, 1>}, {transform_indices = @transform_3, window_bounds = array<i64: 1, 128>}, {transform_indices = @transform_4, window_bounds = array<i64: 1, 1>}, {transform_indices = @transform_5, window_bounds = array<i64: 128, 1>}, {transform_indices = @transform_6, window_bounds = array<i64: 128, 1>}]} {
    %c0 = arith.constant 0 : index
    %c0_0 = arith.constant 0 : index
    %0 = vector.load %arg3[%c0, %c0_0] : memref<128x128xbf16, #tpu.memory_space<vmem>>, vector<128x128xbf16>
    %c0_1 = arith.constant 0 : index
    %c0_2 = arith.constant 0 : index
    %1 = vector.load %arg4[%c0_1, %c0_2] : memref<128x128xbf16, #tpu.memory_space<vmem>>, vector<128x128xbf16>
    %cst = arith.constant dense<0.000000e+00> : vector<128x128xf32>
    %2 = tpu.matmul %0, %1, %cst {dimension_numbers = #tpu.dot_dimension_numbers<[1], [1], [0], [0], [0, 0, 1, 0], [], []>} : vector<128x128xbf16>, vector<128x128xbf16>, vector<128x128xf32> -> vector<128x128xf32>
    %cst_3 = arith.constant 14.2857141 : f32
    %3 = vector.broadcast %cst_3 : f32 to vector<128x128xf32>
    %4 = arith.mulf %2, %3 : vector<128x128xf32>
    %c0_4 = arith.constant 0 : index
    %c0_5 = arith.constant 0 : index
    %5 = vector.load %arg5[%c0_4, %c0_5] : memref<128x1xf32, #tpu.memory_space<vmem>>, vector<128x1xf32>
    %c0_6 = arith.constant 0 : index
    %c0_7 = arith.constant 0 : index
    %6 = vector.load %arg6[%c0_6, %c0_7] : memref<1x128xf32, #tpu.memory_space<vmem>>, vector<1x128xf32>
    %c128_i32 = arith.constant 128 : i32
    %7 = arith.muli %arg0, %c128_i32 : i32
    %8 = tpu.iota {dimensions = array<i32: 0>} : vector<128x128xi32>
    %9 = vector.broadcast %7 : i32 to vector<128x128xi32>
    %10 = arith.addi %9, %8 : vector<128x128xi32>
    %c128_i32_8 = arith.constant 128 : i32
    %11 = arith.muli %arg2, %c128_i32_8 : i32
    %12 = tpu.iota {dimensions = array<i32: 1>} : vector<128x128xi32>
    %13 = vector.broadcast %11 : i32 to vector<128x128xi32>
    %14 = arith.addi %13, %12 : vector<128x128xi32>
    %15 = arith.cmpi ne, %10, %14 : vector<128x128xi32>
    %cst_9 = arith.constant -1.000000e+00 : f32
    %16 = vector.broadcast %cst_9 : f32 to vector<1x128xf32>
    %17 = arith.cmpf one, %6, %16 : vector<1x128xf32>
    %18 = vector.broadcast %17 : vector<1x128xi1> to vector<128x128xi1>
    %19 = arith.andi %15, %18 : vector<128x128xi1>
    %20 = vector.broadcast %5 : vector<128x1xf32> to vector<128x128xf32>
    %21 = vector.broadcast %6 : vector<1x128xf32> to vector<128x128xf32>
    %22 = arith.cmpf oeq, %20, %21 : vector<128x128xf32>
    %23 = arith.andi %22, %19 : vector<128x128xi1>
    %c0_i32 = arith.constant 0 : i32
    %24 = arith.cmpi eq, %arg1, %c0_i32 : i32
    %c0_i32_10 = arith.constant 0 : i32
    %25 = arith.cmpi eq, %arg2, %c0_i32_10 : i32
    %26 = arith.andi %24, %25 : i1
    %27 = arith.extui %26 : i1 to i32
    %c0_i32_11 = arith.constant 0 : i32
    %28 = arith.cmpi ne, %27, %c0_i32_11 : i32
    scf.if %28 {
      %cst_15 = arith.constant -1.000000e+30 : f32
      %35 = vector.broadcast %cst_15 : f32 to vector<128x1xf32>
      %c0_16 = arith.constant 0 : index
      %c0_17 = arith.constant 0 : index
      %36 = vector.load %arg10[%c0_16, %c0_17] : memref<128x1xf32, #tpu.memory_space<vmem>>, vector<128x1xf32>
      tpu.vector_store %arg10[%c0_16, %c0_17], %35 {strides = array<i32>} : memref<128x1xf32, #tpu.memory_space<vmem>>, vector<128x1xf32>,
      %cst_18 = arith.constant 0.000000e+00 : f32
      %37 = vector.broadcast %cst_18 : f32 to vector<128x1xf32>
      %c0_19 = arith.constant 0 : index
      %c0_20 = arith.constant 0 : index
      %38 = vector.load %arg11[%c0_19, %c0_20] : memref<128x1xf32, #tpu.memory_space<vmem>>, vector<128x1xf32>
      tpu.vector_store %arg11[%c0_19, %c0_20], %37 {strides = array<i32>} : memref<128x1xf32, #tpu.memory_space<vmem>>, vector<128x1xf32>,
      %cst_21 = arith.constant 0.000000e+00 : f32
      %39 = vector.broadcast %cst_21 : f32 to vector<128x1xf32>
      %c0_22 = arith.constant 0 : index
      %c0_23 = arith.constant 0 : index
      %40 = vector.load %arg12[%c0_22, %c0_23] : memref<128x1xf32, #tpu.memory_space<vmem>>, vector<128x1xf32>
      tpu.vector_store %arg12[%c0_22, %c0_23], %39 {strides = array<i32>} : memref<128x1xf32, #tpu.memory_space<vmem>>, vector<128x1xf32>,
      %cst_24 = arith.constant 1.000000e+30 : f32
      %41 = vector.broadcast %cst_24 : f32 to vector<128x1xf32>
      %c0_25 = arith.constant 0 : index
      %c0_26 = arith.constant 0 : index
      %42 = vector.load %arg13[%c0_25, %c0_26] : memref<128x1xf32, #tpu.memory_space<vmem>>, vector<128x1xf32>
      tpu.vector_store %arg13[%c0_25, %c0_26], %41 {strides = array<i32>} : memref<128x1xf32, #tpu.memory_space<vmem>>, vector<128x1xf32>,
    } else {
    }
    %c0_i32_12 = arith.constant 0 : i32
    %29 = arith.cmpi eq, %arg1, %c0_i32_12 : i32
    %30 = arith.extui %29 : i1 to i32
    %c0_i32_13 = arith.constant 0 : i32
    %31 = arith.cmpi ne, %30, %c0_i32_13 : i32
    scf.if %31 {
      %cst_15 = arith.constant -1.000000e+30 : f32
      %35 = vector.broadcast %cst_15 : f32 to vector<128x128xf32>
      %36 = arith.select %19, %4, %35 : vector<128x128xi1>, vector<128x128xf32>
      %cst_16 = arith.constant dense<0xFF800000> : vector<128xf32>
      %37 = vector.multi_reduction <maximumf>, %36, %cst_16 [1] : vector<128x128xf32> to vector<128xf32>
      %38 = vector.shape_cast %37 : vector<128xf32> to vector<128x1xf32>
      %c0_17 = arith.constant 0 : index
      %c0_18 = arith.constant 0 : index
      %39 = vector.load %arg10[%c0_17, %c0_18] : memref<128x1xf32, #tpu.memory_space<vmem>>, vector<128x1xf32>
      %40 = arith.maximumf %39, %38 : vector<128x1xf32>
      %c0_19 = arith.constant 0 : index
      %c0_20 = arith.constant 0 : index
      %41 = vector.load %arg10[%c0_19, %c0_20] : memref<128x1xf32, #tpu.memory_space<vmem>>, vector<128x1xf32>
      %42 = arith.subf %41, %40 : vector<128x1xf32>
      %43 = math.exp %42 : vector<128x1xf32>
      %44 = vector.broadcast %40 : vector<128x1xf32> to vector<128x128xf32>
      %45 = arith.subf %4, %44 : vector<128x128xf32>
      %46 = math.exp %45 : vector<128x128xf32>
      %cst_21 = arith.constant 0.000000e+00 : f32
      %47 = vector.broadcast %cst_21 : f32 to vector<128x128xf32>
      %48 = arith.select %19, %46, %47 : vector<128x128xi1>, vector<128x128xf32>
      %c0_22 = arith.constant 0 : index
      %c0_23 = arith.constant 0 : index
      %49 = vector.load %arg11[%c0_22, %c0_23] : memref<128x1xf32, #tpu.memory_space<vmem>>, vector<128x1xf32>
      %50 = arith.mulf %43, %49 : vector<128x1xf32>
      %cst_24 = arith.constant dense<0.000000e+00> : vector<128xf32>
      %51 = vector.multi_reduction <add>, %48, %cst_24 [1] : vector<128x128xf32> to vector<128xf32>
      %52 = vector.shape_cast %51 : vector<128xf32> to vector<128x1xf32>
      %53 = arith.addf %50, %52 : vector<128x1xf32>
      %c0_25 = arith.constant 0 : index
      %c0_26 = arith.constant 0 : index
      %54 = vector.load %arg11[%c0_25, %c0_26] : memref<128x1xf32, #tpu.memory_space<vmem>>, vector<128x1xf32>
      tpu.vector_store %arg11[%c0_25, %c0_26], %53 {strides = array<i32>} : memref<128x1xf32, #tpu.memory_space<vmem>>, vector<128x1xf32>,
      %c0_27 = arith.constant 0 : index
      %c0_28 = arith.constant 0 : index
      %55 = vector.load %arg10[%c0_27, %c0_28] : memref<128x1xf32, #tpu.memory_space<vmem>>, vector<128x1xf32>
      tpu.vector_store %arg10[%c0_27, %c0_28], %40 {strides = array<i32>} : memref<128x1xf32, #tpu.memory_space<vmem>>, vector<128x1xf32>,
      %c0_29 = arith.constant 0 : index
      %c0_30 = arith.constant 0 : index
      %56 = vector.load %arg12[%c0_29, %c0_30] : memref<128x1xf32, #tpu.memory_space<vmem>>, vector<128x1xf32>
      %57 = arith.extui %23 : vector<128x128xi1> to vector<128x128xi32>
      %58 = arith.sitofp %57 : vector<128x128xi32> to vector<128x128xf32>
      %cst_31 = arith.constant dense<0.000000e+00> : vector<128xf32>
      %59 = vector.multi_reduction <add>, %58, %cst_31 [1] : vector<128x128xf32> to vector<128xf32>
      %60 = vector.shape_cast %59 : vector<128xf32> to vector<128x1xf32>
      %61 = arith.addf %56, %60 : vector<128x1xf32>
      %c0_32 = arith.constant 0 : index
      %c0_33 = arith.constant 0 : index
      %62 = vector.load %arg12[%c0_32, %c0_33] : memref<128x1xf32, #tpu.memory_space<vmem>>, vector<128x1xf32>
      tpu.vector_store %arg12[%c0_32, %c0_33], %61 {strides = array<i32>} : memref<128x1xf32, #tpu.memory_space<vmem>>, vector<128x1xf32>,
      %c0_34 = arith.constant 0 : index
      %c0_35 = arith.constant 0 : index
      %63 = vector.load %arg13[%c0_34, %c0_35] : memref<128x1xf32, #tpu.memory_space<vmem>>, vector<128x1xf32>
      %cst_36 = arith.constant 1.000000e+30 : f32
      %64 = vector.broadcast %cst_36 : f32 to vector<128x128xf32>
      %65 = arith.select %23, %4, %64 : vector<128x128xi1>, vector<128x128xf32>
      %cst_37 = arith.constant dense<0x7F800000> : vector<128xf32>
      %66 = vector.multi_reduction <minimumf>, %65, %cst_37 [1] : vector<128x128xf32> to vector<128xf32>
      %67 = vector.shape_cast %66 : vector<128xf32> to vector<128x1xf32>
      %68 = arith.minimumf %63, %67 : vector<128x1xf32>
      %c0_38 = arith.constant 0 : index
      %c0_39 = arith.constant 0 : index
      %69 = vector.load %arg13[%c0_38, %c0_39] : memref<128x1xf32, #tpu.memory_space<vmem>>, vector<128x1xf32>
      tpu.vector_store %arg13[%c0_38, %c0_39], %68 {strides = array<i32>} : memref<128x1xf32, #tpu.memory_space<vmem>>, vector<128x1xf32>,
    } else {
    }
    %c1_i32 = arith.constant 1 : i32
    %32 = arith.cmpi eq, %arg1, %c1_i32 : i32
    %33 = arith.extui %32 : i1 to i32
    %c0_i32_14 = arith.constant 0 : i32
    %34 = arith.cmpi ne, %33, %c0_i32_14 : i32
    scf.if %34 {
      %c0_i32_15 = arith.constant 0 : i32
      %35 = arith.cmpi eq, %arg2, %c0_i32_15 : i32
      %36 = arith.extui %35 : i1 to i32
      %c0_i32_16 = arith.constant 0 : i32
      %37 = arith.cmpi ne, %36, %c0_i32_16 : i32
      scf.if %37 {
        %cst_32 = arith.constant 0.000000e+00 : f32
        %59 = vector.broadcast %cst_32 : f32 to vector<128x1xf32>
        %c0_33 = arith.constant 0 : index
        %c0_34 = arith.constant 0 : index
        %60 = vector.load %arg14[%c0_33, %c0_34] : memref<128x1xf32, #tpu.memory_space<vmem>>, vector<128x1xf32>
        tpu.vector_store %arg14[%c0_33, %c0_34], %59 {strides = array<i32>} : memref<128x1xf32, #tpu.memory_space<vmem>>, vector<128x1xf32>,
      } else {
      }
      %c0_17 = arith.constant 0 : index
      %c0_18 = arith.constant 0 : index
      %38 = vector.load %arg10[%c0_17, %c0_18] : memref<128x1xf32, #tpu.memory_space<vmem>>, vector<128x1xf32>
      %c0_19 = arith.constant 0 : index
      %c0_20 = arith.constant 0 : index
      %39 = vector.load %arg11[%c0_19, %c0_20] : memref<128x1xf32, #tpu.memory_space<vmem>>, vector<128x1xf32>
      %40 = math.log %39 : vector<128x1xf32>
      %41 = arith.addf %38, %40 : vector<128x1xf32>
      %c0_21 = arith.constant 0 : index
      %c0_22 = arith.constant 0 : index
      %42 = memref.load %arg7[%c0_21, %c0_22] : memref<1x1xf32, #tpu.memory_space<smem>>
      %43 = vector.broadcast %41 : vector<128x1xf32> to vector<128x128xf32>
      %44 = arith.subf %4, %43 : vector<128x128xf32>
      %cst_23 = arith.constant -1.000000e+00 : f32
      %45 = vector.broadcast %cst_23 : f32 to vector<128x128xf32>
      %46 = arith.mulf %45, %44 : vector<128x128xf32>
      %47 = vector.broadcast %42 : f32 to vector<128x128xf32>
      %48 = arith.maximumf %46, %47 : vector<128x128xf32>
      %c0_24 = arith.constant 0 : index
      %c0_25 = arith.constant 0 : index
      %49 = vector.load %arg14[%c0_24, %c0_25] : memref<128x1xf32, #tpu.memory_space<vmem>>, vector<128x1xf32>
      %cst_26 = arith.constant 0.000000e+00 : f32
      %50 = vector.broadcast %cst_26 : f32 to vector<128x128xf32>
      %51 = arith.select %23, %48, %50 : vector<128x128xi1>, vector<128x128xf32>
      %cst_27 = arith.constant dense<0.000000e+00> : vector<128xf32>
      %52 = vector.multi_reduction <add>, %51, %cst_27 [1] : vector<128x128xf32> to vector<128xf32>
      %53 = vector.shape_cast %52 : vector<128xf32> to vector<128x1xf32>
      %54 = arith.addf %49, %53 : vector<128x1xf32>
      %c0_28 = arith.constant 0 : index
      %c0_29 = arith.constant 0 : index
      %55 = vector.load %arg14[%c0_28, %c0_29] : memref<128x1xf32, #tpu.memory_space<vmem>>, vector<128x1xf32>
      tpu.vector_store %arg14[%c0_28, %c0_29], %54 {strides = array<i32>} : memref<128x1xf32, #tpu.memory_space<vmem>>, vector<128x1xf32>,
      %c0_i32_30 = arith.constant 0 : i32
      %56 = arith.cmpi eq, %arg2, %c0_i32_30 : i32
      %57 = arith.extui %56 : i1 to i32
      %c0_i32_31 = arith.constant 0 : i32
      %58 = arith.cmpi ne, %57, %c0_i32_31 : i32
      scf.if %58 {
        %c0_32 = arith.constant 0 : index
        %c0_33 = arith.constant 0 : index
        %59 = vector.load %arg12[%c0_32, %c0_33] : memref<128x1xf32, #tpu.memory_space<vmem>>, vector<128x1xf32>
        %cst_34 = arith.constant 0.000000e+00 : f32
        %60 = vector.broadcast %cst_34 : f32 to vector<128x1xf32>
        %61 = arith.cmpf ogt, %59, %60 : vector<128x1xf32>
        %cst_35 = arith.constant -1.000000e+00 : f32
        %62 = vector.broadcast %cst_35 : f32 to vector<128x1xf32>
        %63 = arith.cmpf one, %5, %62 : vector<128x1xf32>
        %64 = arith.andi %61, %63 : vector<128x1xi1>
        %c0_36 = arith.constant 0 : index
        %c0_37 = arith.constant 0 : index
        %65 = vector.load %arg14[%c0_36, %c0_37] : memref<128x1xf32, #tpu.memory_space<vmem>>, vector<128x1xf32>
        %cst_38 = arith.constant 1.000000e+00 : f32
        %66 = vector.broadcast %cst_38 : f32 to vector<128x1xf32>
        %67 = arith.maximumf %59, %66 : vector<128x1xf32>
        %68 = arith.divf %65, %67 : vector<128x1xf32>
        %cst_39 = arith.constant 0.000000e+00 : f32
        %69 = vector.broadcast %cst_39 : f32 to vector<128x1xf32>
        %70 = arith.select %64, %68, %69 : vector<128x1xi1>, vector<128x1xf32>
        %c0_40 = arith.constant 0 : index
        %c0_41 = arith.constant 0 : index
        %71 = vector.load %arg8[%c0_40, %c0_41] : memref<128x1xf32, #tpu.memory_space<vmem>>, vector<128x1xf32>
        tpu.vector_store %arg8[%c0_40, %c0_41], %70 {strides = array<i32>} : memref<128x1xf32, #tpu.memory_space<vmem>>, vector<128x1xf32>,
        %c0_42 = arith.constant 0 : index
        %c0_43 = arith.constant 0 : index
        %72 = vector.load %arg13[%c0_42, %c0_43] : memref<128x1xf32, #tpu.memory_space<vmem>>, vector<128x1xf32>
        %73 = arith.subf %72, %41 : vector<128x1xf32>
        %cst_44 = arith.constant -1.000000e+00 : f32
        %74 = vector.broadcast %cst_44 : f32 to vector<128x1xf32>
        %75 = arith.mulf %74, %73 : vector<128x1xf32>
        %cst_45 = arith.constant -1.000000e+30 : f32
        %76 = vector.broadcast %cst_45 : f32 to vector<128x1xf32>
        %77 = arith.select %64, %75, %76 : vector<128x1xi1>, vector<128x1xf32>
        %c0_46 = arith.constant 0 : index
        %c0_47 = arith.constant 0 : index
        %78 = vector.load %arg9[%c0_46, %c0_47] : memref<128x1xf32, #tpu.memory_space<vmem>>, vector<128x1xf32>
        tpu.vector_store %arg9[%c0_46, %c0_47], %77 {strides = array<i32>} : memref<128x1xf32, #tpu.memory_space<vmem>>, vector<128x1xf32>,
      } else {
      }
    } else {
    }
    return
  }
  func.func @transform_0(%arg0: i32, %arg1: i32, %arg2: i32) -> (i32, i32) {
    %c0_i32 = arith.constant 0 : i32
    %c0_i32_0 = arith.constant 0 : i32
    return %arg0, %c0_i32 : i32, i32
  }
  func.func @transform_1(%arg0: i32, %arg1: i32, %arg2: i32) -> (i32, i32) {
    %c0_i32 = arith.constant 0 : i32
    %c0_i32_0 = arith.constant 0 : i32
    return %arg2, %c0_i32 : i32, i32
  }
  func.func @transform_2(%arg0: i32, %arg1: i32, %arg2: i32) -> (i32, i32) {
    %c0_i32 = arith.constant 0 : i32
    %c0_i32_0 = arith.constant 0 : i32
    return %arg0, %c0_i32 : i32, i32
  }
  func.func @transform_3(%arg0: i32, %arg1: i32, %arg2: i32) -> (i32, i32) {
    %c0_i32 = arith.constant 0 : i32
    %c0_i32_0 = arith.constant 0 : i32
    return %c0_i32, %arg2 : i32, i32
  }
  func.func @transform_4(%arg0: i32, %arg1: i32, %arg2: i32) -> (i32, i32) {
    %c0_i32 = arith.constant 0 : i32
    %c0_i32_0 = arith.constant 0 : i32
    %c0_i32_1 = arith.constant 0 : i32
    return %c0_i32, %c0_i32_0 : i32, i32
  }
  func.func @transform_5(%arg0: i32, %arg1: i32, %arg2: i32) -> (i32, i32) {
    %c0_i32 = arith.constant 0 : i32
    %c0_i32_0 = arith.constant 0 : i32
    return %arg0, %c0_i32 : i32, i32
  }
  func.func @transform_6(%arg0: i32, %arg1: i32, %arg2: i32) -> (i32, i32) {
    %c0_i32 = arith.constant 0 : i32
    %c0_i32_0 = arith.constant 0 : i32
    return %arg0, %c0_i32 : i32, i32
  }
}

module attributes {stable_mosaic.version = 11 : i64} {
  func.func @kernel(%arg0: i32, %arg1: i32, %arg2: i32, %arg3: memref<128x128xbf16, #tpu.memory_space<vmem>>, %arg4: memref<128x128xbf16, #tpu.memory_space<vmem>>, %arg5: memref<128x1xf32, #tpu.memory_space<vmem>>, %arg6: memref<1x128xf32, #tpu.memory_space<vmem>>, %arg7: memref<1x1xf32, #tpu.memory_space<smem>>, %arg8: memref<128x1xf32, #tpu.memory_space<vmem>>, %arg9: memref<128x1xf32, #tpu.memory_space<vmem>>, %arg10: memref<128x1xf32, #tpu.memory_space<vmem>>, %arg11: memref<128x1xf32, #tpu.memory_space<vmem>>, %arg12: memref<128x1xf32, #tpu.memory_space<vmem>>, %arg13: memref<128x1xf32, #tpu.memory_space<vmem>>, %arg14: memref<128x1xf32, #tpu.memory_space<vmem>>) attributes {dimension_semantics = [#tpu.dimension_semantics<parallel>, #tpu.dimension_semantics<arbitrary>, #tpu.dimension_semantics<arbitrary>], iteration_bounds = array<i64: 1, 2, 1>, scalar_prefetch = 0 : i64, scratch_operands = 5 : i64, tpu.core_type = #tpu.core_type<tc>, window_params = [{transform_indices = @transform_0, window_bounds = array<i64: 128, 128>}, {transform_indices = @transform_1, window_bounds = array<i64: 128, 128>}, {transform_indices = @transform_2, window_bounds = array<i64: 128, 1>}, {transform_indices = @transform_3, window_bounds = array<i64: 1, 128>}, {transform_indices = @transform_4, window_bounds = array<i64: 1, 1>}, {transform_indices = @transform_5, window_bounds = array<i64: 128, 1>}, {transform_indices = @transform_6, window_bounds = array<i64: 128, 1>}]} {
    %c0 = arith.constant 0 : index
    %c0_0 = arith.constant 0 : index
    %0 = vector.load %arg3[%c0, %c0_0] : memref<128x128xbf16, #tpu.memory_space<vmem>>, vector<128x128xbf16>
    %c0_1 = arith.constant 0 : index
    %c0_2 = arith.constant 0 : index
    %1 = vector.load %arg4[%c0_1, %c0_2] : memref<128x128xbf16, #tpu.memory_space<vmem>>, vector<128x128xbf16>
    %cst = arith.constant dense<0.000000e+00> : vector<128x128xf32>
    %2 = tpu.matmul %0, %1, %cst {dimension_numbers = #tpu.dot_dimension_numbers<[1], [1], [0], [0], [0, 0, 1, 0], [], []>} : vector<128x128xbf16>, vector<128x128xbf16>, vector<128x128xf32> -> vector<128x128xf32>
    %cst_3 = arith.constant 14.2857141 : f32
    %3 = vector.broadcast %cst_3 : f32 to vector<128x128xf32>
    %4 = arith.mulf %2, %3 : vector<128x128xf32>
    %c0_4 = arith.constant 0 : index
    %c0_5 = arith.constant 0 : index
    %5 = vector.load %arg5[%c0_4, %c0_5] : memref<128x1xf32, #tpu.memory_space<vmem>>, vector<128x1xf32>
    %c0_6 = arith.constant 0 : index
    %c0_7 = arith.constant 0 : index
    %6 = vector.load %arg6[%c0_6, %c0_7] : memref<1x128xf32, #tpu.memory_space<vmem>>, vector<1x128xf32>
    %c128_i32 = arith.constant 128 : i32
    %7 = arith.muli %arg0, %c128_i32 : i32
    %8 = tpu.iota {dimensions = array<i32: 0>} : vector<128x128xi32>
    %9 = vector.broadcast %7 : i32 to vector<128x128xi32>
    %10 = arith.addi %9, %8 : vector<128x128xi32>
    %c128_i32_8 = arith.constant 128 : i32
    %11 = arith.muli %arg2, %c128_i32_8 : i32
    %12 = tpu.iota {dimensions = array<i32: 1>} : vector<128x128xi32>
    %13 = vector.broadcast %11 : i32 to vector<128x128xi32>
    %14 = arith.addi %13, %12 : vector<128x128xi32>
    %15 = arith.cmpi ne, %10, %14 : vector<128x128xi32>
    %cst_9 = arith.constant -1.000000e+00 : f32
    %16 = vector.broadcast %cst_9 : f32 to vector<1x128xf32>
    %17 = arith.cmpf one, %6, %16 : vector<1x128xf32>
    %18 = vector.broadcast %17 : vector<1x128xi1> to vector<128x128xi1>
    %19 = arith.andi %15, %18 : vector<128x128xi1>
    %20 = vector.broadcast %5 : vector<128x1xf32> to vector<128x128xf32>
    %21 = vector.broadcast %6 : vector<1x128xf32> to vector<128x128xf32>
    %22 = arith.cmpf oeq, %20, %21 : vector<128x128xf32>
    %23 = arith.andi %22, %19 : vector<128x128xi1>
    %c0_i32 = arith.constant 0 : i32
    %24 = arith.cmpi eq, %arg1, %c0_i32 : i32
    %c0_i32_10 = arith.constant 0 : i32
    %25 = arith.cmpi eq, %arg2, %c0_i32_10 : i32
    %26 = arith.andi %24, %25 : i1
    %27 = arith.extui %26 : i1 to i32
    %c0_i32_11 = arith.constant 0 : i32
    %28 = arith.cmpi ne, %27, %c0_i32_11 : i32
    scf.if %28 {
      %cst_15 = arith.constant -1.000000e+30 : f32
      %35 = vector.broadcast %cst_15 : f32 to vector<128x1xf32>
      %c0_16 = arith.constant 0 : index
      %c0_17 = arith.constant 0 : index
      %36 = vector.load %arg10[%c0_16, %c0_17] : memref<128x1xf32, #tpu.memory_space<vmem>>, vector<128x1xf32>
      tpu.vector_store %arg10[%c0_16, %c0_17], %35 {strides = array<i32>} : memref<128x1xf32, #tpu.memory_space<vmem>>, vector<128x1xf32>,
      %cst_18 = arith.constant 0.000000e+00 : f32
      %37 = vector.broadcast %cst_18 : f32 to vector<128x1xf32>
      %c0_19 = arith.constant 0 : index
      %c0_20 = arith.constant 0 : index
      %38 = vector.load %arg11[%c0_19, %c0_20] : memref<128x1xf32, #tpu.memory_space<vmem>>, vector<128x1xf32>
      tpu.vector_store %arg11[%c0_19, %c0_20], %37 {strides = array<i32>} : memref<128x1xf32, #tpu.memory_space<vmem>>, vector<128x1xf32>,
      %cst_21 = arith.constant 0.000000e+00 : f32
      %39 = vector.broadcast %cst_21 : f32 to vector<128x1xf32>
      %c0_22 = arith.constant 0 : index
      %c0_23 = arith.constant 0 : index
      %40 = vector.load %arg12[%c0_22, %c0_23] : memref<128x1xf32, #tpu.memory_space<vmem>>, vector<128x1xf32>
      tpu.vector_store %arg12[%c0_22, %c0_23], %39 {strides = array<i32>} : memref<128x1xf32, #tpu.memory_space<vmem>>, vector<128x1xf32>,
      %cst_24 = arith.constant 1.000000e+30 : f32
      %41 = vector.broadcast %cst_24 : f32 to vector<128x1xf32>
      %c0_25 = arith.constant 0 : index
      %c0_26 = arith.constant 0 : index
      %42 = vector.load %arg13[%c0_25, %c0_26] : memref<128x1xf32, #tpu.memory_space<vmem>>, vector<128x1xf32>
      tpu.vector_store %arg13[%c0_25, %c0_26], %41 {strides = array<i32>} : memref<128x1xf32, #tpu.memory_space<vmem>>, vector<128x1xf32>,
    } else {
    }
    %c0_i32_12 = arith.constant 0 : i32
    %29 = arith.cmpi eq, %arg1, %c0_i32_12 : i32
    %30 = arith.extui %29 : i1 to i32
    %c0_i32_13 = arith.constant 0 : i32
    %31 = arith.cmpi ne, %30, %c0_i32_13 : i32
    scf.if %31 {
      %cst_15 = arith.constant -1.000000e+30 : f32
      %35 = vector.broadcast %cst_15 : f32 to vector<128x128xf32>
      %36 = arith.select %19, %4, %35 : vector<128x128xi1>, vector<128x128xf32>
      %cst_16 = arith.constant dense<0xFF800000> : vector<128xf32>
      %37 = vector.multi_reduction <maximumf>, %36, %cst_16 [1] : vector<128x128xf32> to vector<128xf32>
      %38 = vector.shape_cast %37 : vector<128xf32> to vector<128x1xf32>
      %c0_17 = arith.constant 0 : index
      %c0_18 = arith.constant 0 : index
      %39 = vector.load %arg10[%c0_17, %c0_18] : memref<128x1xf32, #tpu.memory_space<vmem>>, vector<128x1xf32>
      %40 = arith.maximumf %39, %38 : vector<128x1xf32>
      %c0_19 = arith.constant 0 : index
      %c0_20 = arith.constant 0 : index
      %41 = vector.load %arg10[%c0_19, %c0_20] : memref<128x1xf32, #tpu.memory_space<vmem>>, vector<128x1xf32>
      %42 = arith.subf %41, %40 : vector<128x1xf32>
      %43 = math.exp %42 : vector<128x1xf32>
      %44 = vector.broadcast %40 : vector<128x1xf32> to vector<128x128xf32>
      %45 = arith.subf %4, %44 : vector<128x128xf32>
      %46 = math.exp %45 : vector<128x128xf32>
      %cst_21 = arith.constant 0.000000e+00 : f32
      %47 = vector.broadcast %cst_21 : f32 to vector<128x128xf32>
      %48 = arith.select %19, %46, %47 : vector<128x128xi1>, vector<128x128xf32>
      %c0_22 = arith.constant 0 : index
      %c0_23 = arith.constant 0 : index
      %49 = vector.load %arg11[%c0_22, %c0_23] : memref<128x1xf32, #tpu.memory_space<vmem>>, vector<128x1xf32>
      %50 = arith.mulf %43, %49 : vector<128x1xf32>
      %cst_24 = arith.constant dense<0.000000e+00> : vector<128xf32>
      %51 = vector.multi_reduction <add>, %48, %cst_24 [1] : vector<128x128xf32> to vector<128xf32>
      %52 = vector.shape_cast %51 : vector<128xf32> to vector<128x1xf32>
      %53 = arith.addf %50, %52 : vector<128x1xf32>
      %c0_25 = arith.constant 0 : index
      %c0_26 = arith.constant 0 : index
      %54 = vector.load %arg11[%c0_25, %c0_26] : memref<128x1xf32, #tpu.memory_space<vmem>>, vector<128x1xf32>
      tpu.vector_store %arg11[%c0_25, %c0_26], %53 {strides = array<i32>} : memref<128x1xf32, #tpu.memory_space<vmem>>, vector<128x1xf32>,
      %c0_27 = arith.constant 0 : index
      %c0_28 = arith.constant 0 : index
      %55 = vector.load %arg10[%c0_27, %c0_28] : memref<128x1xf32, #tpu.memory_space<vmem>>, vector<128x1xf32>
      tpu.vector_store %arg10[%c0_27, %c0_28], %40 {strides = array<i32>} : memref<128x1xf32, #tpu.memory_space<vmem>>, vector<128x1xf32>,
      %c0_29 = arith.constant 0 : index
      %c0_30 = arith.constant 0 : index
      %56 = vector.load %arg12[%c0_29, %c0_30] : memref<128x1xf32, #tpu.memory_space<vmem>>, vector<128x1xf32>
      %57 = arith.extui %23 : vector<128x128xi1> to vector<128x128xi32>
      %58 = arith.sitofp %57 : vector<128x128xi32> to vector<128x128xf32>
      %cst_31 = arith.constant dense<0.000000e+00> : vector<128xf32>
      %59 = vector.multi_reduction <add>, %58, %cst_31 [1] : vector<128x128xf32> to vector<128xf32>
      %60 = vector.shape_cast %59 : vector<128xf32> to vector<128x1xf32>
      %61 = arith.addf %56, %60 : vector<128x1xf32>
      %c0_32 = arith.constant 0 : index
      %c0_33 = arith.constant 0 : index
      %62 = vector.load %arg12[%c0_32, %c0_33] : memref<128x1xf32, #tpu.memory_space<vmem>>, vector<128x1xf32>
      tpu.vector_store %arg12[%c0_32, %c0_33], %61 {strides = array<i32>} : memref<128x1xf32, #tpu.memory_space<vmem>>, vector<128x1xf32>,
      %c0_34 = arith.constant 0 : index
      %c0_35 = arith.constant 0 : index
      %63 = vector.load %arg13[%c0_34, %c0_35] : memref<128x1xf32, #tpu.memory_space<vmem>>, vector<128x1xf32>
      %cst_36 = arith.constant 1.000000e+30 : f32
      %64 = vector.broadcast %cst_36 : f32 to vector<128x128xf32>
      %65 = arith.select %23, %4, %64 : vector<128x128xi1>, vector<128x128xf32>
      %cst_37 = arith.constant dense<0x7F800000> : vector<128xf32>
      %66 = vector.multi_reduction <minimumf>, %65, %cst_37 [1] : vector<128x128xf32> to vector<128xf32>
      %67 = vector.shape_cast %66 : vector<128xf32> to vector<128x1xf32>
      %68 = arith.minimumf %63, %67 : vector<128x1xf32>
      %c0_38 = arith.constant 0 : index
      %c0_39 = arith.constant 0 : index
      %69 = vector.load %arg13[%c0_38, %c0_39] : memref<128x1xf32, #tpu.memory_space<vmem>>, vector<128x1xf32>
      tpu.vector_store %arg13[%c0_38, %c0_39], %68 {strides = array<i32>} : memref<128x1xf32, #tpu.memory_space<vmem>>, vector<128x1xf32>,
    } else {
    }
    %c1_i32 = arith.constant 1 : i32
    %32 = arith.cmpi eq, %arg1, %c1_i32 : i32
    %33 = arith.extui %32 : i1 to i32
    %c0_i32_14 = arith.constant 0 : i32
    %34 = arith.cmpi ne, %33, %c0_i32_14 : i32
    scf.if %34 {
      %c0_i32_15 = arith.constant 0 : i32
      %35 = arith.cmpi eq, %arg2, %c0_i32_15 : i32
      %36 = arith.extui %35 : i1 to i32
      %c0_i32_16 = arith.constant 0 : i32
      %37 = arith.cmpi ne, %36, %c0_i32_16 : i32
      scf.if %37 {
        %cst_32 = arith.constant 0.000000e+00 : f32
        %59 = vector.broadcast %cst_32 : f32 to vector<128x1xf32>
        %c0_33 = arith.constant 0 : index
        %c0_34 = arith.constant 0 : index
        %60 = vector.load %arg14[%c0_33, %c0_34] : memref<128x1xf32, #tpu.memory_space<vmem>>, vector<128x1xf32>
        tpu.vector_store %arg14[%c0_33, %c0_34], %59 {strides = array<i32>} : memref<128x1xf32, #tpu.memory_space<vmem>>, vector<128x1xf32>,
      } else {
      }
      %c0_17 = arith.constant 0 : index
      %c0_18 = arith.constant 0 : index
      %38 = vector.load %arg10[%c0_17, %c0_18] : memref<128x1xf32, #tpu.memory_space<vmem>>, vector<128x1xf32>
      %c0_19 = arith.constant 0 : index
      %c0_20 = arith.constant 0 : index
      %39 = vector.load %arg11[%c0_19, %c0_20] : memref<128x1xf32, #tpu.memory_space<vmem>>, vector<128x1xf32>
      %40 = math.log %39 : vector<128x1xf32>
      %41 = arith.addf %38, %40 : vector<128x1xf32>
      %c0_21 = arith.constant 0 : index
      %c0_22 = arith.constant 0 : index
      %42 = memref.load %arg7[%c0_21, %c0_22] : memref<1x1xf32, #tpu.memory_space<smem>>
      %43 = vector.broadcast %41 : vector<128x1xf32> to vector<128x128xf32>
      %44 = arith.subf %4, %43 : vector<128x128xf32>
      %cst_23 = arith.constant -1.000000e+00 : f32
      %45 = vector.broadcast %cst_23 : f32 to vector<128x128xf32>
      %46 = arith.mulf %45, %44 : vector<128x128xf32>
      %47 = vector.broadcast %42 : f32 to vector<128x128xf32>
      %48 = arith.maximumf %46, %47 : vector<128x128xf32>
      %c0_24 = arith.constant 0 : index
      %c0_25 = arith.constant 0 : index
      %49 = vector.load %arg14[%c0_24, %c0_25] : memref<128x1xf32, #tpu.memory_space<vmem>>, vector<128x1xf32>
      %cst_26 = arith.constant 0.000000e+00 : f32
      %50 = vector.broadcast %cst_26 : f32 to vector<128x128xf32>
      %51 = arith.select %23, %48, %50 : vector<128x128xi1>, vector<128x128xf32>
      %cst_27 = arith.constant dense<0.000000e+00> : vector<128xf32>
      %52 = vector.multi_reduction <add>, %51, %cst_27 [1] : vector<128x128xf32> to vector<128xf32>
      %53 = vector.shape_cast %52 : vector<128xf32> to vector<128x1xf32>
      %54 = arith.addf %49, %53 : vector<128x1xf32>
      %c0_28 = arith.constant 0 : index
      %c0_29 = arith.constant 0 : index
      %55 = vector.load %arg14[%c0_28, %c0_29] : memref<128x1xf32, #tpu.memory_space<vmem>>, vector<128x1xf32>
      tpu.vector_store %arg14[%c0_28, %c0_29], %54 {strides = array<i32>} : memref<128x1xf32, #tpu.memory_space<vmem>>, vector<128x1xf32>,
      %c0_i32_30 = arith.constant 0 : i32
      %56 = arith.cmpi eq, %arg2, %c0_i32_30 : i32
      %57 = arith.extui %56 : i1 to i32
      %c0_i32_31 = arith.constant 0 : i32
      %58 = arith.cmpi ne, %57, %c0_i32_31 : i32
      scf.if %58 {
        %c0_32 = arith.constant 0 : index
        %c0_33 = arith.constant 0 : index
        %59 = vector.load %arg12[%c0_32, %c0_33] : memref<128x1xf32, #tpu.memory_space<vmem>>, vector<128x1xf32>
        %cst_34 = arith.constant 0.000000e+00 : f32
        %60 = vector.broadcast %cst_34 : f32 to vector<128x1xf32>
        %61 = arith.cmpf ogt, %59, %60 : vector<128x1xf32>
        %cst_35 = arith.constant -1.000000e+00 : f32
        %62 = vector.broadcast %cst_35 : f32 to vector<128x1xf32>
        %63 = arith.cmpf one, %5, %62 : vector<128x1xf32>
        %64 = arith.andi %61, %63 : vector<128x1xi1>
        %c0_36 = arith.constant 0 : index
        %c0_37 = arith.constant 0 : index
        %65 = vector.load %arg14[%c0_36, %c0_37] : memref<128x1xf32, #tpu.memory_space<vmem>>, vector<128x1xf32>
        %cst_38 = arith.constant 1.000000e+00 : f32
        %66 = vector.broadcast %cst_38 : f32 to vector<128x1xf32>
        %67 = arith.maximumf %59, %66 : vector<128x1xf32>
        %68 = arith.divf %65, %67 : vector<128x1xf32>
        %cst_39 = arith.constant 0.000000e+00 : f32
        %69 = vector.broadcast %cst_39 : f32 to vector<128x1xf32>
        %70 = arith.select %64, %68, %69 : vector<128x1xi1>, vector<128x1xf32>
        %c0_40 = arith.constant 0 : index
        %c0_41 = arith.constant 0 : index
        %71 = vector.load %arg8[%c0_40, %c0_41] : memref<128x1xf32, #tpu.memory_space<vmem>>, vector<128x1xf32>
        tpu.vector_store %arg8[%c0_40, %c0_41], %70 {strides = array<i32>} : memref<128x1xf32, #tpu.memory_space<vmem>>, vector<128x1xf32>,
        %c0_42 = arith.constant 0 : index
        %c0_43 = arith.constant 0 : index
        %72 = vector.load %arg13[%c0_42, %c0_43] : memref<128x1xf32, #tpu.memory_space<vmem>>, vector<128x1xf32>
        %73 = arith.subf %72, %41 : vector<128x1xf32>
        %cst_44 = arith.constant -1.000000e+00 : f32
        %74 = vector.broadcast %cst_44 : f32 to vector<128x1xf32>
        %75 = arith.mulf %74, %73 : vector<128x1xf32>
        %cst_45 = arith.constant -1.000000e+30 : f32
        %76 = vector.broadcast %cst_45 : f32 to vector<128x1xf32>
        %77 = arith.select %64, %75, %76 : vector<128x1xi1>, vector<128x1xf32>
        %c0_46 = arith.constant 0 : index
        %c0_47 = arith.constant 0 : index
        %78 = vector.load %arg9[%c0_46, %c0_47] : memref<128x1xf32, #tpu.memory_space<vmem>>, vector<128x1xf32>
        tpu.vector_store %arg9[%c0_46, %c0_47], %77 {strides = array<i32>} : memref<128x1xf32, #tpu.memory_space<vmem>>, vector<128x1xf32>,
      } else {
      }
    } else {
    }
    return
  }
  func.func @transform_0(%arg0: i32, %arg1: i32, %arg2: i32) -> (i32, i32) {
    %c0_i32 = arith.constant 0 : i32
    %c0_i32_0 = arith.constant 0 : i32
    return %arg0, %c0_i32 : i32, i32
  }
  func.func @transform_1(%arg0: i32, %arg1: i32, %arg2: i32) -> (i32, i32) {
    %c0_i32 = arith.constant 0 : i32
    %c0_i32_0 = arith.constant 0 : i32
    return %arg2, %c0_i32 : i32, i32
  }
  func.func @transform_2(%arg0: i32, %arg1: i32, %arg2: i32) -> (i32, i32) {
    %c0_i32 = arith.constant 0 : i32
    %c0_i32_0 = arith.constant 0 : i32
    return %arg0, %c0_i32 : i32, i32
  }
  func.func @transform_3(%arg0: i32, %arg1: i32, %arg2: i32) -> (i32, i32) {
    %c0_i32 = arith.constant 0 : i32
    %c0_i32_0 = arith.constant 0 : i32
    return %c0_i32, %arg2 : i32, i32
  }
  func.func @transform_4(%arg0: i32, %arg1: i32, %arg2: i32) -> (i32, i32) {
    %c0_i32 = arith.constant 0 : i32
    %c0_i32_0 = arith.constant 0 : i32
    %c0_i32_1 = arith.constant 0 : i32
    return %c0_i32, %c0_i32_0 : i32, i32
  }
  func.func @transform_5(%arg0: i32, %arg1: i32, %arg2: i32) -> (i32, i32) {
    %c0_i32 = arith.constant 0 : i32
    %c0_i32_0 = arith.constant 0 : i32
    return %arg0, %c0_i32 : i32, i32
  }
  func.func @transform_6(%arg0: i32, %arg1: i32, %arg2: i32) -> (i32, i32) {
    %c0_i32 = arith.constant 0 : i32
    %c0_i32_0 = arith.constant 0 : i32
    return %arg0, %c0_i32 : i32, i32
  }
}

</mosaic_0001>

<bundles_post_ra>
// kernel: _device.3
= control target key start
LH: loop header
LB: loop body
LE: loop exit
PB: predicated region body
PF: predicated region fallthrough
CT: control target
= control target key end

     0   :  { %s2550_s23 = smov 0   ;;  %s2552_s24 = smov 0   ;;  %s4012_s0 = inlined_call_operand.vmem [shape: bf16[128,128], index: 0, kind: input, shape index: {}, may-alias: {0,1}]   ;;  %s4013_s1 = inlined_call_operand.vmem [shape: bf16[128,128], index: 1, kind: input, shape index: {}, may-alias: {0,1}]   ;;  %s4014_s2 = inlined_call_operand.vmem [shape: f32[128,1], index: 2, kind: input, shape index: {}]   ;;  %s4015_s3 = inlined_call_operand.vmem [shape: f32[1,128], index: 3, kind: input, shape index: {}]   ;;  %s4016_s4 = inlined_call_operand.<no memory space> [shape: f32[1,1], index: 4, kind: input, shape index: {}]   ;;  %s4017_s5 = inlined_call_operand.vmem [shape: f32[128,1], index: 5, kind: output, shape index: {0}]   ;;  %s4018_s6 = inlined_call_operand.vmem [shape: f32[128,1], index: 6, kind: output, shape index: {1}]  }
   0x1   :  { %12 = sst [smem:[#allocation7]] %s4016_s4  ;;  %s2554_s25 = smov 0  }
   0x2 LB: > { %s33_s4 = sadd.s32 1, %s2498_s24  ;;  %p2191_p0 = scmp.ge.s32.totalorder %s2502_s25, 1  ;;  %s2502_s25 = sphi %s2554_s25, %s18_s25   ;;  %s2498_s24 = sphi %s2552_s24, %s4496_s24   ;;  %s2494_s23 = sphi %s2550_s23, %s4495_s23  }
   0x3   : > { %p35_p1 = scmp.ge.s32.totalorder %s33_s4, 2  ;;  %p266_p2 = scmp.lt.s32.totalorder %s2502_s25, 3 }
   0x5   : > { %s4498_s4 = smov (%p35_p1, %s33_s4), 0  ;;  %p267_p3 = pnand %p2191_p0, %p266_p2 }
   0x7   : > { %270 = sbr.rel (%p267_p3) target bundleno = 1180 (0x49c), region = 40 }
   0xe   : > { %v2332_v0 = vld [vmem:[%s4013_s1] sm:$0xff]   ;;  %v2333_v1 = vld [vmem:[%s4013_s1 + $0x8] sm:$0xff]   ;;  %v2504_v2 = vmov 0   ;;  %v2334_v3 = vld [vmem:[%s4013_s1 + $0x10] sm:$0xff]   ;;  %v607_v33 = vlaneseq  ;;  %v4159_v45 = vmov 0  ;;  %v4161_v47 = vmov 0 }
   0xf   : > { %2331 = vset.pattern.permute.xlu1 %v2504_v2  ;;  %2330 = vset.pattern.permute.xlu0 %v2504_v2  ;;  %v2340_v4 = vld [vmem:[%s4012_s0] sm:$0xff]   ;;  %v2335_v6 = vld [vmem:[%s4013_s1 + $0x18] sm:$0xff]   ;;  %v2593_v7 = vld [vmem:[%s4014_s2 + $0x10] sm:$0xff]  ;;  %v4163_v49 = vmov 0  ;;  %v4165_v51 = vmov 0  ;;  %v4168_v53 = vmov 0 }
  0x10   : > { %2250 = vmatprep.subr.bf16.mxu0 %v2332_v0  ;;  %2282 = vmatprep.subr.bf16.mxu1 %v2332_v0  ;;  %v2341_v5 = vld [vmem:[%s4012_s0 + $0x20] sm:$0xff]   ;;  %4143 = vst [vmem:[#allocation8_spill] sm:$0xff] %v2593_v7  ;;  %v2605_v9 = vld [vmem:[%s4014_s2 + $0x18] sm:$0xff]  ;;  %v2610_v10 = vld [vmem:[%s4014_s2 + $0x8] sm:$0xff]  ;;  %v2719_v35 = vshrl.u32 %v607_v33, 7  ;;  %v2726_v40 = vand.u32 127, %v607_v33 }
  0x11   : > { %2251 = vmatpush3.bf16.xpose.msra.mxu0 %v2332_v0  ;;  %2290 = vmatpush3.bf16.xpose.msra.mxu1 %v2332_v0  ;;  %v2598_v8 = vld [vmem:[%s4014_s2] sm:$0xff]  ;;  %4145 = vst [vmem:[#allocation10_spill] sm:$0xff] %v2605_v9  ;;  %4146 = vst [vmem:[#allocation11_spill] sm:$0xff] %v2610_v10  ;;  %v2617_v11 = vld [vmem:[%s4014_s2 + $0x28] sm:$0xff]  ;;  %v4171_v55 = vmov 0  ;;  %v4173_v57 = vmov 0 }
  0x12   : > { %2252 = vmatprep.subr.bf16.mxu0 %v2333_v1  ;;  %2283 = vmatprep.subr.bf16.mxu1 %v2333_v1  ;;  %4144 = vst [vmem:[#allocation9_spill] sm:$0xff] %v2598_v8  ;;  %4147 = vst [vmem:[#allocation12_spill] sm:$0xff] %v2617_v11  ;;  %v2622_v12 = vld [vmem:[%s4014_s2 + $0x20] sm:$0xff]  ;;  %v2632_v14 = vld [vmem:[%s4014_s2 + $0x38] sm:$0xff]  ;;  %v666_v36 = vsub.s32 0, %v2719_v35  ;;  %v610_v39 = vadd.s32 16, %v2719_v35  ;;  %vm646_vm3 = vcmp.ne.s32.totalorder %v2719_v35, %v2726_v40 }
  0x13   : > { %2266 = vmatprep.mubr.bf16.mxu0 %v2340_v4  ;;  %2274 = vmatprep.mubr.bf16.mxu1 %v2341_v5  ;;  %4148 = vst [vmem:[#allocation13_spill] sm:$0xff] %v2622_v12  ;;  %v2336_v13 = vld [vmem:[%s4013_s1 + $0x20] sm:$0xff]   ;;  %4149 = vst [vmem:[#allocation14_spill] sm:$0xff] %v2632_v14  ;;  %v2637_v15 = vld [vmem:[%s4014_s2 + $0x30] sm:$0xff]  ;;  %v611_v41 = vadd.s32 24, %v2719_v35  ;;  %v609_v43 = vadd.s32 8, %v2719_v35 }
  0x14   : > { %697 = vperm.xlu1 %2331, %v2593_v7   ;;  %687 = vperm.xlu0 %2330, %v2598_v8   ;;  %4150 = vst [vmem:[#allocation15_spill] sm:$0xff] %v2637_v15  ;;  %v2644_v16 = vld [vmem:[%s4014_s2 + $0x48] sm:$0xff]  ;;  %v2649_v17 = vld [vmem:[%s4014_s2 + $0x40] sm:$0xff]  ;;  %v2659_v19 = vld [vmem:[%s4014_s2 + $0x58] sm:$0xff]  ;;  %vm648_vm2 = vcmp.ne.s32.totalorder %v610_v39, %v2726_v40  ;;  %v613_v44 = vadd.s32 40, %v2719_v35  ;;  %v612_v50 = vadd.s32 32, %v2719_v35 }
  0x15   : > { %4151 = vst [vmem:[#allocation16_spill] sm:$0xff] %v2644_v16  ;;  %4152 = vst [vmem:[#allocation17_spill] sm:$0xff] %v2649_v17  ;;  %v2337_v18 = vld [vmem:[%s4013_s1 + $0x28] sm:$0xff]   ;;  %v2664_v20 = vld [vmem:[%s4014_s2 + $0x50] sm:$0xff]  ;;  %vm649_vm4 = vcmp.ne.s32.totalorder %v611_v41, %v2726_v40  ;;  %vm647_vm10 = vcmp.ne.s32.totalorder %v609_v43, %v2726_v40  ;;  %v615_v52 = vadd.s32 56, %v2719_v35  ;;  %v614_v58 = vadd.s32 48, %v2719_v35 }
  0x16   : > { %4153 = vst [vmem:[#allocation18_spill] sm:$0xff] %v2659_v19  ;;  %4154 = vst [vmem:[#allocation19_spill] sm:$0xff] %v2664_v20  ;;  %v2671_v21 = vld [vmem:[%s4014_s2 + $0x68] sm:$0xff]  ;;  %v2676_v22 = vld [vmem:[%s4014_s2 + $0x60] sm:$0xff]  ;;  %vm651_vm12 = vcmp.ne.s32.totalorder %v613_v44, %v2726_v40  ;;  %v4175_v59 = vmov 0  ;;  %v617_v60 = vadd.s32 72, %v2719_v35 }
  0x17   : > { %4155 = vst [vmem:[#allocation20_spill] sm:$0xff] %v2671_v21  ;;  %4156 = vst [vmem:[#allocation21_spill] sm:$0xff] %v2676_v22  ;;  %v2338_v23 = vld [vmem:[%s4013_s1 + $0x30] sm:$0xff]   ;;  %v2686_v24 = vld [vmem:[%s4014_s2 + $0x78] sm:$0xff]  ;;  %v4177_v61 = vmov 0  ;;  %v4179_v63 = vmov 0 }
  0x18   : > { %702 = vperm.xlu1 %2331, %v2605_v9   ;;  %692 = vperm.xlu0 %2330, %v2610_v10   ;;  %4157 = vst [vmem:[#allocation22_spill] sm:$0xff] %v2686_v24  ;;  %v2691_v25 = vld [vmem:[%s4014_s2 + $0x70] sm:$0xff]  ;;  %v2339_v26 = vld [vmem:[%s4013_s1 + $0x38] sm:$0xff]   ;;  %v2342_v27 = vld [vmem:[%s4012_s0 + $0x8] sm:$0xff]   ;;  %v619_v4 = vadd.s32 88, %v2719_v35  ;;  %v4185_v5 = vmov 0 }
  0x19   : > { %2253 = vmatpush3.bf16.xpose.msra.mxu0 %v2333_v1  ;;  %2291 = vmatpush3.bf16.xpose.msra.mxu1 %v2333_v1  ;;  %4158 = vst [vmem:[#allocation23_spill] sm:$0xff] %v2691_v25  ;;  %v2343_v28 = vld [vmem:[%s4012_s0 + $0x28] sm:$0xff]   ;;  %v2344_v29 = vld [vmem:[%s4012_s0 + $0x10] sm:$0xff]   ;;  %v2346_v31 = vld [vmem:[%s4012_s0 + $0x18] sm:$0xff]   ;;  %v4181_v1 = vmov 0  ;;  %v4199_v33 = vmov 0 }
  0x1a   : > { %2254 = vmatprep.subr.bf16.mxu0 %v2334_v3  ;;  %2284 = vmatprep.subr.bf16.mxu1 %v2334_v3  ;;  %v2345_v30 = vld [vmem:[%s4012_s0 + $0x30] sm:$0xff]   ;;  %v2347_v32 = vld [vmem:[%s4012_s0 + $0x38] sm:$0xff]   ;;  %v605_v34 = vld [vmem:[%s4015_s3] sm:$0x1]  ;;  %p803_p4 = scmp.eq.s32.totalorder %s2494_s23, 0  ;;  %v4203_v39 = vmov 0 }
  0x1b   : > { %vm662_vm0 = vcmp.ne.f32.partialorder %v605_v34, -1.0  ;;  %v2731_v42 = vrot.slane %v605_v34, %v666_v36  ;;  %v620_v34 = vadd.s32 96, %v2719_v35  ;;  %v4206_v43 = vmov 0 }
  0x1c   : > { %712 = vperm.xlu1 %2331, %v2617_v11   ;;  %707 = vperm.xlu0 %2330, %v2622_v12   ;;  %v663_v37 = vsel %vm662_vm0, 1, %v2504_v2  ;;  %v616_v2 = vadd.s32 64, %v2719_v35 }
  0x1d   : > { %v2723_v38 = vrot.slane %v663_v37, %v666_v36  ;;  %v4201_v36 = vmov 0  ;;  %v623_v37 = vadd.s32 120, %v2719_v35 }
  0x1f   : > { %vm668_vm1 = vcmp.eq.s32.totalorder %v2723_v38, 1 }
  0x20   : > { %722 = vperm.xlu1 %2331, %v2632_v14   ;;  %717 = vperm.xlu0 %2330, %v2637_v15   ;;  %vm2740_vm5 = vmand %vm648_vm2, %vm668_vm1 }
  0x21   : > { %2255 = vmatpush3.bf16.xpose.msra.mxu0 %v2334_v3  ;;  %2292 = vmatpush3.bf16.xpose.msra.mxu1 %v2334_v3  ;;  %v4160_v45 = vsel %vm2740_vm5, 4294967295, %v4159_v45  ;;  %vm2746_vm6 = vmand %vm646_vm3, %vm668_vm1  ;;  %vm650_vm3 = vcmp.ne.s32.totalorder %v612_v50, %v2726_v40  ;;  %v4183_v3 = vmov 0  ;;  %v4210_v50 = vmov 0 }
  0x22   : > { %2256 = vmatprep.subr.bf16.mxu0 %v2335_v6  ;;  %2285 = vmatprep.subr.bf16.mxu1 %v2335_v6  ;;  %v4162_v47 = vsel %vm2746_vm6, 4294967295, %v4161_v47  ;;  %vm2754_vm9 = vmand %vm649_vm4, %vm668_vm1 }
  0x23   : > { %v4164_v49 = vsel %vm2754_vm9, 4294967295, %v4163_v49  ;;  %vm2776_vm14 = vmand %vm647_vm10, %vm668_vm1 }
  0x24   : > { %732 = vperm.xlu1 %2331, %v2644_v16   ;;  %727 = vperm.xlu0 %2330, %v2649_v17   ;;  %v4172_v55 = vsel %vm2776_vm14, 4294967295, %v4171_v55  ;;  %vm2784_vm2 = vmand %vm651_vm12, %vm668_vm1 }
  0x25   : > { %v4174_v57 = vsel %vm2784_vm2, 4294967295, %v4173_v57  ;;  %vm2806_vm10 = vmand %vm650_vm3, %vm668_vm1 }
  0x26   : > { %v4180_v63 = vsel %vm2806_vm10, 4294967295, %v4179_v63 }
  0x28   : > { %742 = vperm.xlu1 %2331, %v2659_v19   ;;  %737 = vperm.xlu0 %2330, %v2664_v20  }
  0x29   : > { %2257 = vmatpush3.bf16.xpose.msra.mxu0 %v2335_v6  ;;  %2293 = vmatpush3.bf16.xpose.msra.mxu1 %v2335_v6 }
  0x2a   : > { %2258 = vmatprep.subr.bf16.mxu0 %v2336_v13  ;;  %2286 = vmatprep.subr.bf16.mxu1 %v2336_v13 }
  0x2c   : > { %752 = vperm.xlu1 %2331, %v2671_v21   ;;  %747 = vperm.xlu0 %2330, %v2676_v22  }
  0x30   : > { %762 = vperm.xlu1 %2331, %v2686_v24   ;;  %757 = vperm.xlu0 %2330, %v2691_v25  }
  0x31   : > { %2259 = vmatpush3.bf16.xpose.msra.mxu0 %v2336_v13  ;;  %2294 = vmatpush3.bf16.xpose.msra.mxu1 %v2336_v13  ;;  %v4188_v13 = vmov 0 }
  0x32   : > { %2260 = vmatprep.subr.bf16.mxu0 %v2337_v18  ;;  %2287 = vmatprep.subr.bf16.mxu1 %v2337_v18 }
  0x39   : > { %2261 = vmatpush3.bf16.xpose.msra.mxu0 %v2337_v18  ;;  %2295 = vmatpush3.bf16.xpose.msra.mxu1 %v2337_v18 }
  0x3a   : > { %2262 = vmatprep.subr.bf16.mxu0 %v2338_v23  ;;  %2288 = vmatprep.subr.bf16.mxu1 %v2338_v23 }
  0x41   : > { %2263 = vmatpush3.bf16.xpose.msra.mxu0 %v2338_v23  ;;  %2296 = vmatpush3.bf16.xpose.msra.mxu1 %v2338_v23  ;;  %v4190_v23 = vmov 0 }
  0x42   : > { %2264 = vmatprep.subr.bf16.mxu0 %v2339_v26  ;;  %2289 = vmatprep.subr.bf16.mxu1 %v2339_v26 }
  0x49   : > { %2265 = vmatpush3.bf16.xpose.msra.mxu0 %v2339_v26  ;;  %2297 = vmatpush3.bf16.xpose.msra.mxu1 %v2339_v26  ;;  %v618_v26 = vadd.s32 80, %v2719_v35 }
  0x50   : > { %2267 = vmatmul.mubr.bf16.vlgmr.msra.gmra.mrb[0].mxu0 %v2342_v27  ;;  %2275 = vmatmul.mubr.bf16.vlgmr.msra.gmra.mrb[0].mxu1 %v2343_v28  ;;  %v4192_v27 = vmov 0  ;;  %v621_v28 = vadd.s32 104, %v2719_v35 }
  0x51   : > { %2270 = vmatprep.mubr.bf16.mxu0 %v2344_v29  ;;  %2278 = vmatprep.mubr.bf16.mxu1 %v2345_v30  ;;  %v4194_v29 = vmov 0 }
  0x58   : > { %2271 = vmatmul.mubr.bf16.gmra.mrb[4].mxu0 %v2346_v31  ;;  %2279 = vmatmul.mubr.bf16.gmra.mrb[4].mxu1 %v2347_v32  ;;  %v4197_v31 = vmov 0 }
  0x93   : > { %v698_v46 = vpop.permute.xlu1 %697  ;;  %v688_v48 = vpop.permute.xlu0 %687 }
  0x94   : > { %vm773_vm7 = vcmp.eq.f32.partialorder %v698_v46, %v2731_v42  ;;  %vm771_vm8 = vcmp.eq.f32.partialorder %v688_v48, %v2731_v42  ;;  %v4208_v46 = vmov 0  ;;  %v622_v48 = vadd.s32 112, %v2719_v35 }
  0x95   : > { %vm2762_vm11 = vmand %vm773_vm7, %vm2740_vm5  ;;  %vm653_vm7 = vcmp.ne.s32.totalorder %v615_v52, %v2726_v40  ;;  %v4212_v52 = vmov 0 }
  0x96   : > { %v4166_v51 = vsel %vm2762_vm11, 4294967295, %v4165_v51  ;;  %vm2770_vm13 = vmand %vm771_vm8, %vm2746_vm6  ;;  %vm655_vm11 = vcmp.ne.s32.totalorder %v617_v60, %v2726_v40  ;;  %v4218_v60 = vmov 0 }
  0x97   : > { %4167 = vst [vmem:[#allocation24_spill] sm:$0xff] %v4166_v51  ;;  %v4169_v53 = vsel %vm2770_vm13, 4294967295, %v4168_v53  ;;  %v703_v54 = vpop.permute.xlu1 %702  ;;  %v693_v56 = vpop.permute.xlu0 %692  ;;  %vm2844_vm13 = vmand %vm655_vm11, %vm668_vm1 }
  0x98   : > { %4170 = vst [vmem:[#allocation25_spill] sm:$0xff] %v4169_v53  ;;  %vm774_vm15 = vcmp.eq.f32.partialorder %v703_v54, %v2731_v42  ;;  %vm772_vm0 = vcmp.eq.f32.partialorder %v693_v56, %v2731_v42  ;;  %v4191_v23 = vsel %vm2844_vm13, 4294967295, %v4190_v23  ;;  %v4214_v56 = vmov 0 }
  0x99   : > { %vm2792_vm4 = vmand %vm774_vm15, %vm2754_vm9 }
  0x9a   : > { %v4176_v59 = vsel %vm2792_vm4, 4294967295, %v4175_v59  ;;  %vm2800_vm8 = vmand %vm772_vm0, %vm2776_vm14  ;;  %vm652_vm0 = vcmp.ne.s32.totalorder %v614_v58, %v2726_v40  ;;  %v4216_v58 = vmov 0 }
  0x9b   : > { %v4178_v61 = vsel %vm2800_vm8, 4294967295, %v4177_v61  ;;  %v713_v62 = vpop.permute.xlu1 %712  ;;  %v708_v0 = vpop.permute.xlu0 %707  ;;  %vm2814_vm4 = vmand %vm653_vm7, %vm668_vm1 }
  0x9c   : > { %vm776_vm12 = vcmp.eq.f32.partialorder %v713_v62, %v2731_v42  ;;  %vm775_vm15 = vcmp.eq.f32.partialorder %v708_v0, %v2731_v42  ;;  %v4182_v1 = vsel %vm2814_vm4, 4294967295, %v4181_v1  ;;  %vm2836_vm8 = vmand %vm652_vm0, %vm668_vm1 }
  0x9d   : > { %vm2822_vm3 = vmand %vm776_vm12, %vm2784_vm2  ;;  %v4189_v13 = vsel %vm2836_vm8, 4294967295, %v4188_v13 }
  0x9e   : > { %v4184_v3 = vsel %vm2822_vm3, 4294967295, %v4183_v3  ;;  %vm2830_vm7 = vmand %vm775_vm15, %vm2806_vm10  ;;  %vm654_vm15 = vcmp.ne.s32.totalorder %v616_v2, %v2726_v40  ;;  %v4222_v2 = vmov 0 }
  0x9f   : > { %v4186_v5 = vsel %vm2830_vm7, 4294967295, %v4185_v5  ;;  %v723_v6 = vpop.permute.xlu1 %722  ;;  %v718_v18 = vpop.permute.xlu0 %717  ;;  %vm657_vm7 = vcmp.ne.s32.totalorder %v619_v4, %v2726_v40  ;;  %vm2866_vm10 = vmand %vm654_vm15, %vm668_vm1 }
  0xa0   : > { %4187 = vst [vmem:[#allocation26_spill] sm:$0xff] %v4186_v5  ;;  %vm778_vm12 = vcmp.eq.f32.partialorder %v723_v6, %v2731_v42  ;;  %vm777_vm3 = vcmp.eq.f32.partialorder %v718_v18, %v2731_v42  ;;  %v4198_v31 = vsel %vm2866_vm10, 4294967295, %v4197_v31 }
  0xa1   : > { %vm2852_vm0 = vmand %vm778_vm12, %vm2814_vm4 }
  0xa2   : > { %v4193_v27 = vsel %vm2852_vm0, 4294967295, %v4192_v27  ;;  %vm2860_vm11 = vmand %vm777_vm3, %vm2836_vm8  ;;  %vm656_vm3 = vcmp.ne.s32.totalorder %v618_v26, %v2726_v40 }
  0xa3   : > { %v4195_v29 = vsel %vm2860_vm11, 4294967295, %v4194_v29  ;;  %v733_v30 = vpop.permute.xlu1 %732  ;;  %v728_v32 = vpop.permute.xlu0 %727  ;;  %vm2874_vm4 = vmand %vm657_vm7, %vm668_vm1  ;;  %vm659_vm11 = vcmp.ne.s32.totalorder %v621_v28, %v2726_v40 }
  0xa4   : > { %4196 = vst [vmem:[#allocation27_spill] sm:$0xff] %v4195_v29  ;;  %vm780_vm12 = vcmp.eq.f32.partialorder %v733_v30, %v2731_v42  ;;  %vm779_vm0 = vcmp.eq.f32.partialorder %v728_v32, %v2731_v42  ;;  %v4200_v33 = vsel %vm2874_vm4, 4294967295, %v4199_v33  ;;  %vm2897_vm8 = vmand %vm656_vm3, %vm668_vm1 }
  0xa5   : > { %vm2883_vm15 = vmand %vm780_vm12, %vm2844_vm13  ;;  %v4207_v43 = vsel %vm2897_vm8, 4294967295, %v4206_v43 }
  0xa6   : > { %v4202_v36 = vsel %vm2883_vm15, 4294967295, %v4201_v36  ;;  %vm2891_vm7 = vmand %vm779_vm0, %vm2866_vm10  ;;  %vm658_vm0 = vcmp.ne.s32.totalorder %v620_v34, %v2726_v40 }
  0xa7   : > { %v4204_v39 = vsel %vm2891_vm7, 4294967295, %v4203_v39  ;;  %v743_v41 = vpop.permute.xlu1 %742  ;;  %v738_v44 = vpop.permute.xlu0 %737  ;;  %vm2905_vm13 = vmand %vm659_vm11, %vm668_vm1  ;;  %vm661_vm7 = vcmp.ne.s32.totalorder %v623_v37, %v2726_v40 }
  0xa8   : > { %4205 = vst [vmem:[#allocation28_spill] sm:$0xff] %v4204_v39  ;;  %vm782_vm12 = vcmp.eq.f32.partialorder %v743_v41, %v2731_v42  ;;  %vm781_vm15 = vcmp.eq.f32.partialorder %v738_v44, %v2731_v42  ;;  %v4209_v46 = vsel %vm2905_vm13, 4294967295, %v4208_v46  ;;  %vm2926_vm11 = vmand %vm658_vm0, %vm668_vm1 }
  0xa9   : > { %vm2913_vm3 = vmand %vm782_vm12, %vm2874_vm4  ;;  %v4215_v56 = vsel %vm2926_vm11, 4294967295, %v4214_v56 }
  0xaa   : > { %v4211_v50 = vsel %vm2913_vm3, 4294967295, %v4210_v50  ;;  %vm2920_vm10 = vmand %vm781_vm15, %vm2897_vm8  ;;  %vm660_vm15 = vcmp.ne.s32.totalorder %v622_v48, %v2726_v40 }
  0xab   : > { %v4213_v52 = vsel %vm2920_vm10, 4294967295, %v4212_v52  ;;  %v753_v54 = vpop.permute.xlu1 %752  ;;  %v748_v35 = vpop.permute.xlu0 %747  ;;  %vm2934_vm4 = vmand %vm661_vm7, %vm668_vm1 }
  0xac   : > { %vm784_vm12 = vcmp.eq.f32.partialorder %v753_v54, %v2731_v42  ;;  %vm783_vm3 = vcmp.eq.f32.partialorder %v748_v35, %v2731_v42  ;;  %v4217_v58 = vsel %vm2934_vm4, 4294967295, %v4216_v58  ;;  %vm2953_vm7 = vmand %vm660_vm15, %vm668_vm1  ;;  %vm809_vm1 = vcmask (%p803_p4), 7168  }
  0xad   : > { %vm2941_vm10 = vmand %vm784_vm12, %vm2905_vm13  ;;  %v4223_v2 = vsel %vm2953_vm7, 4294967295, %v4222_v2 }
  0xae   : > { %v4219_v60 = vsel %vm2941_vm10, 4294967295, %v4218_v60  ;;  %vm2947_vm0 = vmand %vm783_vm3, %vm2926_vm11 }
  0xaf   : > { %v763_v0 = vpop.permute.xlu1 %762  ;;  %v758_v40 = vpop.permute.xlu0 %757 }
  0xb0   : > { %vm786_vm8 = vcmp.eq.f32.partialorder %v763_v0, %v2731_v42  ;;  %vm785_vm12 = vcmp.eq.f32.partialorder %v758_v40, %v2731_v42 }
  0xb1   : > { %vm2961_vm10 = vmand %vm786_vm8, %vm2934_vm4 }
  0xb2   : > { %vm2967_vm3 = vmand %vm785_vm12, %vm2953_vm7 }
 0x123   : > { %v2268_v38 = vpop.f32.mrb[0].mxu0  ;;  %v2276_v18 = vpop.f32.mrb[0].mxu1 }
 0x124   : > { %v2971_v26 = vmul.f32 14.285714, %v2268_v38  ;;  %v2973_v28 = vmul.f32 14.285714, %v2276_v18  ;;  %v510_v30 = vpop.f32.mrb[1].mxu0  ;;  %v542_v42 = vpop.f32.mrb[1].mxu1 }
 0x125   : > { %v2975_v32 = vmul.f32 14.285714, %v510_v30  ;;  %v2977_v34 = vmul.f32 14.285714, %v542_v42  ;;  %v2269_v37 = vpop.f32.mrb[2].mxu0  ;;  %v2277_v41 = vpop.f32.mrb[2].mxu1 }
 0x126   : > { %v2979_v44 = vmul.f32 14.285714, %v2269_v37  ;;  %v2981_v48 = vmul.f32 14.285714, %v2277_v41  ;;  %v513_v54 = vpop.f32.mrb[3].mxu0  ;;  %v545_v35 = vpop.f32.mrb[3].mxu1 }
 0x127   : > { %v2983_v0 = vmul.f32 14.285714, %v513_v54  ;;  %v2985_v40 = vmul.f32 14.285714, %v545_v35 }
 0x129   : > { %808 = sbr.rel (!%p803_p4) target bundleno = 336 (0x150), region = 44 }
 0x12b   : > { %v2272_v38 = vpop.f32.mrb[4].mxu0  ;;  %v2280_v18 = vpop.f32.mrb[4].mxu1 }
 0x12c   : > { %v2987_v25 = vmul.f32 14.285714, %v2272_v38  ;;  %v2989_v30 = vmul.f32 14.285714, %v2280_v18  ;;  %v526_v42 = vpop.f32.mrb[5].mxu0  ;;  %v558_v24 = vpop.f32.mrb[5].mxu1 }
 0x12d   : > { %v2991_v22 = vmul.f32 14.285714, %v526_v42  ;;  %v2993_v37 = vmul.f32 14.285714, %v558_v24  ;;  %v2273_v41 = vpop.f32.mrb[6].mxu0  ;;  %v2281_v21 = vpop.f32.mrb[6].mxu1 }
 0x12e   : > { %v2995_v20 = vmul.f32 14.285714, %v2273_v41  ;;  %v2997_v54 = vmul.f32 14.285714, %v2281_v21  ;;  %v529_v35 = vpop.f32.mrb[7].mxu0  ;;  %v561_v19 = vpop.f32.mrb[7].mxu1 }
 0x12f   : > { %v2999_v17 = vmul.f32 14.285714, %v529_v35  ;;  %v3001_v38 = vmul.f32 14.285714, %v561_v19  ;;  %v2505_v18 = vmov (%p803_p4), -1e+30  }
 0x130   : > { %810 = vst.msk [vmem:[#allocation2] sm:$0xff] %vm809_vm1, %v2505_v18  ;;  %811 = vst.msk [vmem:[#allocation2 + $0x8] sm:$0xff] %vm809_vm1, %v2505_v18  ;;  %v2506_v19 = vmov 0.0   ;;  %v2507_v21 = vmov 1e+30  }
 0x131   : > { %812 = vst.msk [vmem:[#allocation2 + $0x10] sm:$0xff] %vm809_vm1, %v2505_v18  ;;  %813 = vst.msk [vmem:[#allocation2 + $0x18] sm:$0xff] %vm809_vm1, %v2505_v18 }
 0x132   : > { %814 = vst.msk [vmem:[#allocation2 + $0x20] sm:$0xff] %vm809_vm1, %v2505_v18  ;;  %815 = vst.msk [vmem:[#allocation2 + $0x28] sm:$0xff] %vm809_vm1, %v2505_v18 }
 0x133   : > { %816 = vst.msk [vmem:[#allocation2 + $0x30] sm:$0xff] %vm809_vm1, %v2505_v18  ;;  %817 = vst.msk [vmem:[#allocation2 + $0x38] sm:$0xff] %vm809_vm1, %v2505_v18 }
 0x134   : > { %818 = vst.msk [vmem:[#allocation2 + $0x40] sm:$0xff] %vm809_vm1, %v2505_v18  ;;  %819 = vst.msk [vmem:[#allocation2 + $0x48] sm:$0xff] %vm809_vm1, %v2505_v18 }
 0x135   : > { %820 = vst.msk [vmem:[#allocation2 + $0x50] sm:$0xff] %vm809_vm1, %v2505_v18  ;;  %821 = vst.msk [vmem:[#allocation2 + $0x58] sm:$0xff] %vm809_vm1, %v2505_v18 }
 0x136   : > { %822 = vst.msk [vmem:[#allocation2 + $0x60] sm:$0xff] %vm809_vm1, %v2505_v18  ;;  %823 = vst.msk [vmem:[#allocation2 + $0x68] sm:$0xff] %vm809_vm1, %v2505_v18 }
 0x137   : > { %824 = vst.msk [vmem:[#allocation2 + $0x70] sm:$0xff] %vm809_vm1, %v2505_v18  ;;  %825 = vst.msk [vmem:[#allocation2 + $0x78] sm:$0xff] %vm809_vm1, %v2505_v18 }
 0x138   : > { %826 = vst.msk [vmem:[#allocation3] sm:$0xff] %vm809_vm1, %v2506_v19  ;;  %827 = vst.msk [vmem:[#allocation3 + $0x8] sm:$0xff] %vm809_vm1, %v2506_v19 }
 0x139   : > { %828 = vst.msk [vmem:[#allocation3 + $0x10] sm:$0xff] %vm809_vm1, %v2506_v19  ;;  %829 = vst.msk [vmem:[#allocation3 + $0x18] sm:$0xff] %vm809_vm1, %v2506_v19 }
 0x13a   : > { %830 = vst.msk [vmem:[#allocation3 + $0x20] sm:$0xff] %vm809_vm1, %v2506_v19  ;;  %831 = vst.msk [vmem:[#allocation3 + $0x28] sm:$0xff] %vm809_vm1, %v2506_v19 }
 0x13b   : > { %832 = vst.msk [vmem:[#allocation3 + $0x30] sm:$0xff] %vm809_vm1, %v2506_v19  ;;  %833 = vst.msk [vmem:[#allocation3 + $0x38] sm:$0xff] %vm809_vm1, %v2506_v19 }
 0x13c   : > { %834 = vst.msk [vmem:[#allocation3 + $0x40] sm:$0xff] %vm809_vm1, %v2506_v19  ;;  %835 = vst.msk [vmem:[#allocation3 + $0x48] sm:$0xff] %vm809_vm1, %v2506_v19 }
 0x13d   : > { %836 = vst.msk [vmem:[#allocation3 + $0x50] sm:$0xff] %vm809_vm1, %v2506_v19  ;;  %837 = vst.msk [vmem:[#allocation3 + $0x58] sm:$0xff] %vm809_vm1, %v2506_v19 }
 0x13e   : > { %838 = vst.msk [vmem:[#allocation3 + $0x60] sm:$0xff] %vm809_vm1, %v2506_v19  ;;  %839 = vst.msk [vmem:[#allocation3 + $0x68] sm:$0xff] %vm809_vm1, %v2506_v19 }
 0x13f   : > { %840 = vst.msk [vmem:[#allocation3 + $0x70] sm:$0xff] %vm809_vm1, %v2506_v19  ;;  %841 = vst.msk [vmem:[#allocation3 + $0x78] sm:$0xff] %vm809_vm1, %v2506_v19 }
 0x140   : > { %842 = vst.msk [vmem:[#allocation4] sm:$0xff] %vm809_vm1, %v2506_v19  ;;  %843 = vst.msk [vmem:[#allocation4 + $0x8] sm:$0xff] %vm809_vm1, %v2506_v19 }
 0x141   : > { %844 = vst.msk [vmem:[#allocation4 + $0x10] sm:$0xff] %vm809_vm1, %v2506_v19  ;;  %845 = vst.msk [vmem:[#allocation4 + $0x18] sm:$0xff] %vm809_vm1, %v2506_v19 }
 0x142   : > { %846 = vst.msk [vmem:[#allocation4 + $0x20] sm:$0xff] %vm809_vm1, %v2506_v19  ;;  %847 = vst.msk [vmem:[#allocation4 + $0x28] sm:$0xff] %vm809_vm1, %v2506_v19 }
 0x143   : > { %848 = vst.msk [vmem:[#allocation4 + $0x30] sm:$0xff] %vm809_vm1, %v2506_v19  ;;  %849 = vst.msk [vmem:[#allocation4 + $0x38] sm:$0xff] %vm809_vm1, %v2506_v19 }
 0x144   : > { %850 = vst.msk [vmem:[#allocation4 + $0x40] sm:$0xff] %vm809_vm1, %v2506_v19  ;;  %851 = vst.msk [vmem:[#allocation4 + $0x48] sm:$0xff] %vm809_vm1, %v2506_v19 }
 0x145   : > { %852 = vst.msk [vmem:[#allocation4 + $0x50] sm:$0xff] %vm809_vm1, %v2506_v19  ;;  %853 = vst.msk [vmem:[#allocation4 + $0x58] sm:$0xff] %vm809_vm1, %v2506_v19 }
 0x146   : > { %854 = vst.msk [vmem:[#allocation4 + $0x60] sm:$0xff] %vm809_vm1, %v2506_v19  ;;  %855 = vst.msk [vmem:[#allocation4 + $0x68] sm:$0xff] %vm809_vm1, %v2506_v19 }
 0x147   : > { %856 = vst.msk [vmem:[#allocation4 + $0x70] sm:$0xff] %vm809_vm1, %v2506_v19  ;;  %857 = vst.msk [vmem:[#allocation4 + $0x78] sm:$0xff] %vm809_vm1, %v2506_v19 }
 0x148   : > { %858 = vst.msk [vmem:[#allocation5] sm:$0xff] %vm809_vm1, %v2507_v21  ;;  %859 = vst.msk [vmem:[#allocation5 + $0x8] sm:$0xff] %vm809_vm1, %v2507_v21 }
 0x149   : > { %860 = vst.msk [vmem:[#allocation5 + $0x10] sm:$0xff] %vm809_vm1, %v2507_v21  ;;  %861 = vst.msk [vmem:[#allocation5 + $0x18] sm:$0xff] %vm809_vm1, %v2507_v21 }
 0x14a   : > { %862 = vst.msk [vmem:[#allocation5 + $0x20] sm:$0xff] %vm809_vm1, %v2507_v21  ;;  %863 = vst.msk [vmem:[#allocation5 + $0x28] sm:$0xff] %vm809_vm1, %v2507_v21 }
 0x14b   : > { %864 = vst.msk [vmem:[#allocation5 + $0x30] sm:$0xff] %vm809_vm1, %v2507_v21  ;;  %865 = vst.msk [vmem:[#allocation5 + $0x38] sm:$0xff] %vm809_vm1, %v2507_v21 }
 0x14c   : > { %866 = vst.msk [vmem:[#allocation5 + $0x40] sm:$0xff] %vm809_vm1, %v2507_v21  ;;  %867 = vst.msk [vmem:[#allocation5 + $0x48] sm:$0xff] %vm809_vm1, %v2507_v21 }
 0x14d   : > { %868 = vst.msk [vmem:[#allocation5 + $0x50] sm:$0xff] %vm809_vm1, %v2507_v21  ;;  %869 = vst.msk [vmem:[#allocation5 + $0x58] sm:$0xff] %vm809_vm1, %v2507_v21 }
 0x14e   : > { %870 = vst.msk [vmem:[#allocation5 + $0x60] sm:$0xff] %vm809_vm1, %v2507_v21  ;;  %871 = vst.msk [vmem:[#allocation5 + $0x68] sm:$0xff] %vm809_vm1, %v2507_v21 }
 0x14f   : > { %872 = vst.msk [vmem:[#allocation5 + $0x70] sm:$0xff] %vm809_vm1, %v2507_v21  ;;  %873 = vst.msk [vmem:[#allocation5 + $0x78] sm:$0xff] %vm809_vm1, %v2507_v21 }
 0x150 PF: > { %p2209_p5 = scmp.ne.s32.totalorder %s2494_s23, 0 }
 0x152   : > { %876 = sbr.rel (%p2209_p5) target bundleno = 827 (0x33b), region = 48 }
 0x159   : > { %v879_v24 = vsel %vm2740_vm5, %v2971_v26, -1e+30  ;;  %v877_v42 = vsel %vm2746_vm6, %v2975_v32, -1e+30  ;;  %v880_v41 = vsel %vm2754_vm9, %v2979_v44, -1e+30  ;;  %vm4228_vm8 = vnez %v4180_v63 }
 0x15a   : > { %897 = vmax.xlane.f32.xlu1 %v879_v24  ;;  %893 = vmax.xlane.f32.xlu0 %v877_v42  ;;  %v878_v35 = vsel %vm2776_vm14, %v2983_v0, -1e+30  ;;  %v882_v18 = vsel %vm2784_vm2, %v2999_v17, -1e+30  ;;  %v881_v19 = vsel %vm4228_vm8, %v2991_v22, -1e+30  ;;  %vm4229_vm15 = vnez %v4182_v1 }
 0x15b   : > { %v884_v21 = vsel %vm4229_vm15, %v2995_v20, -1e+30  ;;  %vm4230_vm12 = vnez %v4189_v13  ;;  %vm4231_vm1 = vnez %v4191_v23  ;;  %vm4232_vm2 = vnez %v4198_v31  ;;  %v3209_v16 = vld [vmem:[#allocation2 + $0x20] sm:$0xff]  ;;  %v3228_v11 = vld [vmem:[#allocation2 + $0x30] sm:$0xff]  ;;  %v3245_v15 = vld [vmem:[#allocation2 + $0x48] sm:$0xff] }
 0x15c   : > { %v883_v24 = vsel %vm4230_vm12, %v2987_v25, -1e+30  ;;  %v886_v42 = vsel %vm4231_vm1, %v2985_v40, -1e+30  ;;  %vm4233_vm8 = vnez %v4200_v33  ;;  %vm4234_vm15 = vnez %v4207_v43  ;;  %4254 = vst [vmem:[#allocation35_spill] sm:$0xff] %v3209_v16  ;;  %4258 = vst [vmem:[#allocation39_spill] sm:$0xff] %v3228_v11 }
 0x15d   : > { %vm4241_vm1 = vnez %v4195_v29  ;;  %vm4243_vm12 = vnez %v4204_v39  ;;  %vm4244_vm9 = vnez %v4202_v36  ;;  %vm4245_vm5 = vnez %v4213_v52  ;;  %v3188_v29 = vld [vmem:[#allocation2 + $0x18] sm:$0xff]  ;;  %4261 = vst [vmem:[#allocation42_spill] sm:$0xff] %v3245_v15  ;;  %v3247_v7 = vld [vmem:[#allocation2 + $0x40] sm:$0xff] }
 0x15e   : > { %899 = vmax.xlane.f32.xlu1 %v880_v41  ;;  %895 = vmax.xlane.f32.xlu0 %v878_v35  ;;  %v885_v41 = vsel %vm4232_vm2, %v2977_v34, -1e+30  ;;  %v888_v35 = vsel %vm4233_vm8, %v2981_v48, -1e+30  ;;  %vm4239_vm8 = vnez %v4186_v5  ;;  %vm4242_vm2 = vnez %v4193_v27  ;;  %4250 = vst [vmem:[#allocation31_spill] sm:$0xff] %v3188_v29  ;;  %v3226_v39 = vld [vmem:[#allocation2 + $0x38] sm:$0xff] }
 0x15f   : > { %vm4246_vm14 = vnez %v4211_v50  ;;  %vm4247_vm6 = vnez %v4219_v60  ;;  %4257 = vst [vmem:[#allocation38_spill] sm:$0xff] %v3226_v39  ;;  %4262 = vst [vmem:[#allocation43_spill] sm:$0xff] %v3247_v7 }
 0x162   : > { %903 = vmax.xlane.f32.xlu1 %v882_v18  ;;  %901 = vmax.xlane.f32.xlu0 %v881_v19  ;;  %v887_v18 = vsel %vm4234_vm15, %v2973_v28, -1e+30  ;;  %v2508_v19 = vmov 0   ;;  %vm4240_vm15 = vnez %v4184_v3 }
 0x163   : > { %2349 = vset.pattern.permute.xlu0 %v2508_v19  ;;  %2348 = vset.pattern.permute.xlu1 %v2508_v19 }
 0x166   : > { %907 = vmax.xlane.f32.xlu1 %v884_v21  ;;  %905 = vmax.xlane.f32.xlu0 %v883_v24  ;;  %v890_v21 = vsel %vm2905_vm13, %v3001_v38, -1e+30  ;;  %v889_v24 = vsel %vm2926_vm11, %v2993_v37, -1e+30  ;;  %vm4235_vm13 = vnez %v4169_v53  ;;  %vm4236_vm11 = vnez %v4178_v61 }
 0x16a   : > { %911 = vmax.xlane.f32.xlu1 %v886_v42  ;;  %909 = vmax.xlane.f32.xlu0 %v885_v41  ;;  %v892_v42 = vsel %vm2934_vm4, %v2997_v54, -1e+30  ;;  %v891_v41 = vsel %vm2953_vm7, %v2989_v30, -1e+30  ;;  %vm4237_vm4 = vnez %v4166_v51  ;;  %vm4238_vm7 = vnez %v4176_v59 }
 0x16e   : > { %915 = vmax.xlane.f32.xlu1 %v888_v35  ;;  %913 = vmax.xlane.f32.xlu0 %v887_v18  ;;  %v4066_v35 = vmov 0.0  }
 0x16f   : > { %v2210_v18 = vsel %vm4235_vm13, 1.0, %v4066_v35  ;;  %v2211_v19 = vsel %vm4236_vm11, 1.0, %v4066_v35 }
 0x172   : > { %919 = vmax.xlane.f32.xlu1 %v890_v21  ;;  %917 = vmax.xlane.f32.xlu0 %v889_v24  ;;  %v2212_v21 = vsel %vm4237_vm4, 1.0, %v4066_v35  ;;  %v2213_v24 = vsel %vm4238_vm7, 1.0, %v4066_v35 }
 0x176   : > { %923 = vmax.xlane.f32.xlu1 %v892_v42  ;;  %921 = vmax.xlane.f32.xlu0 %v891_v41  ;;  %v2214_v42 = vsel %vm4239_vm8, 1.0, %v4066_v35  ;;  %v2215_v41 = vsel %vm4240_vm15, 1.0, %v4066_v35 }
 0x17a   : > { %1310 = vadd.xlane.f32.xlu0 %v2210_v18  ;;  %1312 = vadd.xlane.f32.xlu1 %v2211_v19  ;;  %v2216_v18 = vsel %vm4241_vm1, 1.0, %v4066_v35  ;;  %v2217_v19 = vsel %vm4242_vm2, 1.0, %v4066_v35 }
 0x17e   : > { %1314 = vadd.xlane.f32.xlu0 %v2212_v21  ;;  %1316 = vadd.xlane.f32.xlu1 %v2213_v24  ;;  %v2218_v21 = vsel %vm4243_vm12, 1.0, %v4066_v35  ;;  %v2219_v24 = vsel %vm4244_vm9, 1.0, %v4066_v35 }
 0x182   : > { %1318 = vadd.xlane.f32.xlu0 %v2214_v42  ;;  %1320 = vadd.xlane.f32.xlu1 %v2215_v41  ;;  %v2220_v42 = vsel %vm4245_vm5, 1.0, %v4066_v35  ;;  %v2221_v41 = vsel %vm4246_vm14, 1.0, %v4066_v35 }
 0x186   : > { %1322 = vadd.xlane.f32.xlu0 %v2216_v18  ;;  %1324 = vadd.xlane.f32.xlu1 %v2217_v19  ;;  %v2222_v18 = vsel %vm2947_vm0, 1.0, %v4066_v35  ;;  %v2223_v19 = vsel %vm4247_vm6, 1.0, %v4066_v35 }
 0x18a   : > { %1326 = vadd.xlane.f32.xlu0 %v2218_v21  ;;  %1328 = vadd.xlane.f32.xlu1 %v2219_v24  ;;  %v2224_v21 = vsel %vm2967_vm3, 1.0, %v4066_v35  ;;  %v1390_v24 = vsel %vm4235_vm13, %v2975_v32, 1e+30  ;;  %vm1229_vm13 = vcmask 7168  }
 0x18e   : > { %1330 = vadd.xlane.f32.xlu0 %v2220_v42  ;;  %1332 = vadd.xlane.f32.xlu1 %v2221_v41  ;;  %v1392_v42 = vsel %vm4237_vm4, %v2971_v26, 1e+30  ;;  %v1394_v41 = vsel %vm4239_vm8, %v2991_v22, 1e+30  ;;  %vm4281_vm4 = vnez %v4174_v57  ;;  %vm4284_vm8 = vnez %v4198_v31 }
 0x192   : > { %1334 = vadd.xlane.f32.xlu0 %v2222_v18  ;;  %1336 = vadd.xlane.f32.xlu1 %v2223_v19  ;;  %v1396_v18 = vsel %vm4241_vm1, %v2987_v25, 1e+30  ;;  %v1398_v19 = vsel %vm4243_vm12, %v2977_v34, 1e+30  ;;  %vm4286_vm12 = vnez %v4207_v43  ;;  %vm4287_vm1 = vnez %v4200_v33 }
 0x196   : > { %1338 = vadd.xlane.f32.xlu0 %v2224_v21  ;;  %v3178_v21 = vld [vmem:[#allocation2 + $0x10] sm:$0xff] }
 0x197   : > { %4248 = vst [vmem:[#allocation29_spill] sm:$0xff] %v3178_v21 }
 0x19a   : > { %1406 = vmin.xlane.f32.xlu0 %v1390_v24  ;;  %v3180_v24 = vld [vmem:[#allocation2] sm:$0xff] }
 0x19e   : > { %1410 = vmin.xlane.f32.xlu0 %v1392_v42 }
 0x1a2   : > { %1414 = vmin.xlane.f32.xlu0 %v1394_v41 }
 0x1a6   : > { %1418 = vmin.xlane.f32.xlu0 %v1396_v18  ;;  %v3190_v18 = vld [vmem:[#allocation2 + $0x8] sm:$0xff] }
 0x1aa   : > { %1422 = vmin.xlane.f32.xlu0 %v1398_v19  ;;  %v3207_v19 = vld [vmem:[#allocation2 + $0x28] sm:$0xff] }
 0x1ab   : > { %4253 = vst [vmem:[#allocation34_spill] sm:$0xff] %v3207_v19 }
 0x1e7   : > { %v898_v42 = vpop.xlane.xlu1 %897  ;;  %v894_v35 = vpop.xlane.xlu0 %893 }
 0x1e8   : > { %v3183_v5 = vmax.f32 %v3178_v21, %v898_v42  ;;  %v3186_v41 = vmax.f32 %v3180_v24, %v894_v35  ;;  %v1264_v21 = vld [vmem:[#allocation4 + $0x10] sm:$0xff] }
 0x1ea   : > { %4249 = vst [vmem:[#allocation30_spill] sm:$0xff] %v3183_v5  ;;  %1248 = vst.msk [vmem:[#allocation2 + $0x10] sm:$0xff] %vm1229_vm13, %v3183_v5  ;;  %1007 = vperm.xlu0 %2349, %v3186_v41  }
 0x1eb   : > { %1246 = vst.msk [vmem:[#allocation2] sm:$0xff] %vm1229_vm13, %v3186_v41  ;;  %v900_v35 = vpop.xlane.xlu1 %899  ;;  %v896_v42 = vpop.xlane.xlu0 %895 }
 0x1ec   : > { %v3202_v51 = vmax.f32 %v3188_v29, %v900_v35  ;;  %v3205_v53 = vmax.f32 %v3190_v18, %v896_v42 }
 0x1ee   : > { %4251 = vst [vmem:[#allocation32_spill] sm:$0xff] %v3202_v51  ;;  %4252 = vst [vmem:[#allocation33_spill] sm:$0xff] %v3205_v53  ;;  %1012 = vperm.xlu1 %2348, %v3205_v53  }
 0x1ef   : > { %1249 = vst.msk [vmem:[#allocation2 + $0x18] sm:$0xff] %vm1229_vm13, %v3202_v51  ;;  %1247 = vst.msk [vmem:[#allocation2 + $0x8] sm:$0xff] %vm1229_vm13, %v3205_v53  ;;  %v904_v35 = vpop.xlane.xlu1 %903  ;;  %v902_v42 = vpop.xlane.xlu0 %901  ;;  %v1265_v53 = vld [vmem:[#allocation4 + $0x18] sm:$0xff] }
 0x1f0   : > { %v3221_v14 = vmax.f32 %v3207_v19, %v904_v35  ;;  %v3224_v12 = vmax.f32 %v3209_v16, %v902_v42  ;;  %v3264_v19 = vld [vmem:[#allocation2 + $0x58] sm:$0xff] }
 0x1f1   : > { %4265 = vst [vmem:[#allocation46_spill] sm:$0xff] %v3264_v19 }
 0x1f2   : > { %4255 = vst [vmem:[#allocation36_spill] sm:$0xff] %v3221_v14  ;;  %4256 = vst [vmem:[#allocation37_spill] sm:$0xff] %v3224_v12  ;;  %1017 = vperm.xlu1 %2348, %v3183_v5   ;;  %v3286_v5 = vld [vmem:[#allocation2 + $0x60] sm:$0xff] }
 0x1f3   : > { %1251 = vst.msk [vmem:[#allocation2 + $0x28] sm:$0xff] %vm1229_vm13, %v3221_v14  ;;  %1250 = vst.msk [vmem:[#allocation2 + $0x20] sm:$0xff] %vm1229_vm13, %v3224_v12  ;;  %v908_v35 = vpop.xlane.xlu1 %907  ;;  %v906_v42 = vpop.xlane.xlu0 %905 }
 0x1f4   : > { %v3240_v9 = vmax.f32 %v3226_v39, %v908_v35  ;;  %v3243_v8 = vmax.f32 %v3228_v11, %v906_v42  ;;  %v3266_v39 = vld [vmem:[#allocation2 + $0x50] sm:$0xff]  ;;  %4269 = vst [vmem:[#allocation50_spill] sm:$0xff] %v3286_v5 }
 0x1f5   : > { %4266 = vst [vmem:[#allocation47_spill] sm:$0xff] %v3266_v39 }
 0x1f6   : > { %4259 = vst [vmem:[#allocation40_spill] sm:$0xff] %v3240_v9  ;;  %4260 = vst [vmem:[#allocation41_spill] sm:$0xff] %v3243_v8  ;;  %1022 = vperm.xlu1 %2348, %v3202_v51  }
 0x1f7   : > { %1253 = vst.msk [vmem:[#allocation2 + $0x38] sm:$0xff] %vm1229_vm13, %v3240_v9  ;;  %1252 = vst.msk [vmem:[#allocation2 + $0x30] sm:$0xff] %vm1229_vm13, %v3243_v8  ;;  %v912_v35 = vpop.xlane.xlu1 %911  ;;  %v910_v42 = vpop.xlane.xlu0 %909 }
 0x1f8   : > { %v3259_v16 = vmax.f32 %v3245_v15, %v912_v35  ;;  %v3262_v29 = vmax.f32 %v3247_v7, %v910_v42  ;;  %v3284_v15 = vld [vmem:[#allocation2 + $0x68] sm:$0xff] }
 0x1f9   : > { %4268 = vst [vmem:[#allocation49_spill] sm:$0xff] %v3284_v15 }
 0x1fa   : > { %4263 = vst [vmem:[#allocation44_spill] sm:$0xff] %v3259_v16  ;;  %4264 = vst [vmem:[#allocation45_spill] sm:$0xff] %v3262_v29  ;;  %1052 = vperm.xlu0 %2349, %v3259_v16   ;;  %1027 = vperm.xlu1 %2348, %v3224_v12   ;;  %v3306_v12 = vld [vmem:[#allocation2 + $0x70] sm:$0xff] }
 0x1fb   : > { %1255 = vst.msk [vmem:[#allocation2 + $0x48] sm:$0xff] %vm1229_vm13, %v3259_v16  ;;  %1254 = vst.msk [vmem:[#allocation2 + $0x40] sm:$0xff] %vm1229_vm13, %v3262_v29  ;;  %v916_v42 = vpop.xlane.xlu1 %915  ;;  %v914_v10 = vpop.xlane.xlu0 %913 }
 0x1fc   : > { %v3279_v11 = vmax.f32 %v3264_v19, %v916_v42  ;;  %v3282_v51 = vmax.f32 %v3266_v39, %v914_v10  ;;  %v3304_v19 = vld [vmem:[#allocation2 + $0x78] sm:$0xff]  ;;  %4272 = vst [vmem:[#allocation53_spill] sm:$0xff] %v3306_v12 }
 0x1fd   : > { %4271 = vst [vmem:[#allocation52_spill] sm:$0xff] %v3304_v19 }
 0x1fe   : > { %4267 = vst [vmem:[#allocation48_spill] sm:$0xff] %v3279_v11  ;;  %1257 = vst.msk [vmem:[#allocation2 + $0x58] sm:$0xff] %vm1229_vm13, %v3279_v11  ;;  %1062 = vperm.xlu0 %2349, %v3279_v11   ;;  %1032 = vperm.xlu1 %2348, %v3221_v14   ;;  %v1263_v14 = vld [vmem:[#allocation4 + $0x8] sm:$0xff] }
 0x1ff   : > { %1256 = vst.msk [vmem:[#allocation2 + $0x50] sm:$0xff] %vm1229_vm13, %v3282_v51  ;;  %v920_v10 = vpop.xlane.xlu1 %919  ;;  %v918_v35 = vpop.xlane.xlu0 %917 }
 0x200   : > { %v3299_v7 = vmax.f32 %v3284_v15, %v920_v10  ;;  %v3302_v16 = vmax.f32 %v3286_v5, %v918_v35  ;;  %v1262_v15 = vld [vmem:[#allocation4] sm:$0xff] }
 0x201   : > { %v1266_v10 = vld [vmem:[#allocation4 + $0x20] sm:$0xff] }
 0x202   : > { %4270 = vst [vmem:[#allocation51_spill] sm:$0xff] %v3299_v7  ;;  %1259 = vst.msk [vmem:[#allocation2 + $0x68] sm:$0xff] %vm1229_vm13, %v3299_v7  ;;  %1072 = vperm.xlu0 %2349, %v3299_v7   ;;  %1037 = vperm.xlu1 %2348, %v3243_v8  }
 0x203   : > { %1258 = vst.msk [vmem:[#allocation2 + $0x60] sm:$0xff] %vm1229_vm13, %v3302_v16  ;;  %v924_v35 = vpop.xlane.xlu1 %923  ;;  %v922_v42 = vpop.xlane.xlu0 %921 }
 0x204   : > { %v3319_v39 = vmax.f32 %v3304_v19, %v924_v35  ;;  %v3322_v11 = vmax.f32 %v3306_v12, %v922_v42  ;;  %v1267_v12 = vld [vmem:[#allocation4 + $0x28] sm:$0xff] }
 0x206   : > { %4273 = vst [vmem:[#allocation54_spill] sm:$0xff] %v3319_v39  ;;  %4274 = vst [vmem:[#allocation55_spill] sm:$0xff] %v3322_v11  ;;  %1082 = vperm.xlu0 %2349, %v3319_v39   ;;  %1042 = vperm.xlu1 %2348, %v3240_v9  }
 0x207   : > { %1261 = vst.msk [vmem:[#allocation2 + $0x78] sm:$0xff] %vm1229_vm13, %v3319_v39  ;;  %1260 = vst.msk [vmem:[#allocation2 + $0x70] sm:$0xff] %vm1229_vm13, %v3322_v11  ;;  %v1311_v42 = vpop.xlane.xlu0 %1310  ;;  %v1313_v35 = vpop.xlane.xlu1 %1312 }
 0x208   : > { %v1342_v5 = vadd.f32 %v1311_v42, %v1262_v15  ;;  %v1343_v8 = vadd.f32 %v1313_v35, %v1263_v14 }
 0x20a   : > { %1047 = vperm.xlu1 %2348, %v3262_v29   ;;  %1358 = vst.msk [vmem:[#allocation4] sm:$0xff] %vm1229_vm13, %v1342_v5  ;;  %1359 = vst.msk [vmem:[#allocation4 + $0x8] sm:$0xff] %vm1229_vm13, %v1343_v8  ;;  %v1268_v29 = vld [vmem:[#allocation4 + $0x30] sm:$0xff]  ;;  %v1269_v5 = vld [vmem:[#allocation4 + $0x38] sm:$0xff] }
 0x20b   : > { %v1315_v7 = vpop.xlane.xlu0 %1314  ;;  %v1317_v39 = vpop.xlane.xlu1 %1316 }
 0x20c   : > { %v1344_v19 = vadd.f32 %v1315_v7, %v1264_v21  ;;  %v1345_v9 = vadd.f32 %v1317_v39, %v1265_v53  ;;  %v1270_v21 = vld [vmem:[#allocation4 + $0x40] sm:$0xff] }
 0x20e   : > { %1057 = vperm.xlu1 %2348, %v3282_v51   ;;  %1360 = vst.msk [vmem:[#allocation4 + $0x10] sm:$0xff] %vm1229_vm13, %v1344_v19  ;;  %1361 = vst.msk [vmem:[#allocation4 + $0x18] sm:$0xff] %vm1229_vm13, %v1345_v9  ;;  %v1271_v19 = vld [vmem:[#allocation4 + $0x48] sm:$0xff] }
 0x20f   : > { %v1319_v14 = vpop.xlane.xlu0 %1318  ;;  %v1321_v15 = vpop.xlane.xlu1 %1320 }
 0x210   : > { %v1346_v42 = vadd.f32 %v1319_v14, %v1266_v10  ;;  %v1347_v35 = vadd.f32 %v1321_v15, %v1267_v12  ;;  %v1272_v15 = vld [vmem:[#allocation4 + $0x50] sm:$0xff] }
 0x212   : > { %1067 = vperm.xlu1 %2348, %v3302_v16   ;;  %1362 = vst.msk [vmem:[#allocation4 + $0x20] sm:$0xff] %vm1229_vm13, %v1346_v42  ;;  %1363 = vst.msk [vmem:[#allocation4 + $0x28] sm:$0xff] %vm1229_vm13, %v1347_v35  ;;  %v1273_v42 = vld [vmem:[#allocation4 + $0x58] sm:$0xff] }
 0x213   : > { %v1323_v7 = vpop.xlane.xlu0 %1322  ;;  %v1325_v8 = vpop.xlane.xlu1 %1324 }
 0x214   : > { %v1348_v53 = vadd.f32 %v1323_v7, %v1268_v29  ;;  %v1349_v39 = vadd.f32 %v1325_v8, %v1269_v5  ;;  %v1274_v8 = vld [vmem:[#allocation4 + $0x60] sm:$0xff] }
 0x216   : > { %1077 = vperm.xlu1 %2348, %v3322_v11   ;;  %1364 = vst.msk [vmem:[#allocation4 + $0x30] sm:$0xff] %vm1229_vm13, %v1348_v53  ;;  %1365 = vst.msk [vmem:[#allocation4 + $0x38] sm:$0xff] %vm1229_vm13, %v1349_v39  ;;  %v1275_v11 = vld [vmem:[#allocation4 + $0x68] sm:$0xff] }
 0x217   : > { %v1327_v9 = vpop.xlane.xlu0 %1326  ;;  %v1329_v12 = vpop.xlane.xlu1 %1328 }
 0x218   : > { %v1350_v10 = vadd.f32 %v1327_v9, %v1270_v21  ;;  %v1351_v14 = vadd.f32 %v1329_v12, %v1271_v19  ;;  %v1276_v9 = vld [vmem:[#allocation4 + $0x70] sm:$0xff]  ;;  %v1400_v12 = vsel %vm4245_vm5, %v2973_v28, 1e+30  ;;  %vm4276_vm5 = vnez %v4162_v47 }
 0x21a   : > { %1366 = vst.msk [vmem:[#allocation4 + $0x40] sm:$0xff] %vm1229_vm13, %v1350_v10  ;;  %1367 = vst.msk [vmem:[#allocation4 + $0x48] sm:$0xff] %vm1229_vm13, %v1351_v14 }
 0x21b   : > { %v1331_v29 = vpop.xlane.xlu0 %1330  ;;  %v1333_v35 = vpop.xlane.xlu1 %1332 }
 0x21c   : > { %v1352_v5 = vadd.f32 %v1331_v29, %v1272_v15  ;;  %v1353_v7 = vadd.f32 %v1333_v35, %v1273_v42  ;;  %v1374_v15 = vld [vmem:[#allocation5] sm:$0xff]  ;;  %v1402_v42 = vsel %vm2947_vm0, %v2993_v37, 1e+30  ;;  %v1376_v35 = vld [vmem:[#allocation5 + $0x10] sm:$0xff] }
 0x21e   : > { %1368 = vst.msk [vmem:[#allocation4 + $0x50] sm:$0xff] %vm1229_vm13, %v1352_v5  ;;  %1369 = vst.msk [vmem:[#allocation4 + $0x58] sm:$0xff] %vm1229_vm13, %v1353_v7 }
 0x21f   : > { %v1335_v53 = vpop.xlane.xlu0 %1334  ;;  %v1337_v39 = vpop.xlane.xlu1 %1336 }
 0x220   : > { %v1354_v21 = vadd.f32 %v1335_v53, %v1274_v8  ;;  %v1355_v19 = vadd.f32 %v1337_v39, %v1275_v11  ;;  %v1378_v8 = vld [vmem:[#allocation5 + $0x20] sm:$0xff] }
 0x222   : > { %1370 = vst.msk [vmem:[#allocation4 + $0x60] sm:$0xff] %vm1229_vm13, %v1354_v21  ;;  %1371 = vst.msk [vmem:[#allocation4 + $0x68] sm:$0xff] %vm1229_vm13, %v1355_v19  ;;  %v1380_v21 = vld [vmem:[#allocation5 + $0x30] sm:$0xff] }
 0x223   : > { %v1339_v10 = vpop.xlane.xlu0 %1338 }
 0x224   : > { %v1356_v14 = vadd.f32 %v1339_v10, %v1276_v9  ;;  %v4275_v10 = vmov 0.0  }
 0x225   : > { %1426 = vmin.xlane.f32.xlu0 %v1400_v12  ;;  %v1382_v12 = vld [vmem:[#allocation5 + $0x40] sm:$0xff] }
 0x226   : > { %1372 = vst.msk [vmem:[#allocation4 + $0x70] sm:$0xff] %vm1229_vm13, %v1356_v14  ;;  %v2225_v14 = vsel %vm2961_vm10, 1.0, %v4275_v10 }
 0x227   : > { %v1407_v11 = vpop.xlane.xlu0 %1406 }
 0x228   : > { %v1438_v29 = vmin.f32 %v1374_v15, %v1407_v11  ;;  %v1391_v11 = vsel %vm4236_vm11, %v2983_v0, 1e+30  ;;  %vm4282_vm11 = vnez %v4189_v13 }
 0x229   : > { %1430 = vmin.xlane.f32.xlu0 %v1402_v42 }
 0x22a   : > { %1454 = vst.msk [vmem:[#allocation5] sm:$0xff] %vm1229_vm13, %v1438_v29  ;;  %v1393_v29 = vsel %vm4238_vm7, %v2979_v44, 1e+30  ;;  %vm4283_vm7 = vnez %v4182_v1 }
 0x22b   : > { %v1411_v5 = vpop.xlane.xlu0 %1410 }
 0x22c   : > { %v1440_v7 = vmin.f32 %v1376_v35, %v1411_v5  ;;  %v1395_v35 = vsel %vm4240_vm15, %v2999_v17, 1e+30  ;;  %v1397_v5 = vsel %vm4242_vm2, %v2995_v20, 1e+30  ;;  %vm4280_vm2 = vnez %v4180_v63 }
 0x22d   : > { %vm4285_vm15 = vnez %v4191_v23 }
 0x22e   : > { %1456 = vst.msk [vmem:[#allocation5 + $0x10] sm:$0xff] %vm1229_vm13, %v1440_v7  ;;  %v1399_v7 = vsel %vm4244_vm9, %v2985_v40, 1e+30  ;;  %vm4278_vm9 = vnez %v4160_v45 }
 0x22f   : > { %v1415_v53 = vpop.xlane.xlu0 %1414 }
 0x230   : > { %v1442_v39 = vmin.f32 %v1378_v8, %v1415_v53  ;;  %v1401_v8 = vsel %vm4246_vm14, %v2981_v48, 1e+30  ;;  %v1403_v53 = vsel %vm4247_vm6, %v3001_v38, 1e+30  ;;  %vm4277_vm6 = vnez %v4172_v55 }
 0x231   : > { %vm4279_vm14 = vnez %v4164_v49 }
 0x232   : > { %1458 = vst.msk [vmem:[#allocation5 + $0x20] sm:$0xff] %vm1229_vm13, %v1442_v39 }
 0x233   : > { %v1419_v19 = vpop.xlane.xlu0 %1418 }
 0x234   : > { %v1444_v9 = vmin.f32 %v1380_v21, %v1419_v19 }
 0x236   : > { %1460 = vst.msk [vmem:[#allocation5 + $0x30] sm:$0xff] %vm1229_vm13, %v1444_v9 }
 0x237   : > { %v1423_v15 = vpop.xlane.xlu0 %1422 }
 0x238   : > { %v1446_v42 = vmin.f32 %v1382_v12, %v1423_v15 }
 0x23a   : > { %1340 = vadd.xlane.f32.xlu1 %v2225_v14  ;;  %1462 = vst.msk [vmem:[#allocation5 + $0x40] sm:$0xff] %vm1229_vm13, %v1446_v42 }
 0x23e   : > { %1408 = vmin.xlane.f32.xlu1 %v1391_v11 }
 0x242   : > { %1412 = vmin.xlane.f32.xlu1 %v1393_v29 }
 0x246   : > { %1416 = vmin.xlane.f32.xlu1 %v1395_v35 }
 0x24a   : > { %1420 = vmin.xlane.f32.xlu1 %v1397_v5 }
 0x24e   : > { %1424 = vmin.xlane.f32.xlu1 %v1399_v7 }
 0x252   : > { %1428 = vmin.xlane.f32.xlu1 %v1401_v8 }
 0x256   : > { %1432 = vmin.xlane.f32.xlu1 %v1403_v53 }
 0x269   : > { %v1008_v39 = vpop.permute.xlu0 %1007 }
 0x26a   : > { %v1085_v21 = vsub.f32 %v2975_v32, %v1008_v39 }
 0x26c   : > { %v1101_v19 = vmul.f32 1.442695, %v1085_v21 }
 0x26d   : > { %v1013_v9 = vpop.permute.xlu1 %1012 }
 0x26e   : > { %2350 = vpow2.f32 %v1101_v19  ;;  %v1086_v12 = vsub.f32 %v2983_v0, %v1013_v9 }
 0x270   : > { %v1103_v10 = vmul.f32 1.442695, %v1086_v12 }
 0x271   : > { %v1018_v14 = vpop.permute.xlu1 %1017 }
 0x272   : > { %2352 = vpow2.f32 %v1103_v10  ;;  %v1087_v15 = vsub.f32 %v2971_v26, %v1018_v14 }
 0x274   : > { %v1105_v42 = vmul.f32 1.442695, %v1087_v15 }
 0x275   : > { %v1023_v11 = vpop.permute.xlu1 %1022 }
 0x276   : > { %2354 = vpow2.f32 %v1105_v42  ;;  %v1088_v29 = vsub.f32 %v2979_v44, %v1023_v11 }
 0x278   : > { %v2351_v35 = vpop.eup %2350  ;;  %v1107_v5 = vmul.f32 1.442695, %v1088_v29 }
 0x279   : > { %v1028_v7 = vpop.permute.xlu1 %1027  ;;  %v1133_v8 = vsel %vm4276_vm5, %v2351_v35, 0.0  ;;  %v1053_v39 = vpop.permute.xlu0 %1052  ;;  %vm4288_vm5 = vnez %v4215_v56  ;;  %v1404_v56 = vsel %vm2967_vm3, %v2989_v30, 1e+30 }
 0x27a   : > { %2356 = vpow2.f32 %v1107_v5  ;;  %v1089_v53 = vsub.f32 %v2991_v22, %v1028_v7  ;;  %1181 = vadd.xlane.f32.xlu1 %v1133_v8  ;;  %v1094_v5 = vsub.f32 %v2985_v40, %v1053_v39 }
 0x27c   : > { %v2353_v21 = vpop.eup %2352  ;;  %v1109_v19 = vmul.f32 1.442695, %v1089_v53  ;;  %v1119_v45 = vmul.f32 1.442695, %v1094_v5 }
 0x27d   : > { %v1033_v9 = vpop.permute.xlu1 %1032  ;;  %v1134_v12 = vsel %vm4277_vm6, %v2353_v21, 0.0  ;;  %v1063_v42 = vpop.permute.xlu0 %1062  ;;  %vm4289_vm6 = vnez %v4209_v46  ;;  %v1405_v46 = vsel %vm2961_vm10, %v2997_v54, 1e+30 }
 0x27e   : > { %2358 = vpow2.f32 %v1109_v19  ;;  %v1090_v10 = vsub.f32 %v2999_v17, %v1033_v9  ;;  %1183 = vadd.xlane.f32.xlu0 %v1134_v12  ;;  %v1096_v9 = vsub.f32 %v2981_v48, %v1063_v42 }
 0x280   : > { %v2355_v14 = vpop.eup %2354  ;;  %v1111_v15 = vmul.f32 1.442695, %v1090_v10 }
 0x281   : > { %v1038_v47 = vpop.permute.xlu1 %1037  ;;  %v1135_v11 = vsel %vm4278_vm9, %v2355_v14, 0.0  ;;  %v1073_v21 = vpop.permute.xlu0 %1072  ;;  %vm4290_vm9 = vnez %v4223_v2  ;;  %v1386_v2 = vld [vmem:[#allocation5 + $0x60] sm:$0xff] }
 0x282   : > { %2360 = vpow2.f32 %v1111_v15  ;;  %v1091_v29 = vsub.f32 %v2987_v25, %v1038_v47  ;;  %1185 = vadd.xlane.f32.xlu0 %v1135_v11  ;;  %v1123_v15 = vmul.f32 1.442695, %v1096_v9  ;;  %v1098_v47 = vsub.f32 %v3001_v38, %v1073_v21 }
 0x284   : > { %v2357_v35 = vpop.eup %2356  ;;  %v1113_v55 = vmul.f32 1.442695, %v1091_v29 }
 0x285   : > { %v1043_v7 = vpop.permute.xlu1 %1042  ;;  %v1136_v8 = vsel %vm4279_vm14, %v2357_v35, 0.0  ;;  %v1083_v29 = vpop.permute.xlu0 %1082  ;;  %vm4291_vm14 = vnez %v4217_v58 }
 0x286   : > { %2362 = vpow2.f32 %v1113_v55  ;;  %v1092_v53 = vsub.f32 %v2995_v20, %v1043_v7  ;;  %1187 = vadd.xlane.f32.xlu1 %v1136_v8  ;;  %v1127_v55 = vmul.f32 1.442695, %v1098_v47  ;;  %v1100_v7 = vsub.f32 %v2997_v54, %v1083_v29 }
 0x288   : > { %v2359_v19 = vpop.eup %2358  ;;  %v1115_v12 = vmul.f32 1.442695, %v1092_v53 }
 0x289   : > { %v1048_v10 = vpop.permute.xlu1 %1047  ;;  %v1137_v14 = vsel %vm4280_vm2, %v2359_v19, 0.0 }
 0x28a   : > { %2364 = vpow2.f32 %v1115_v12  ;;  %v1093_v39 = vsub.f32 %v2977_v34, %v1048_v10  ;;  %1189 = vadd.xlane.f32.xlu0 %v1137_v14 }
 0x28b   : > { %2366 = vpow2.f32 %v1119_v45  ;;  %v1131_v45 = vmul.f32 1.442695, %v1100_v7  ;;  %v1384_v7 = vld [vmem:[#allocation5 + $0x50] sm:$0xff] }
 0x28c   : > { %v2361_v49 = vpop.eup %2360  ;;  %v1117_v11 = vmul.f32 1.442695, %v1093_v39 }
 0x28d   : > { %v1058_v35 = vpop.permute.xlu1 %1057  ;;  %v1138_v42 = vsel %vm4281_vm4, %v2361_v49, 0.0 }
 0x28e   : > { %2368 = vpow2.f32 %v1117_v11  ;;  %v1095_v5 = vsub.f32 %v2973_v28, %v1058_v35  ;;  %1191 = vadd.xlane.f32.xlu1 %v1138_v42 }
 0x28f   : > { %2370 = vpow2.f32 %v1123_v15 }
 0x290   : > { %v2363_v63 = vpop.eup %2362  ;;  %v1121_v8 = vmul.f32 1.442695, %v1095_v5 }
 0x291   : > { %v1068_v53 = vpop.permute.xlu1 %1067  ;;  %v1139_v21 = vsel %vm4282_vm11, %v2363_v63, 0.0 }
 0x292   : > { %2372 = vpow2.f32 %v1121_v8  ;;  %v1097_v19 = vsub.f32 %v2993_v37, %v1068_v53  ;;  %1193 = vadd.xlane.f32.xlu0 %v1139_v21 }
 0x293   : > { %2374 = vpow2.f32 %v1127_v55 }
 0x294   : > { %v2365_v57 = vpop.eup %2364  ;;  %v1125_v9 = vmul.f32 1.442695, %v1097_v19  ;;  %v1277_v19 = vld [vmem:[#allocation4 + $0x78] sm:$0xff] }
 0x295   : > { %v1078_v12 = vpop.permute.xlu1 %1077  ;;  %v1140_v10 = vsel %vm4283_vm7, %v2365_v57, 0.0  ;;  %v2367_v14 = vpop.eup %2366 }
 0x296   : > { %2376 = vpow2.f32 %v1125_v9  ;;  %v1099_v39 = vsub.f32 %v2989_v30, %v1078_v12  ;;  %1195 = vadd.xlane.f32.xlu1 %v1140_v10  ;;  %v1142_v47 = vsel %vm4285_vm15, %v2367_v14, 0.0  ;;  %v1375_v9 = vld [vmem:[#allocation5 + $0x8] sm:$0xff]  ;;  %v1377_v14 = vld [vmem:[#allocation5 + $0x18] sm:$0xff] }
 0x297   : > { %2378 = vpow2.f32 %v1131_v45 }
 0x298   : > { %v2369_v49 = vpop.eup %2368  ;;  %v1129_v13 = vmul.f32 1.442695, %v1099_v39 }
 0x299   : > { %v1141_v15 = vsel %vm4284_vm8, %v2369_v49, 0.0  ;;  %v2371_v11 = vpop.eup %2370 }
 0x29a   : > { %2380 = vpow2.f32 %v1129_v13  ;;  %1197 = vadd.xlane.f32.xlu0 %v1141_v15  ;;  %1199 = vadd.xlane.f32.xlu1 %v1142_v47  ;;  %v1144_v35 = vsel %vm4287_vm1, %v2371_v11, 0.0  ;;  %v1379_v13 = vld [vmem:[#allocation5 + $0x28] sm:$0xff]  ;;  %v1381_v11 = vld [vmem:[#allocation5 + $0x38] sm:$0xff] }
 0x29c   : > { %v2373_v1 = vpop.eup %2372 }
 0x29d   : > { %v1143_v29 = vsel %vm4286_vm12, %v2373_v1, 0.0  ;;  %v2375_v42 = vpop.eup %2374 }
 0x29e   : > { %1201 = vadd.xlane.f32.xlu0 %v1143_v29  ;;  %1203 = vadd.xlane.f32.xlu1 %v1144_v35  ;;  %v1146_v23 = vsel %vm4289_vm6, %v2375_v42, 0.0  ;;  %v1383_v35 = vld [vmem:[#allocation5 + $0x48] sm:$0xff] }
 0x2a0   : > { %v2377_v5 = vpop.eup %2376 }
 0x2a1   : > { %v1145_v31 = vsel %vm4288_vm5, %v2377_v5, 0.0  ;;  %v2379_v63 = vpop.eup %2378 }
 0x2a2   : > { %1205 = vadd.xlane.f32.xlu0 %v1145_v31  ;;  %1207 = vadd.xlane.f32.xlu1 %v1146_v23  ;;  %v1148_v33 = vsel %vm4291_vm14, %v2379_v63, 0.0  ;;  %v1385_v31 = vld [vmem:[#allocation5 + $0x58] sm:$0xff] }
 0x2a4   : > { %v2381_v55 = vpop.eup %2380 }
 0x2a5   : > { %v1147_v43 = vsel %vm4290_vm9, %v2381_v55, 0.0  ;;  %v1387_v55 = vld [vmem:[#allocation5 + $0x68] sm:$0xff] }
 0x2a6   : > { %1209 = vadd.xlane.f32.xlu0 %v1147_v43  ;;  %1211 = vadd.xlane.f32.xlu1 %v1148_v33 }
 0x2aa   : > { %1434 = vmin.xlane.f32.xlu0 %v1404_v56  ;;  %1436 = vmin.xlane.f32.xlu1 %v1405_v46  ;;  %v4292_v56 = vsub.f32 %v3180_v24, %v3186_v41  ;;  %v4301_v24 = vld [vmem:[#allocation35_spill] sm:$0xff]  ;;  %v4302_v41 = vld [vmem:[#allocation37_spill] sm:$0xff] }
 0x2ac   : > { %v973_v46 = vmul.f32 1.442695, %v4292_v56 }
 0x2ae   : > { %2382 = vpow2.f32 %v973_v46 }
 0x2b2   : > { %v1427_v8 = vpop.xlane.xlu0 %1426 }
 0x2b3   : > { %v1448_v53 = vmin.f32 %v1384_v7, %v1427_v8  ;;  %v4293_v7 = vld [vmem:[#allocation33_spill] sm:$0xff] }
 0x2b4   : > { %v4294_v8 = vsub.f32 %v3190_v18, %v4293_v7 }
 0x2b5   : > { %1464 = vst.msk [vmem:[#allocation5 + $0x50] sm:$0xff] %vm1229_vm13, %v1448_v53 }
 0x2b6   : > { %v1431_v58 = vpop.xlane.xlu0 %1430  ;;  %v975_v53 = vmul.f32 1.442695, %v4294_v8 }
 0x2b7   : > { %v1450_v21 = vmin.f32 %v1386_v2, %v1431_v58  ;;  %v4295_v2 = vld [vmem:[#allocation29_spill] sm:$0xff]  ;;  %v4296_v58 = vld [vmem:[#allocation30_spill] sm:$0xff] }
 0x2b8   : > { %2384 = vpow2.f32 %v975_v53 }
 0x2b9   : > { %1466 = vst.msk [vmem:[#allocation5 + $0x60] sm:$0xff] %vm1229_vm13, %v1450_v21  ;;  %v4297_v21 = vsub.f32 %v4295_v2, %v4296_v58  ;;  %v1152_v2 = vld [vmem:[#allocation3 + $0x18] sm:$0xff] }
 0x2c7   : > { %v1341_v57 = vpop.xlane.xlu1 %1340 }
 0x2c8   : > { %v1357_v45 = vadd.f32 %v1341_v57, %v1277_v19  ;;  %v977_v19 = vmul.f32 1.442695, %v4297_v21  ;;  %v4298_v57 = vld [vmem:[#allocation31_spill] sm:$0xff]  ;;  %v4310_v21 = vld [vmem:[#allocation38_spill] sm:$0xff] }
 0x2ca   : > { %1373 = vst.msk [vmem:[#allocation4 + $0x78] sm:$0xff] %vm1229_vm13, %v1357_v45  ;;  %2386 = vpow2.f32 %v977_v19  ;;  %v4299_v45 = vld [vmem:[#allocation32_spill] sm:$0xff] }
 0x2cb   : > { %v1409_v12 = vpop.xlane.xlu1 %1408  ;;  %v4311_v19 = vld [vmem:[#allocation40_spill] sm:$0xff] }
 0x2cc   : > { %v1439_v10 = vmin.f32 %v1375_v9, %v1409_v12  ;;  %v4300_v9 = vsub.f32 %v4298_v57, %v4299_v45  ;;  %v4312_v57 = vsub.f32 %v4310_v21, %v4311_v19 }
 0x2ce   : > { %1455 = vst.msk [vmem:[#allocation5 + $0x8] sm:$0xff] %vm1229_vm13, %v1439_v10  ;;  %v979_v12 = vmul.f32 1.442695, %v4300_v9  ;;  %v2383_v10 = vpop.eup %2382  ;;  %v987_v45 = vmul.f32 1.442695, %v4312_v57 }
 0x2cf   : > { %v1413_v39 = vpop.xlane.xlu1 %1412  ;;  %v2385_v18 = vpop.eup %2384 }
 0x2d0   : > { %v1441_v49 = vmin.f32 %v1377_v14, %v1413_v39  ;;  %v1149_v14 = vld [vmem:[#allocation3] sm:$0xff]  ;;  %2388 = vpow2.f32 %v979_v12  ;;  %v4303_v39 = vsub.f32 %v4301_v24, %v4302_v41  ;;  %v4313_v24 = vld [vmem:[#allocation42_spill] sm:$0xff] }
 0x2d1   : > { %v4314_v41 = vld [vmem:[#allocation44_spill] sm:$0xff] }
 0x2d2   : > { %1457 = vst.msk [vmem:[#allocation5 + $0x18] sm:$0xff] %vm1229_vm13, %v1441_v49  ;;  %v981_v49 = vmul.f32 1.442695, %v4303_v39  ;;  %v4315_v39 = vsub.f32 %v4313_v24, %v4314_v41  ;;  %v1156_v24 = vld [vmem:[#allocation3 + $0x38] sm:$0xff]  ;;  %v4329_v41 = vld [vmem:[#allocation52_spill] sm:$0xff] }
 0x2d3   : > { %v1417_v15 = vpop.xlane.xlu1 %1416 }
 0x2d4   : > { %v1443_v47 = vmin.f32 %v1379_v13, %v1417_v15  ;;  %v1165_v13 = vmul.f32 %v2383_v10, %v1149_v14  ;;  %2390 = vpow2.f32 %v981_v49  ;;  %v1153_v14 = vld [vmem:[#allocation3 + $0x20] sm:$0xff]  ;;  %v991_v49 = vmul.f32 1.442695, %v4315_v39  ;;  %v4330_v39 = vld [vmem:[#allocation54_spill] sm:$0xff] }
 0x2d6   : > { %1459 = vst.msk [vmem:[#allocation5 + $0x28] sm:$0xff] %vm1229_vm13, %v1443_v47  ;;  %v1150_v47 = vld [vmem:[#allocation3 + $0x8] sm:$0xff] }
 0x2d7   : > { %v1421_v1 = vpop.xlane.xlu1 %1420 }
 0x2d8   : > { %v1445_v29 = vmin.f32 %v1381_v11, %v1421_v1  ;;  %v4304_v1 = vld [vmem:[#allocation34_spill] sm:$0xff] }
 0x2da   : > { %1461 = vst.msk [vmem:[#allocation5 + $0x38] sm:$0xff] %vm1229_vm13, %v1445_v29  ;;  %v4305_v29 = vld [vmem:[#allocation36_spill] sm:$0xff] }
 0x2db   : > { %v1425_v42 = vpop.xlane.xlu1 %1424 }
 0x2dc   : > { %v1447_v5 = vmin.f32 %v1383_v35, %v1425_v42  ;;  %v4306_v35 = vsub.f32 %v4304_v1, %v4305_v29 }
 0x2de   : > { %1463 = vst.msk [vmem:[#allocation5 + $0x48] sm:$0xff] %vm1229_vm13, %v1447_v5  ;;  %v983_v42 = vmul.f32 1.442695, %v4306_v35  ;;  %v1166_v5 = vmul.f32 %v2385_v18, %v1150_v47  ;;  %v4316_v18 = vld [vmem:[#allocation43_spill] sm:$0xff] }
 0x2df   : > { %v1429_v23 = vpop.xlane.xlu1 %1428 }
 0x2e0   : > { %v1449_v63 = vmin.f32 %v1385_v31, %v1429_v23  ;;  %v2387_v31 = vpop.eup %2386  ;;  %2392 = vpow2.f32 %v983_v42  ;;  %v1154_v42 = vld [vmem:[#allocation3 + $0x28] sm:$0xff] }
 0x2e1   : > { %v2389_v8 = vpop.eup %2388 }
 0x2e2   : > { %1465 = vst.msk [vmem:[#allocation5 + $0x58] sm:$0xff] %vm1229_vm13, %v1449_v63  ;;  %v1151_v63 = vld [vmem:[#allocation3 + $0x10] sm:$0xff]  ;;  %v1168_v9 = vmul.f32 %v2389_v8, %v1152_v2  ;;  %v2391_v12 = vpop.eup %2390  ;;  %v4324_v2 = vld [vmem:[#allocation49_spill] sm:$0xff] }
 0x2e3   : > { %v1433_v43 = vpop.xlane.xlu1 %1432  ;;  %v1167_v7 = vmul.f32 %v2387_v31, %v1151_v63  ;;  %v1169_v1 = vmul.f32 %v2391_v12, %v1153_v14  ;;  %v4320_v31 = vld [vmem:[#allocation48_spill] sm:$0xff] }
 0x2e4   : > { %v1451_v33 = vmin.f32 %v1387_v55, %v1433_v43  ;;  %v4307_v43 = vld [vmem:[#allocation39_spill] sm:$0xff] }
 0x2e6   : > { %1467 = vst.msk [vmem:[#allocation5 + $0x68] sm:$0xff] %vm1229_vm13, %v1451_v33  ;;  %v4308_v33 = vld [vmem:[#allocation41_spill] sm:$0xff] }
 0x2e7   : > { %v4309_v56 = vsub.f32 %v4307_v43, %v4308_v33  ;;  %v4322_v43 = vld [vmem:[#allocation47_spill] sm:$0xff] }
 0x2e8   : > { %v4323_v33 = vsub.f32 %v4322_v43, %v3282_v51 }
 0x2e9   : > { %v985_v46 = vmul.f32 1.442695, %v4309_v56 }
 0x2ea   : > { %v2393_v29 = vpop.eup %2392  ;;  %v993_v56 = vmul.f32 1.442695, %v4323_v33 }
 0x2eb   : > { %2394 = vpow2.f32 %v985_v46  ;;  %v1170_v46 = vmul.f32 %v2393_v29, %v1154_v42 }
 0x2ec   : > { %2396 = vpow2.f32 %v987_v45  ;;  %v4327_v45 = vld [vmem:[#allocation50_spill] sm:$0xff] }
 0x2ed   : > { %2398 = vpow2.f32 %v991_v49  ;;  %v4331_v49 = vsub.f32 %v4329_v41, %v4330_v39 }
 0x307   : > { %v1182_v15 = vpop.xlane.xlu1 %1181 }
 0x308   : > { %v1213_v11 = vadd.f32 %v1182_v15, %v1165_v13  ;;  %v4317_v15 = vld [vmem:[#allocation45_spill] sm:$0xff] }
 0x309   : > { %v4318_v47 = vsub.f32 %v4316_v18, %v4317_v15  ;;  %v4332_v15 = vld [vmem:[#allocation53_spill] sm:$0xff] }
 0x30a   : > { %1230 = vst.msk [vmem:[#allocation3] sm:$0xff] %vm1229_vm13, %v1213_v11 }
 0x30b   : > { %v1184_v23 = vpop.xlane.xlu0 %1183  ;;  %v989_v11 = vmul.f32 1.442695, %v4318_v47  ;;  %v4333_v47 = vld [vmem:[#allocation55_spill] sm:$0xff] }
 0x30c   : > { %v1214_v55 = vadd.f32 %v1184_v23, %v1166_v5  ;;  %v4319_v5 = vld [vmem:[#allocation46_spill] sm:$0xff] }
 0x30d   : > { %v4321_v23 = vsub.f32 %v4319_v5, %v4320_v31  ;;  %2400 = vpow2.f32 %v989_v11  ;;  %v4334_v11 = vsub.f32 %v4332_v15, %v4333_v47  ;;  %v1158_v5 = vld [vmem:[#allocation3 + $0x48] sm:$0xff]  ;;  %v1157_v31 = vld [vmem:[#allocation3 + $0x40] sm:$0xff]  ;;  %v1164_v15 = vld [vmem:[#allocation3 + $0x78] sm:$0xff] }
 0x30e   : > { %1231 = vst.msk [vmem:[#allocation3 + $0x8] sm:$0xff] %vm1229_vm13, %v1214_v55  ;;  %v1163_v47 = vld [vmem:[#allocation3 + $0x70] sm:$0xff] }
 0x30f   : > { %v1186_v53 = vpop.xlane.xlu0 %1185  ;;  %v995_v63 = vmul.f32 1.442695, %v4321_v23 }
 0x310   : > { %v1215_v58 = vadd.f32 %v1186_v53, %v1167_v7  ;;  %v2395_v7 = vpop.eup %2394  ;;  %v1155_v53 = vld [vmem:[#allocation3 + $0x30] sm:$0xff] }
 0x311   : > { %2402 = vpow2.f32 %v995_v63  ;;  %v1171_v51 = vmul.f32 %v2395_v7, %v1155_v53  ;;  %v1160_v7 = vld [vmem:[#allocation3 + $0x58] sm:$0xff] }
 0x312   : > { %1232 = vst.msk [vmem:[#allocation3 + $0x10] sm:$0xff] %vm1229_vm13, %v1215_v58  ;;  %v4325_v58 = vld [vmem:[#allocation51_spill] sm:$0xff]  ;;  %2404 = vpow2.f32 %v993_v56 }
 0x313   : > { %v1188_v10 = vpop.xlane.xlu1 %1187  ;;  %v4326_v21 = vsub.f32 %v4324_v2, %v4325_v58 }
 0x314   : > { %v1216_v13 = vadd.f32 %v1188_v10, %v1168_v9  ;;  %v4328_v9 = vsub.f32 %v4327_v45, %v3302_v16  ;;  %v2397_v10 = vpop.eup %2396 }
 0x315   : > { %v999_v19 = vmul.f32 1.442695, %v4326_v21  ;;  %v2399_v29 = vpop.eup %2398  ;;  %v1172_v16 = vmul.f32 %v2397_v10, %v1156_v24 }
 0x316   : > { %1233 = vst.msk [vmem:[#allocation3 + $0x18] sm:$0xff] %vm1229_vm13, %v1216_v13  ;;  %v997_v12 = vmul.f32 1.442695, %v4328_v9  ;;  %v1003_v13 = vmul.f32 1.442695, %v4331_v49 }
 0x317   : > { %v1190_v35 = vpop.xlane.xlu0 %1189  ;;  %2406 = vpow2.f32 %v999_v19 }
 0x318   : > { %v1217_v55 = vadd.f32 %v1190_v35, %v1169_v1  ;;  %2408 = vpow2.f32 %v997_v12  ;;  %v1001_v1 = vmul.f32 1.442695, %v4334_v11  ;;  %v2401_v35 = vpop.eup %2400  ;;  %v1162_v12 = vld [vmem:[#allocation3 + $0x68] sm:$0xff] }
 0x319   : > { %2410 = vpow2.f32 %v1003_v13  ;;  %v1173_v43 = vmul.f32 %v2401_v35, %v1157_v31 }
 0x31a   : > { %1234 = vst.msk [vmem:[#allocation3 + $0x20] sm:$0xff] %vm1229_vm13, %v1217_v55  ;;  %2412 = vpow2.f32 %v1001_v1  ;;  %v1174_v55 = vmul.f32 %v2399_v29, %v1158_v5 }
 0x31b   : > { %v1192_v8 = vpop.xlane.xlu1 %1191  ;;  %v2403_v63 = vpop.eup %2402 }
 0x31c   : > { %v1218_v57 = vadd.f32 %v1192_v8, %v1170_v46  ;;  %v2405_v33 = vpop.eup %2404  ;;  %v1159_v8 = vld [vmem:[#allocation3 + $0x50] sm:$0xff]  ;;  %v1176_v21 = vmul.f32 %v2403_v63, %v1160_v7 }
 0x31d   : > { %v1175_v19 = vmul.f32 %v2405_v33, %v1159_v8  ;;  %v1388_v63 = vld [vmem:[#allocation5 + $0x70] sm:$0xff] }
 0x31e   : > { %1235 = vst.msk [vmem:[#allocation3 + $0x28] sm:$0xff] %vm1229_vm13, %v1218_v57 }
 0x31f   : > { %v1194_v14 = vpop.xlane.xlu0 %1193 }
 0x320   : > { %v1219_v18 = vadd.f32 %v1194_v14, %v1171_v51  ;;  %v1161_v51 = vld [vmem:[#allocation3 + $0x60] sm:$0xff] }
 0x321   : > { %v2407_v58 = vpop.eup %2406 }
 0x322   : > { %1236 = vst.msk [vmem:[#allocation3 + $0x30] sm:$0xff] %vm1229_vm13, %v1219_v18  ;;  %v2409_v57 = vpop.eup %2408  ;;  %v1178_v41 = vmul.f32 %v2407_v58, %v1162_v12 }
 0x323   : > { %v1196_v42 = vpop.xlane.xlu1 %1195  ;;  %v2411_v24 = vpop.eup %2410  ;;  %v1177_v39 = vmul.f32 %v2409_v57, %v1161_v51 }
 0x324   : > { %v1220_v23 = vadd.f32 %v1196_v42, %v1172_v16  ;;  %v2413_v49 = vpop.eup %2412  ;;  %v1180_v29 = vmul.f32 %v2411_v24, %v1164_v15 }
 0x325   : > { %v1179_v16 = vmul.f32 %v2413_v49, %v1163_v47 }
 0x326   : > { %1237 = vst.msk [vmem:[#allocation3 + $0x38] sm:$0xff] %vm1229_vm13, %v1220_v23  ;;  %v1389_v23 = vld [vmem:[#allocation5 + $0x78] sm:$0xff] }
 0x327   : > { %v1200_v56 = vpop.xlane.xlu1 %1199  ;;  %v1198_v46 = vpop.xlane.xlu0 %1197 }
 0x328   : > { %v1222_v53 = vadd.f32 %v1200_v56, %v1174_v55  ;;  %v1221_v2 = vadd.f32 %v1198_v46, %v1173_v43 }
 0x32a   : > { %1239 = vst.msk [vmem:[#allocation3 + $0x48] sm:$0xff] %vm1229_vm13, %v1222_v53  ;;  %1238 = vst.msk [vmem:[#allocation3 + $0x40] sm:$0xff] %vm1229_vm13, %v1221_v2 }
 0x32b   : > { %v1204_v45 = vpop.xlane.xlu1 %1203  ;;  %v1202_v9 = vpop.xlane.xlu0 %1201 }
 0x32c   : > { %v1224_v10 = vadd.f32 %v1204_v45, %v1176_v21  ;;  %v1223_v14 = vadd.f32 %v1202_v9, %v1175_v19 }
 0x32e   : > { %1241 = vst.msk [vmem:[#allocation3 + $0x58] sm:$0xff] %vm1229_vm13, %v1224_v10  ;;  %1240 = vst.msk [vmem:[#allocation3 + $0x50] sm:$0xff] %vm1229_vm13, %v1223_v14 }
 0x32f   : > { %v1208_v13 = vpop.xlane.xlu1 %1207  ;;  %v1206_v18 = vpop.xlane.xlu0 %1205 }
 0x330   : > { %v1226_v11 = vadd.f32 %v1208_v13, %v1178_v41  ;;  %v1225_v1 = vadd.f32 %v1206_v18, %v1177_v39 }
 0x332   : > { %1243 = vst.msk [vmem:[#allocation3 + $0x68] sm:$0xff] %vm1229_vm13, %v1226_v11  ;;  %1242 = vst.msk [vmem:[#allocation3 + $0x60] sm:$0xff] %vm1229_vm13, %v1225_v1 }
 0x333   : > { %v1212_v35 = vpop.xlane.xlu1 %1211  ;;  %v1210_v42 = vpop.xlane.xlu0 %1209 }
 0x334   : > { %v1228_v5 = vadd.f32 %v1212_v35, %v1180_v29  ;;  %v1227_v31 = vadd.f32 %v1210_v42, %v1179_v16 }
 0x336   : > { %1245 = vst.msk [vmem:[#allocation3 + $0x78] sm:$0xff] %vm1229_vm13, %v1228_v5  ;;  %1244 = vst.msk [vmem:[#allocation3 + $0x70] sm:$0xff] %vm1229_vm13, %v1227_v31 }
 0x337   : > { %v1437_v55 = vpop.xlane.xlu1 %1436  ;;  %v1435_v43 = vpop.xlane.xlu0 %1434 }
 0x338   : > { %v1453_v33 = vmin.f32 %v1389_v23, %v1437_v55  ;;  %v1452_v56 = vmin.f32 %v1388_v63, %v1435_v43 }
 0x33a   : > { %1469 = vst.msk [vmem:[#allocation5 + $0x78] sm:$0xff] %vm1229_vm13, %v1453_v33  ;;  %1468 = vst.msk [vmem:[#allocation5 + $0x70] sm:$0xff] %vm1229_vm13, %v1452_v56 }
 0x33b PF: > { %p2226_p6 = scmp.ne.s32.totalorder %s2494_s23, 1 }
 0x33d   : > { %1473 = sbr.rel (%p2226_p6) target bundleno = 1180 (0x49c), region = 52 }
 0x344   : > { %v1512_v46 = vld [vmem:[#allocation3 + $0x10] sm:$0xff]  ;;  %v2510_v7 = vmov 0   ;;  %v1510_v8 = vld [vmem:[#allocation3] sm:$0xff]  ;;  %v1513_v53 = vld [vmem:[#allocation3 + $0x18] sm:$0xff]  ;;  %vm4117_vm4 = vcmask 7168   ;;  %s1574_s14 = sld [smem:[#allocation7]] }
 0x345   : > { %2415 = vset.pattern.permute.xlu1 %v2510_v7  ;;  %2414 = vset.pattern.permute.xlu0 %v2510_v7  ;;  %2416 = vlog2.f32 %v1512_v46  ;;  %v1511_v2 = vld [vmem:[#allocation3 + $0x8] sm:$0xff]  ;;  %v1514_v21 = vld [vmem:[#allocation3 + $0x20] sm:$0xff]  ;;  %v1517_v19 = vld [vmem:[#allocation3 + $0x38] sm:$0xff] }
 0x346   : > { %2418 = vlog2.f32 %v1510_v8  ;;  %v1515_v58 = vld [vmem:[#allocation3 + $0x28] sm:$0xff]  ;;  %v1496_v45 = vld [vmem:[#allocation2 + $0x10] sm:$0xff]  ;;  %v1494_v51 = vld [vmem:[#allocation2] sm:$0xff] }
 0x347   : > { %2420 = vlog2.f32 %v1513_v53  ;;  %v1516_v10 = vld [vmem:[#allocation3 + $0x30] sm:$0xff]  ;;  %v1964_v49 = vld [vmem:[#allocation5] sm:$0xff]  ;;  %v1497_v13 = vld [vmem:[#allocation2 + $0x18] sm:$0xff] }
 0x348   : > { %2422 = vlog2.f32 %v1511_v2  ;;  %v1966_v14 = vld [vmem:[#allocation5 + $0x10] sm:$0xff]  ;;  %v1519_v18 = vld [vmem:[#allocation3 + $0x48] sm:$0xff]  ;;  %v4335_v47 = vld [vmem:[#allocation8_spill] sm:$0xff] }
 0x349   : > { %2424 = vlog2.f32 %v1515_v58  ;;  %v3519_v15 = vld [vmem:[#allocation4 + $0x10] sm:$0xff]  ;;  %vm1838_vm13 = vcmp.ne.f32.partialorder %v4335_v47, -1.0  ;;  %v3523_v16 = vld [vmem:[#allocation4] sm:$0xff]  ;;  %v4336_v35 = vld [vmem:[#allocation9_spill] sm:$0xff] }
 0x34a   : > { %2426 = vlog2.f32 %v1514_v21  ;;  %vm1822_vm2 = vcmp.gt.f32.partialorder %v3519_v15, 0.0  ;;  %vm1836_vm11 = vcmp.ne.f32.partialorder %v4336_v35, -1.0  ;;  %v1967_v42 = vld [vmem:[#allocation5 + $0x18] sm:$0xff]  ;;  %v1518_v5 = vld [vmem:[#allocation3 + $0x40] sm:$0xff]  ;;  %vm1820_vm7 = vcmp.gt.f32.partialorder %v3523_v16, 0.0  ;;  %v1495_v55 = vld [vmem:[#allocation2 + $0x8] sm:$0xff] }
 0x34b   : > { %2428 = vlog2.f32 %v1517_v19  ;;  %v3527_v33 = vld [vmem:[#allocation4 + $0x18] sm:$0xff]  ;;  %v4337_v56 = vld [vmem:[#allocation10_spill] sm:$0xff]  ;;  %vm3534_vm15 = vmand %vm1822_vm2, %vm1838_vm13  ;;  %v1884_v62 = vmax.f32 %v3523_v16, 1.0 }
 0x34c   : > { %2430 = vlog2.f32 %v1516_v10  ;;  %vm1839_vm8 = vcmp.ne.f32.partialorder %v4337_v56, -1.0  ;;  %v1521_v7 = vld [vmem:[#allocation3 + $0x58] sm:$0xff]  ;;  %vm1823_vm12 = vcmp.gt.f32.partialorder %v3527_v33, 0.0  ;;  %v1965_v21 = vld [vmem:[#allocation5 + $0x8] sm:$0xff]  ;;  %vm3545_vm1 = vmand %vm1820_vm7, %vm1836_vm11  ;;  %v1887_v4 = vmax.f32 %v3527_v33, 1.0 }
 0x34d   : > { %2432 = vlog2.f32 %v1519_v18  ;;  %v1499_v19 = vld [vmem:[#allocation2 + $0x28] sm:$0xff]  ;;  %v1520_v10 = vld [vmem:[#allocation3 + $0x50] sm:$0xff]  ;;  %vm3566_vm6 = vmand %vm1823_vm12, %vm1839_vm8  ;;  %v4343_v18 = vmov 0 }
 0x34e   : > { %2434 = vlog2.f32 %v1518_v5  ;;  %v4344_v18 = vsel %vm3566_vm6, 4294967295, %v4343_v18  ;;  %v4345_v5 = vld [vmem:[#allocation12_spill] sm:$0xff] }
 0x34f   : > { %v2417_v57 = vpop.eup %2416  ;;  %2436 = vlog2.f32 %v1521_v7  ;;  %vm1841_vm13 = vcmp.ne.f32.partialorder %v4345_v5, -1.0  ;;  %v3581_v56 = vld [vmem:[#allocation4 + $0x20] sm:$0xff]  ;;  %v1523_v7 = vld [vmem:[#allocation3 + $0x68] sm:$0xff] }
 0x350   : > { %v2419_v9 = vpop.eup %2418  ;;  %v1531_v12 = vmul.f32 0.6931472, %v2417_v57  ;;  %2438 = vlog2.f32 %v1520_v10  ;;  %vm1824_vm11 = vcmp.gt.f32.partialorder %v3581_v56, 0.0  ;;  %v3595_v10 = vld [vmem:[#allocation4 + $0x38] sm:$0xff] }
 0x351   : > { %v1527_v24 = vmul.f32 0.6931472, %v2419_v9  ;;  %v2421_v41 = vpop.eup %2420  ;;  %vm1827_vm12 = vcmp.gt.f32.partialorder %v3595_v10, 0.0  ;;  %2440 = vlog2.f32 %v1523_v7  ;;  %v1973_v7 = vld [vmem:[#allocation5 + $0x48] sm:$0xff] }
 0x352   : > { %v1560_v39 = vadd.f32 %v1531_v12, %v1496_v45  ;;  %v1533_v1 = vmul.f32 0.6931472, %v2421_v41  ;;  %v2423_v31 = vpop.eup %2422  ;;  %v4342_v12 = vld [vmem:[#allocation11_spill] sm:$0xff] }
 0x353   : > { %v1558_v11 = vadd.f32 %v1527_v24, %v1494_v51  ;;  %v1529_v46 = vmul.f32 0.6931472, %v2423_v31  ;;  %v2425_v8 = vpop.eup %2424  ;;  %vm1837_vm5 = vcmp.ne.f32.partialorder %v4342_v12, -1.0  ;;  %v1968_v31 = vld [vmem:[#allocation5 + $0x20] sm:$0xff]  ;;  %v1500_v12 = vld [vmem:[#allocation2 + $0x30] sm:$0xff] }
 0x354   : > { %1587 = vperm.xlu1 %2415, %v1560_v39   ;;  %v1982_v29 = vsub.f32 %v1966_v14, %v1560_v39  ;;  %v1561_v63 = vadd.f32 %v1533_v1, %v1497_v13  ;;  %v1537_v51 = vmul.f32 0.6931472, %v2425_v8  ;;  %v2427_v14 = vpop.eup %2426  ;;  %v3556_v39 = vld [vmem:[#allocation4 + $0x8] sm:$0xff]  ;;  %v1498_v13 = vld [vmem:[#allocation2 + $0x20] sm:$0xff] }
 0x355   : > { %1577 = vperm.xlu0 %2414, %v1558_v11   ;;  %v1980_v23 = vsub.f32 %v1964_v49, %v1558_v11  ;;  %v1559_v9 = vadd.f32 %v1529_v46, %v1495_v55  ;;  %v1969_v49 = vld [vmem:[#allocation5 + $0x28] sm:$0xff]  ;;  %vm1821_vm9 = vcmp.gt.f32.partialorder %v3556_v39, 0.0  ;;  %v2429_v35 = vpop.eup %2428 }
 0x356   : > { %v1998_v43 = vmul.f32 -1.0, %v1982_v29  ;;  %v1983_v58 = vsub.f32 %v1967_v42, %v1561_v63  ;;  %v1563_v11 = vadd.f32 %v1537_v51, %v1499_v19  ;;  %v3571_v1 = vld [vmem:[#allocation4 + $0x28] sm:$0xff]  ;;  %v1535_v29 = vmul.f32 0.6931472, %v2427_v14  ;;  %v2431_v8 = vpop.eup %2430  ;;  %vm3587_vm2 = vmand %vm1821_vm9, %vm1837_vm5 }
 0x357   : > { %v1996_v2 = vmul.f32 -1.0, %v1980_v23  ;;  %v1981_v47 = vsub.f32 %v1965_v21, %v1559_v9  ;;  %vm1825_vm14 = vcmp.gt.f32.partialorder %v3571_v1, 0.0  ;;  %v1501_v23 = vld [vmem:[#allocation2 + $0x38] sm:$0xff]  ;;  %v1541_v46 = vmul.f32 0.6931472, %v2429_v35  ;;  %v2433_v14 = vpop.eup %2432 }
 0x358   : > { %v2014_v57 = vsel %vm3534_vm15, %v1998_v43, -1e+30  ;;  %1592 = vperm.xlu1 %2415, %v1561_v63   ;;  %v1999_v41 = vmul.f32 -1.0, %v1983_v58  ;;  %v1985_v55 = vsub.f32 %v1969_v49, %v1563_v11  ;;  %v1562_v43 = vadd.f32 %v1535_v29, %v1498_v13  ;;  %v4348_v58 = vld [vmem:[#allocation13_spill] sm:$0xff]  ;;  %v1971_v21 = vld [vmem:[#allocation5 + $0x38] sm:$0xff]  ;;  %vm3605_vm8 = vmand %vm1825_vm14, %vm1841_vm13 }
 0x359   : > { %2030 = vst.msk [vmem:[%s4018_s6 + $0x10] sm:$0xff] %vm4117_vm4, %v2014_v57  ;;  %v2012_v24 = vsel %vm3545_vm1, %v1996_v2, -1e+30  ;;  %1582 = vperm.xlu0 %2414, %v1559_v9   ;;  %v1997_v63 = vmul.f32 -1.0, %v1981_v47  ;;  %v4346_v2 = vmov 0  ;;  %vm1840_vm7 = vcmp.ne.f32.partialorder %v4348_v58, -1.0 }
 0x35a   : > { %2028 = vst.msk [vmem:[%s4018_s6] sm:$0xff] %vm4117_vm4, %v2012_v24  ;;  %v2015_v42 = vsel %vm3566_vm6, %v1999_v41, -1e+30  ;;  %v4347_v2 = vsel %vm3587_vm2, 4294967295, %v4346_v2  ;;  %v2001_v57 = vmul.f32 -1.0, %v1985_v55  ;;  %v1984_v9 = vsub.f32 %v1968_v31, %v1562_v43  ;;  %v4351_v41 = vld [vmem:[#allocation14_spill] sm:$0xff]  ;;  %vm3617_vm9 = vmand %vm1824_vm11, %vm1840_vm7 }
 0x35b   : > { %2031 = vst.msk [vmem:[%s4018_s6 + $0x18] sm:$0xff] %vm4117_vm4, %v2015_v42  ;;  %v2013_v19 = vsel %vm3587_vm2, %v1997_v63, -1e+30  ;;  %v1565_v51 = vadd.f32 %v1541_v46, %v1501_v23  ;;  %v4349_v24 = vmov 0  ;;  %vm1843_vm5 = vcmp.ne.f32.partialorder %v4351_v41, -1.0  ;;  %v1970_v13 = vld [vmem:[#allocation5 + $0x30] sm:$0xff]  ;;  %v2435_v23 = vpop.eup %2434 }
 0x35c   : > { %1602 = vperm.xlu1 %2415, %v1563_v11   ;;  %2029 = vst.msk [vmem:[%s4018_s6 + $0x8] sm:$0xff] %vm4117_vm4, %v2013_v19  ;;  %v4350_v24 = vsel %vm3605_vm8, 4294967295, %v4349_v24  ;;  %v1539_v49 = vmul.f32 0.6931472, %v2431_v8  ;;  %v1503_v47 = vld [vmem:[#allocation2 + $0x48] sm:$0xff]  ;;  %v4352_v29 = vmov 0  ;;  %vm3641_vm11 = vmand %vm1827_vm12, %vm1843_vm5 }
 0x35d   : > { %1597 = vperm.xlu0 %2414, %v1562_v43   ;;  %v2017_v11 = vsel %vm3605_vm8, %v2001_v57, -1e+30  ;;  %v4353_v29 = vsel %vm3617_vm9, 4294967295, %v4352_v29  ;;  %v2000_v35 = vmul.f32 -1.0, %v1984_v9  ;;  %v1987_v42 = vsub.f32 %v1971_v21, %v1565_v51  ;;  %v1522_v31 = vld [vmem:[#allocation3 + $0x60] sm:$0xff]  ;;  %v3625_v55 = vld [vmem:[#allocation4 + $0x30] sm:$0xff] }
 0x35e   : > { %v1545_v5 = vmul.f32 0.6931472, %v2433_v14  ;;  %2033 = vst.msk [vmem:[%s4018_s6 + $0x28] sm:$0xff] %vm4117_vm4, %v2017_v11  ;;  %v1564_v63 = vadd.f32 %v1539_v49, %v1500_v12  ;;  %v4354_v43 = vld [vmem:[#allocation15_spill] sm:$0xff]  ;;  %v4355_v46 = vld [vmem:[#allocation16_spill] sm:$0xff]  ;;  %v3631_v57 = vld [vmem:[#allocation4 + $0x48] sm:$0xff]  ;;  %2442 = vlog2.f32 %v1522_v31 }
 0x35f   : > { %vm1842_vm14 = vcmp.ne.f32.partialorder %v4354_v43, -1.0  ;;  %v1502_v8 = vld [vmem:[#allocation2 + $0x40] sm:$0xff]  ;;  %v2016_v58 = vsel %vm3617_vm9, %v2000_v35, -1e+30  ;;  %v2003_v21 = vmul.f32 -1.0, %v1987_v42  ;;  %v4356_v12 = vmov 0 }
 0x360   : > { %1612 = vperm.xlu1 %2415, %v1565_v51   ;;  %v1567_v19 = vadd.f32 %v1545_v5, %v1503_v47  ;;  %v1543_v9 = vmul.f32 0.6931472, %v2435_v23  ;;  %v2437_v51 = vpop.eup %2436  ;;  %2032 = vst.msk [vmem:[%s4018_s6 + $0x20] sm:$0xff] %vm4117_vm4, %v2016_v58  ;;  %v4357_v12 = vsel %vm3641_vm11, 4294967295, %v4356_v12  ;;  %vm1826_vm7 = vcmp.gt.f32.partialorder %v3625_v55, 0.0  ;;  %v1972_v49 = vld [vmem:[#allocation5 + $0x40] sm:$0xff] }
 0x361   : > { %4358 = vst [vmem:[#allocation56_spill] sm:$0xff] %v4357_v12  ;;  %v1986_v14 = vsub.f32 %v1970_v13, %v1564_v63  ;;  %1607 = vperm.xlu0 %2414, %v1564_v63   ;;  %v1505_v47 = vld [vmem:[#allocation2 + $0x58] sm:$0xff]  ;;  %v2019_v11 = vsel %vm3641_vm11, %v2003_v21, -1e+30  ;;  %v3649_v42 = vld [vmem:[#allocation4 + $0x40] sm:$0xff]  ;;  %v2439_v58 = vpop.eup %2438  ;;  %v4359_v31 = vld [vmem:[#allocation17_spill] sm:$0xff] }
 0x362   : > { %v1989_v35 = vsub.f32 %v1973_v7, %v1567_v19  ;;  %v1566_v41 = vadd.f32 %v1543_v9, %v1502_v8  ;;  %v1549_v5 = vmul.f32 0.6931472, %v2437_v51  ;;  %v1525_v23 = vld [vmem:[#allocation3 + $0x78] sm:$0xff]  ;;  %2035 = vst.msk [vmem:[%s4018_s6 + $0x38] sm:$0xff] %vm4117_vm4, %v2019_v11  ;;  %v1504_v21 = vld [vmem:[#allocation2 + $0x50] sm:$0xff]  ;;  %vm3661_vm13 = vmand %vm1826_vm7, %vm1842_vm14  ;;  %v4360_v7 = vmov 0  ;;  %v2441_v12 = vpop.eup %2440 }
 0x363   : > { %v2002_v13 = vmul.f32 -1.0, %v1986_v14  ;;  %v1975_v63 = vld [vmem:[#allocation5 + $0x58] sm:$0xff]  ;;  %v4361_v7 = vsel %vm3661_vm13, 4294967295, %v4360_v7  ;;  %v1547_v14 = vmul.f32 0.6931472, %v2439_v58  ;;  %vm4363_vm12 = vcmp.ne.f32.partialorder %v4355_v46, -1.0 }
 0x364   : > { %1622 = vperm.xlu1 %2415, %v1567_v19   ;;  %4362 = vst [vmem:[#allocation57_spill] sm:$0xff] %v4361_v7  ;;  %v2005_v8 = vmul.f32 -1.0, %v1989_v35  ;;  %v1988_v19 = vsub.f32 %v1972_v49, %v1566_v41  ;;  %v1569_v9 = vadd.f32 %v1549_v5, %v1505_v47  ;;  %v3665_v51 = vld [vmem:[#allocation4 + $0x58] sm:$0xff]  ;;  %vm4364_vm5 = vcmp.gt.f32.partialorder %v3631_v57, 0.0  ;;  %v4368_v35 = vld [vmem:[#allocation18_spill] sm:$0xff] }
 0x365   : > { %v2018_v11 = vsel %vm3661_vm13, %v2002_v13, -1e+30  ;;  %vm3673_vm4 = vmand %vm4364_vm5, %vm4363_vm12  ;;  %v4365_v43 = vmov 0  ;;  %1617 = vperm.xlu0 %2414, %v1566_v41   ;;  %v1974_v49 = vld [vmem:[#allocation5 + $0x50] sm:$0xff]  ;;  %2444 = vlog2.f32 %v1525_v23  ;;  %vm4369_vm11 = vcmask 7168  }
 0x366   : > { %v4366_v43 = vsel %vm3673_vm4, 4294967295, %v4365_v43  ;;  %2034 = vst.msk [vmem:[%s4018_s6 + $0x30] sm:$0xff] %vm4369_vm11, %v2018_v11  ;;  %v2021_v46 = vsel %vm3673_vm4, %v2005_v8, -1e+30  ;;  %v2004_v47 = vmul.f32 -1.0, %v1988_v19  ;;  %v1991_v5 = vsub.f32 %v1975_v63, %v1569_v9  ;;  %v3685_v13 = vld [vmem:[#allocation4 + $0x50] sm:$0xff]  ;;  %vm4370_vm12 = vmmov %vm4369_vm11 }
 0x367   : > { %4367 = vst [vmem:[#allocation58_spill] sm:$0xff] %v4366_v43  ;;  %v1568_v58 = vadd.f32 %v1547_v14, %v1504_v21  ;;  %v1524_v41 = vld [vmem:[#allocation3 + $0x70] sm:$0xff]  ;;  %2037 = vst.msk [vmem:[%s4018_s6 + $0x48] sm:$0xff] %vm4370_vm12, %v2021_v46  ;;  %vm4371_vm5 = vcmp.ne.f32.partialorder %v4359_v31, -1.0  ;;  %vm4372_vm11 = vcmp.gt.f32.partialorder %v3649_v42, 0.0  ;;  %v4373_v23 = vmov 0 }
 0x368   : > { %1632 = vperm.xlu1 %2415, %v1569_v9   ;;  %vm3695_vm14 = vmand %vm4372_vm11, %vm4371_vm5  ;;  %v4376_v63 = vld [vmem:[#allocation19_spill] sm:$0xff]  ;;  %v1507_v21 = vld [vmem:[#allocation2 + $0x68] sm:$0xff]  ;;  %v2007_v19 = vmul.f32 -1.0, %v1991_v5  ;;  %v1553_v14 = vmul.f32 0.6931472, %v2441_v12  ;;  %vm4377_vm5 = vcmp.ne.f32.partialorder %v4368_v35, -1.0  ;;  %2446 = vlog2.f32 %v1524_v41 }
 0x369   : > { %v4374_v23 = vsel %vm3695_vm14, 4294967295, %v4373_v23  ;;  %vm1846_vm4 = vcmp.ne.f32.partialorder %v4376_v63, -1.0  ;;  %v2020_v8 = vsel %vm3695_vm14, %v2004_v47, -1e+30  ;;  %v1990_v9 = vsub.f32 %v1974_v49, %v1568_v58  ;;  %1627 = vperm.xlu0 %2414, %v1568_v58   ;;  %v1977_v11 = vld [vmem:[#allocation5 + $0x68] sm:$0xff]  ;;  %v2443_v47 = vpop.eup %2442  ;;  %vm4382_vm7 = vmmov %vm4370_vm12  ;;  %v4387_v58 = vld [vmem:[#allocation20_spill] sm:$0xff] }
 0x36a   : > { %4375 = vst [vmem:[#allocation59_spill] sm:$0xff] %v4374_v23  ;;  %2036 = vst.msk [vmem:[%s4018_s6 + $0x40] sm:$0xff] %vm4370_vm12, %v2020_v8  ;;  %vm4378_vm11 = vcmp.gt.f32.partialorder %v3665_v51, 0.0  ;;  %v4379_v31 = vmov 0  ;;  %v1571_v46 = vadd.f32 %v1553_v14, %v1507_v21  ;;  %vm4383_vm12 = vcmp.gt.f32.partialorder %v3685_v13, 0.0  ;;  %v3729_v5 = vld [vmem:[#allocation4 + $0x68] sm:$0xff] }
 0x36b   : > { %vm3711_vm13 = vmand %vm4378_vm11, %vm4377_vm5  ;;  %v2006_v12 = vmul.f32 -1.0, %v1990_v9  ;;  %v4384_v35 = vmov 0  ;;  %vm1849_vm11 = vcmp.ne.f32.partialorder %v4387_v58, -1.0  ;;  %v1506_v41 = vld [vmem:[#allocation2 + $0x60] sm:$0xff]  ;;  %v4388_v58 = vmov 0  ;;  %v4392_v43 = vld [vmem:[#allocation22_spill] sm:$0xff] }
 0x36c   : > { %v4380_v31 = vsel %vm3711_vm13, 4294967295, %v4379_v31  ;;  %v2023_v49 = vsel %vm3711_vm13, %v2007_v19, -1e+30  ;;  %vm3725_vm5 = vmand %vm4383_vm12, %vm1846_vm4  ;;  %vm1833_vm13 = vcmp.gt.f32.partialorder %v3729_v5, 0.0  ;;  %v1993_v8 = vsub.f32 %v1977_v11, %v1571_v46  ;;  %1642 = vperm.xlu1 %2415, %v1571_v46   ;;  %v1976_v63 = vld [vmem:[#allocation5 + $0x60] sm:$0xff]  ;;  %v1509_v11 = vld [vmem:[#allocation2 + $0x78] sm:$0xff] }
 0x36d   : > { %4381 = vst [vmem:[#allocation60_spill] sm:$0xff] %v4380_v31  ;;  %2039 = vst.msk [vmem:[%s4018_s6 + $0x58] sm:$0xff] %vm4382_vm7, %v2023_v49  ;;  %v4385_v35 = vsel %vm3725_vm5, 4294967295, %v4384_v35  ;;  %v2022_v21 = vsel %vm3725_vm5, %v2006_v12, -1e+30  ;;  %v3743_v31 = vld [vmem:[#allocation4 + $0x60] sm:$0xff]  ;;  %2448 = vrcp.f32 %v1884_v62 }
 0x36e   : > { %4386 = vst [vmem:[#allocation61_spill] sm:$0xff] %v4385_v35  ;;  %v1551_v19 = vmul.f32 0.6931472, %v2443_v47  ;;  %2038 = vst.msk [vmem:[%s4018_s6 + $0x50] sm:$0xff] %vm4382_vm7, %v2022_v21  ;;  %v2009_v9 = vmul.f32 -1.0, %v1993_v8  ;;  %v4391_v12 = vld [vmem:[#allocation21_spill] sm:$0xff] }
 0x36f   : > { %v2445_v49 = vpop.eup %2444  ;;  %vm3739_vm4 = vmand %vm1833_vm13, %vm1849_vm11  ;;  %vm1848_vm12 = vcmp.ne.f32.partialorder %v4391_v12, -1.0  ;;  %vm1832_vm5 = vcmp.gt.f32.partialorder %v3743_v31, 0.0  ;;  %v1979_v8 = vld [vmem:[#allocation5 + $0x78] sm:$0xff]  ;;  %vm1851_vm11 = vcmp.ne.f32.partialorder %v4392_v43, -1.0  ;;  %v4396_v43 = vmov 0  ;;  %v1978_v12 = vld [vmem:[#allocation5 + $0x70] sm:$0xff] }
 0x370   : > { %v1570_v14 = vadd.f32 %v1551_v19, %v1506_v41  ;;  %v4389_v58 = vsel %vm3739_vm4, 4294967295, %v4388_v58  ;;  %v2025_v46 = vsel %vm3739_vm4, %v2009_v9, -1e+30  ;;  %v1557_v21 = vmul.f32 0.6931472, %v2445_v49  ;;  %v3753_v41 = vld [vmem:[#allocation4 + $0x78] sm:$0xff]  ;;  %vm3759_vm4 = vmand %vm1832_vm5, %vm1848_vm12 }
 0x371   : > { %4390 = vst [vmem:[#allocation62_spill] sm:$0xff] %v4389_v58  ;;  %2041 = vst.msk [vmem:[%s4018_s6 + $0x68] sm:$0xff] %vm4382_vm7, %v2025_v46  ;;  %vm1835_vm13 = vcmp.gt.f32.partialorder %v3753_v41, 0.0  ;;  %v1894_v45 = vmax.f32 %v3685_v13, 1.0 }
 0x372   : > { %v1992_v47 = vsub.f32 %v1976_v63, %v1570_v14  ;;  %1637 = vperm.xlu0 %2414, %v1570_v14   ;;  %v1573_v35 = vadd.f32 %v1557_v21, %v1509_v11  ;;  %v2447_v9 = vpop.eup %2446  ;;  %v4393_v63 = vmov 0  ;;  %v1508_v14 = vld [vmem:[#allocation2 + $0x70] sm:$0xff]  ;;  %vm3769_vm14 = vmand %vm1835_vm13, %vm1851_vm11 }
 0x373   : > { %v4394_v63 = vsel %vm3759_vm4, 4294967295, %v4393_v63  ;;  %v1555_v58 = vmul.f32 0.6931472, %v2447_v9  ;;  %v4397_v43 = vsel %vm3769_vm14, 4294967295, %v4396_v43  ;;  %v3773_v21 = vld [vmem:[#allocation4 + $0x70] sm:$0xff] }
 0x374   : > { %v2008_v19 = vmul.f32 -1.0, %v1992_v47  ;;  %4395 = vst [vmem:[#allocation63_spill] sm:$0xff] %v4394_v63  ;;  %v1995_v46 = vsub.f32 %v1979_v8, %v1573_v35  ;;  %1652 = vperm.xlu1 %2415, %v1573_v35   ;;  %4398 = vst [vmem:[#allocation64_spill] sm:$0xff] %v4397_v43  ;;  %vm1834_vm5 = vcmp.gt.f32.partialorder %v3773_v21, 0.0  ;;  %v4400_v35 = vld [vmem:[#allocation23_spill] sm:$0xff] }
 0x375   : > { %v1572_v47 = vadd.f32 %v1555_v58, %v1508_v14  ;;  %4399 = vst [vmem:[#allocation65_spill] sm:$0xff] %v3773_v21  ;;  %vm1850_vm12 = vcmp.ne.f32.partialorder %v4400_v35, -1.0 }
 0x376   : > { %v2024_v49 = vsel %vm3759_vm4, %v2008_v19, -1e+30  ;;  %v2011_v11 = vmul.f32 -1.0, %v1995_v46  ;;  %vm4401_vm4 = vmmov %vm4382_vm7 }
 0x377   : > { %2040 = vst.msk [vmem:[%s4018_s6 + $0x60] sm:$0xff] %vm4382_vm7, %v2024_v49  ;;  %v1994_v8 = vsub.f32 %v1978_v12, %v1572_v47  ;;  %1647 = vperm.xlu0 %2414, %v1572_v47   ;;  %vm3783_vm13 = vmand %vm1834_vm5, %vm1850_vm12  ;;  %v4402_v49 = vmov 0  ;;  %vm4410_vm5 = vnez %v4178_v61  ;;  %vm4411_vm12 = vnez %v4176_v59  ;;  %v2449_v33 = vpop.eup %2448 }
 0x378   : > { %v2027_v19 = vsel %vm3769_vm14, %v2011_v11, -1e+30  ;;  %v4403_v49 = vsel %vm3783_vm13, 4294967295, %v4402_v49  ;;  %vm4405_vm11 = vmmov %vm4401_vm4 }
 0x379   : > { %2043 = vst.msk [vmem:[%s4018_s6 + $0x78] sm:$0xff] %vm4401_vm4, %v2027_v19  ;;  %v2010_v9 = vmul.f32 -1.0, %v1994_v8  ;;  %4404 = vst [vmem:[#allocation66_spill] sm:$0xff] %v4403_v49  ;;  %v3795_v19 = vstv %s1574_s14 }
 0x37b   : > { %v2026_v58 = vsel %vm3783_vm13, %v2010_v9, -1e+30 }
 0x37c   : > { %2042 = vst.msk [vmem:[%s4018_s6 + $0x70] sm:$0xff] %vm4405_vm11, %v2026_v58 }
 0x3d3   : > { %v1588_v14 = vpop.permute.xlu1 %1587 }
 0x3d4   : > { %v1657_v46 = vsub.f32 %v2971_v26, %v1588_v14  ;;  %v1578_v12 = vpop.permute.xlu0 %1577  ;;  %v4406_v26 = vld [vmem:[#allocation25_spill] sm:$0xff] }
 0x3d5   : > { %v1655_v11 = vsub.f32 %v2975_v32, %v1578_v12  ;;  %vm4407_vm4 = vnez %v4406_v26 }
 0x3d6   : > { %v1673_v47 = vmul.f32 -1.0, %v1657_v46 }
 0x3d7   : > { %v1671_v35 = vmul.f32 -1.0, %v1655_v11  ;;  %v1593_v8 = vpop.permute.xlu1 %1592  ;;  %v4408_v11 = vld [vmem:[#allocation24_spill] sm:$0xff] }
 0x3d8   : > { %v1658_v49 = vsub.f32 %v2979_v44, %v1593_v8  ;;  %v1583_v9 = vpop.permute.xlu0 %1582  ;;  %v1690_v63 = vmax.f32 %v1673_v47, %v3795_v19  ;;  %vm4409_vm7 = vnez %v4408_v11 }
 0x3d9   : > { %v1688_v43 = vmax.f32 %v1671_v35, %v3795_v19  ;;  %v1656_v58 = vsub.f32 %v2983_v0, %v1583_v9 }
 0x3da   : > { %v1674_v23 = vmul.f32 -1.0, %v1658_v49  ;;  %v1722_v44 = vsel %vm4409_vm7, %v1690_v63, 0.0 }
 0x3db   : > { %v1603_v21 = vpop.permute.xlu1 %1602  ;;  %v1720_v14 = vsel %vm4407_vm4, %v1688_v43, 0.0  ;;  %v1672_v32 = vmul.f32 -1.0, %v1656_v58  ;;  %vm4414_vm4 = vnez %v4184_v3 }
 0x3dc   : > { %v1660_v46 = vsub.f32 %v2999_v17, %v1603_v21  ;;  %1736 = vadd.xlane.f32.xlu0 %v1720_v14  ;;  %v1598_v12 = vpop.permute.xlu0 %1597  ;;  %v1691_v0 = vmax.f32 %v1674_v23, %v3795_v19 }
 0x3dd   : > { %v1659_v8 = vsub.f32 %v2991_v22, %v1598_v12  ;;  %v1689_v35 = vmax.f32 %v1672_v32, %v3795_v19 }
 0x3de   : > { %v1676_v47 = vmul.f32 -1.0, %v1660_v46  ;;  %v1723_v26 = vsel %vm4411_vm12, %v1691_v0, 0.0  ;;  %vm4418_vm12 = vcmask 7168  }
 0x3df   : > { %v1613_v7 = vpop.permute.xlu1 %1612  ;;  %v1675_v49 = vmul.f32 -1.0, %v1659_v8  ;;  %v1721_v17 = vsel %vm4410_vm5, %v1689_v35, 0.0  ;;  %v4415_v35 = vld [vmem:[#allocation27_spill] sm:$0xff]  ;;  %vm4417_vm5 = vnez %v4193_v27 }
 0x3e0   : > { %v1662_v9 = vsub.f32 %v2995_v20, %v1613_v7  ;;  %1740 = vadd.xlane.f32.xlu0 %v1722_v44  ;;  %1738 = vadd.xlane.f32.xlu1 %v1721_v17  ;;  %v1608_v21 = vpop.permute.xlu0 %1607  ;;  %v1693_v23 = vmax.f32 %v1676_v47, %v3795_v19  ;;  %v4412_v20 = vld [vmem:[#allocation26_spill] sm:$0xff]  ;;  %vm4416_vm7 = vnez %v4415_v35 }
 0x3e1   : > { %v1692_v63 = vmax.f32 %v1675_v49, %v3795_v19  ;;  %v1661_v22 = vsub.f32 %v2987_v25, %v1608_v21  ;;  %vm4413_vm11 = vnez %v4412_v20  ;;  %v4434_v21 = vld [vmem:[#allocation28_spill] sm:$0xff] }
 0x3e2   : > { %v1678_v43 = vmul.f32 -1.0, %v1662_v9  ;;  %v1725_v59 = vsel %vm4414_vm4, %v1693_v23, 0.0  ;;  %v2511_v9 = vmov 0.0  }
 0x3e3   : > { %v1623_v58 = vpop.permute.xlu1 %1622  ;;  %v1724_v61 = vsel %vm4413_vm11, %v1692_v63, 0.0  ;;  %v1677_v7 = vmul.f32 -1.0, %v1661_v22  ;;  %1478 = vst.msk [vmem:[#allocation6] sm:$0xff] %vm4418_vm12, %v2511_v9  ;;  %vm4419_vm11 = vmmov %vm4418_vm12 }
 0x3e4   : > { %v1664_v14 = vsub.f32 %v2985_v40, %v1623_v58  ;;  %1742 = vadd.xlane.f32.xlu0 %v1723_v26  ;;  %1744 = vadd.xlane.f32.xlu1 %v1724_v61  ;;  %v1618_v32 = vpop.permute.xlu0 %1617  ;;  %v1695_v46 = vmax.f32 %v1678_v43, %v3795_v19  ;;  %1479 = vst.msk [vmem:[#allocation6 + $0x8] sm:$0xff] %vm4419_vm11, %v2511_v9  ;;  %vm4420_vm4 = vmmov %vm4419_vm11 }
 0x3e5   : > { %v1663_v25 = vsub.f32 %v2977_v34, %v1618_v32  ;;  %v1694_v44 = vmax.f32 %v1677_v7, %v3795_v19  ;;  %1480 = vst.msk [vmem:[#allocation6 + $0x10] sm:$0xff] %vm4420_vm4, %v2511_v9  ;;  %vm4421_vm13 = vmmov %vm4420_vm4 }
 0x3e6   : > { %v1680_v12 = vmul.f32 -1.0, %v1664_v14  ;;  %v1727_v49 = vsel %vm4417_vm5, %v1695_v46, 0.0  ;;  %1481 = vst.msk [vmem:[#allocation6 + $0x18] sm:$0xff] %vm4421_vm13, %v2511_v9  ;;  %vm4422_vm14 = vmmov %vm4420_vm4 }
 0x3e7   : > { %v1633_v11 = vpop.permute.xlu1 %1632  ;;  %v1679_v8 = vmul.f32 -1.0, %v1663_v25  ;;  %v1726_v47 = vsel %vm4416_vm7, %v1694_v44, 0.0  ;;  %1482 = vst.msk [vmem:[#allocation6 + $0x20] sm:$0xff] %vm4422_vm14, %v2511_v9  ;;  %vm4423_vm8 = vmmov %vm4420_vm4 }
 0x3e8   : > { %v1666_v40 = vsub.f32 %v2981_v48, %v1633_v11  ;;  %1746 = vadd.xlane.f32.xlu0 %v1725_v59  ;;  %1748 = vadd.xlane.f32.xlu1 %v1726_v47  ;;  %v1628_v0 = vpop.permute.xlu0 %1627  ;;  %1483 = vst.msk [vmem:[#allocation6 + $0x28] sm:$0xff] %vm4423_vm8, %v2511_v9  ;;  %vm4424_vm9 = vmmov %vm4420_vm4  ;;  %v1697_v48 = vmax.f32 %v1680_v12, %v3795_v19  ;;  %vm4437_vm8 = vnez %v4213_v52 }
 0x3e9   : > { %1484 = vst.msk [vmem:[#allocation6 + $0x30] sm:$0xff] %vm4424_vm9, %v2511_v9  ;;  %vm4425_vm7 = vmmov %vm4420_vm4  ;;  %v1665_v27 = vsub.f32 %v2973_v28, %v1628_v0  ;;  %v1696_v34 = vmax.f32 %v1679_v8, %v3795_v19  ;;  %vm4438_vm9 = vnez %v4211_v50  ;;  %v1886_v8 = vmax.f32 %v3519_v15, 1.0 }
 0x3ea   : > { %1485 = vst.msk [vmem:[#allocation6 + $0x38] sm:$0xff] %vm4425_vm7, %v2511_v9  ;;  %vm4426_vm6 = vmmov %vm4420_vm4  ;;  %v1682_v3 = vmul.f32 -1.0, %v1666_v40  ;;  %vm4439_vm7 = vnez %v4219_v60  ;;  %v1704_v35 = vld [vmem:[#allocation6] sm:$0xff]  ;;  %v1889_v15 = vmax.f32 %v3571_v1, 1.0 }
 0x3eb   : > { %1486 = vst.msk [vmem:[#allocation6 + $0x40] sm:$0xff] %vm4426_vm6, %v2511_v9  ;;  %vm4427_vm5 = vmmov %vm4420_vm4  ;;  %v1681_v17 = vmul.f32 -1.0, %v1665_v27  ;;  %v1643_v43 = vpop.permute.xlu1 %1642  ;;  %vm4435_vm6 = vnez %v4434_v21  ;;  %2450 = vrcp.f32 %v1886_v8  ;;  %v1705_v6 = vld [vmem:[#allocation6 + $0x8] sm:$0xff]  ;;  %v1891_v21 = vmax.f32 %v3595_v10, 1.0 }
 0x3ec   : > { %1487 = vst.msk [vmem:[#allocation6 + $0x48] sm:$0xff] %vm4427_vm5, %v2511_v9  ;;  %vm4428_vm2 = vmmov %vm4420_vm4  ;;  %1750 = vadd.xlane.f32.xlu0 %v1727_v49  ;;  %v1728_v63 = vsel %vm4435_vm6, %v1696_v34, 0.0  ;;  %v1668_v22 = vsub.f32 %v3001_v38, %v1643_v43  ;;  %v1699_v28 = vmax.f32 %v1682_v3, %v3795_v19  ;;  %v1706_v49 = vld [vmem:[#allocation6 + $0x10] sm:$0xff]  ;;  %v1893_v10 = vmax.f32 %v3631_v57, 1.0 }
 0x3ed   : > { %1488 = vst.msk [vmem:[#allocation6 + $0x50] sm:$0xff] %vm4428_vm2, %v2511_v9  ;;  %vm4429_vm12 = vmmov %vm4428_vm2  ;;  %1752 = vadd.xlane.f32.xlu1 %v1728_v63  ;;  %v1698_v26 = vmax.f32 %v1681_v17, %v3795_v19 }
 0x3ee   : > { %1489 = vst.msk [vmem:[#allocation6 + $0x58] sm:$0xff] %vm4429_vm12, %v2511_v9  ;;  %vm4430_vm11 = vmmov %vm4428_vm2  ;;  %v1684_v23 = vmul.f32 -1.0, %v1668_v22  ;;  %v1731_v38 = vsel %vm4438_vm9, %v1699_v28, 0.0  ;;  %v1708_v34 = vld [vmem:[#allocation6 + $0x20] sm:$0xff]  ;;  %v1892_v28 = vmax.f32 %v3649_v42, 1.0  ;;  %vm4454_vm9 = vnez %v4353_v29 }
 0x3ef   : > { %1490 = vst.msk [vmem:[#allocation6 + $0x60] sm:$0xff] %vm4430_vm11, %v2511_v9  ;;  %vm4431_vm4 = vmmov %vm4428_vm2  ;;  %v1730_v20 = vsel %vm4437_vm8, %v1698_v26, 0.0  ;;  %v1709_v1 = vld [vmem:[#allocation6 + $0x28] sm:$0xff] }
 0x3f0   : > { %1491 = vst.msk [vmem:[#allocation6 + $0x68] sm:$0xff] %vm4431_vm4, %v2511_v9  ;;  %vm4432_vm13 = vmmov %vm4428_vm2  ;;  %v1701_v7 = vmax.f32 %v1684_v23, %v3795_v19 }
 0x3f1   : > { %1492 = vst.msk [vmem:[#allocation6 + $0x70] sm:$0xff] %vm4432_vm13, %v2511_v9  ;;  %vm4433_vm14 = vmmov %vm4428_vm2  ;;  %vm4436_vm2 = vnez %v4202_v36  ;;  %v1638_v14 = vpop.permute.xlu0 %1637  ;;  %1756 = vadd.xlane.f32.xlu1 %v1730_v20  ;;  %v1711_v42 = vld [vmem:[#allocation6 + $0x38] sm:$0xff]  ;;  %vm4448_vm13 = vnez %v4347_v2 }
 0x3f2   : > { %1493 = vst.msk [vmem:[#allocation6 + $0x78] sm:$0xff] %vm4433_vm14, %v2511_v9  ;;  %v1729_v58 = vsel %vm4436_vm2, %v1697_v48, 0.0  ;;  %v1667_v61 = vsub.f32 %v2993_v37, %v1638_v14  ;;  %v1733_v25 = vsel %vm4439_vm7, %v1701_v7, 0.0  ;;  %v1890_v48 = vmax.f32 %v3625_v55, 1.0  ;;  %v1710_v55 = vld [vmem:[#allocation6 + $0x30] sm:$0xff] }
 0x3f3   : > { %1754 = vadd.xlane.f32.xlu0 %v1729_v58  ;;  %v1653_v32 = vpop.permute.xlu1 %1652  ;;  %vm4452_vm2 = vnez %v4344_v18  ;;  %v1896_v18 = vmax.f32 %v3743_v31, 1.0 }
 0x3f4   : > { %v1683_v36 = vmul.f32 -1.0, %v1667_v61  ;;  %v1670_v46 = vsub.f32 %v2997_v54, %v1653_v32  ;;  %v1714_v8 = vld [vmem:[#allocation6 + $0x50] sm:$0xff] }
 0x3f5   : > { %v2451_v26 = vpop.eup %2450 }
 0x3f6   : > { %v1700_v12 = vmax.f32 %v1683_v36, %v3795_v19  ;;  %v1686_v52 = vmul.f32 -1.0, %v1670_v46  ;;  %v1648_v11 = vpop.permute.xlu0 %1647 }
 0x3f7   : > { %1758 = vadd.xlane.f32.xlu0 %v1731_v38  ;;  %v1669_v50 = vsub.f32 %v2989_v30, %v1648_v11  ;;  %v1885_v30 = vmax.f32 %v3556_v39, 1.0  ;;  %v1707_v39 = vld [vmem:[#allocation6 + $0x18] sm:$0xff] }
 0x3f8   : > { %v1732_v37 = vsel %vm2947_vm0, %v1700_v12, 0.0  ;;  %v1703_v59 = vmax.f32 %v1686_v52, %v3795_v19  ;;  %vm4441_vm0 = vmmov %vm4431_vm4  ;;  %v1712_v52 = vld [vmem:[#allocation6 + $0x40] sm:$0xff] }
 0x3f9   : > { %1760 = vadd.xlane.f32.xlu1 %v1732_v37  ;;  %v1685_v44 = vmul.f32 -1.0, %v1669_v50  ;;  %2452 = vrcp.f32 %v1885_v30  ;;  %vm4443_vm5 = vmmov %vm4441_vm0 }
 0x3fa   : > { %v1735_v54 = vsel %vm2961_vm10, %v1703_v59, 0.0  ;;  %vm4440_vm10 = vmmov %vm4431_vm4  ;;  %2454 = vrcp.f32 %v1887_v4  ;;  %v1895_v59 = vmax.f32 %v3665_v51, 1.0  ;;  %v1897_v4 = vmax.f32 %v3729_v5, 1.0 }
 0x3fb   : > { %1762 = vadd.xlane.f32.xlu0 %v1733_v25  ;;  %v1702_v40 = vmax.f32 %v1685_v44, %v3795_v19  ;;  %v1888_v19 = vmax.f32 %v3581_v56, 1.0  ;;  %vm4444_vm12 = vmmov %vm4441_vm0 }
 0x3fc   : > { %vm4445_vm11 = vmmov %vm4441_vm0 }
 0x3fd   : > { %v1734_v60 = vsel %vm2967_vm3, %v1702_v40, 0.0  ;;  %2456 = vrcp.f32 %v1888_v19  ;;  %vm4442_vm3 = vmmov %vm4441_vm0  ;;  %v1713_v40 = vld [vmem:[#allocation6 + $0x48] sm:$0xff] }
 0x3fe   : > { %1764 = vadd.xlane.f32.xlu1 %v1734_v60  ;;  %2458 = vrcp.f32 %v1889_v15  ;;  %vm4446_vm4 = vmmov %vm4441_vm0 }
 0x3ff   : > { %1766 = vadd.xlane.f32.xlu0 %v1735_v54  ;;  %2460 = vrcp.f32 %v1890_v48  ;;  %vm4449_vm14 = vmmov %vm4441_vm0  ;;  %v1717_v48 = vld [vmem:[#allocation6 + $0x68] sm:$0xff] }
 0x400   : > { %2462 = vrcp.f32 %v1891_v21  ;;  %vm4450_vm6 = vmmov %vm4441_vm0  ;;  %v1716_v21 = vld [vmem:[#allocation6 + $0x60] sm:$0xff] }
 0x401   : > { %2464 = vrcp.f32 %v1892_v28  ;;  %vm4453_vm8 = vmmov %vm4441_vm0 }
 0x402   : > { %2466 = vrcp.f32 %v1893_v10  ;;  %vm4455_vm7 = vmmov %vm4441_vm0 }
 0x403   : > { %v2453_v14 = vpop.eup %2452  ;;  %2468 = vrcp.f32 %v1894_v45  ;;  %v4473_v45 = vld [vmem:[#allocation58_spill] sm:$0xff] }
 0x404   : > { %v2455_v12 = vpop.eup %2454  ;;  %2470 = vrcp.f32 %v1895_v59 }
 0x405   : > { %2472 = vrcp.f32 %v1897_v4  ;;  %v4485_v4 = vld [vmem:[#allocation63_spill] sm:$0xff] }
 0x406   : > { %2474 = vrcp.f32 %v1896_v18  ;;  %v4489_v18 = vld [vmem:[#allocation64_spill] sm:$0xff] }
 0x407   : > { %v2457_v37 = vpop.eup %2456 }
 0x408   : > { %v2459_v2 = vpop.eup %2458 }
 0x469   : > { %v1737_v47 = vpop.xlane.xlu0 %1736 }
 0x46a   : > { %v1768_v0 = vadd.f32 %v1737_v47, %v1704_v35 }
 0x46c   : > { %1785 = vst.msk [vmem:[#allocation6] sm:$0xff] %vm4440_vm10, %v1768_v0  ;;  %v2461_v0 = vpop.eup %2460  ;;  %vm4456_vm10 = vmmov %vm4441_vm0 }
 0x46d   : > { %v1741_v9 = vpop.xlane.xlu0 %1740  ;;  %v1739_v16 = vpop.xlane.xlu1 %1738 }
 0x46e   : > { %v1770_v3 = vadd.f32 %v1741_v9, %v1706_v49  ;;  %v1769_v27 = vadd.f32 %v1739_v16, %v1705_v6  ;;  %v1715_v9 = vld [vmem:[#allocation6 + $0x58] sm:$0xff]  ;;  %v2463_v29 = vpop.eup %2462 }
 0x46f   : > { %v2465_v31 = vpop.eup %2464 }
 0x470   : > { %1787 = vst.msk [vmem:[#allocation6 + $0x10] sm:$0xff] %vm4441_vm0, %v1770_v3 }
 0x471   : > { %1786 = vst.msk [vmem:[#allocation6 + $0x8] sm:$0xff] %vm4442_vm3, %v1769_v27  ;;  %v1743_v56 = vpop.xlane.xlu0 %1742  ;;  %v1745_v17 = vpop.xlane.xlu1 %1744  ;;  %vm4457_vm3 = vnez %v4350_v24 }
 0x472   : > { %v1771_v43 = vadd.f32 %v1743_v56, %v1707_v39  ;;  %v1772_v22 = vadd.f32 %v1745_v17, %v1708_v34  ;;  %v1899_v56 = vmax.f32 %v3753_v41, 1.0  ;;  %v4460_v17 = vld [vmem:[#allocation57_spill] sm:$0xff] }
 0x473   : > { %v1868_v63 = vld [vmem:[#allocation6] sm:$0xff] }
 0x474   : > { %v1901_v58 = vmul.f32 %v2449_v33, %v1868_v63  ;;  %1788 = vst.msk [vmem:[#allocation6 + $0x18] sm:$0xff] %vm4443_vm5, %v1771_v43  ;;  %vm4458_vm5 = vmmov %vm4441_vm0  ;;  %v2467_v63 = vpop.eup %2466  ;;  %2476 = vrcp.f32 %v1899_v56 }
 0x475   : > { %1789 = vst.msk [vmem:[#allocation6 + $0x20] sm:$0xff] %vm4444_vm12, %v1772_v22  ;;  %v1747_v23 = vpop.xlane.xlu0 %1746  ;;  %v1749_v7 = vpop.xlane.xlu1 %1748  ;;  %vm4459_vm12 = vmmov %vm4441_vm0 }
 0x476   : > { %v1932_v20 = vsel %vm3545_vm1, %v1901_v58, 0.0  ;;  %v1773_v61 = vadd.f32 %v1747_v23, %v1709_v1  ;;  %v1774_v46 = vadd.f32 %v1749_v7, %v1710_v55  ;;  %vm4447_vm1 = vmmov %vm4441_vm0  ;;  %v2469_v23 = vpop.eup %2468 }
 0x477   : > { %1948 = vst.msk [vmem:[%s4017_s5] sm:$0xff] %vm4445_vm11, %v1932_v20  ;;  %v1870_v38 = vld [vmem:[#allocation6 + $0x10] sm:$0xff]  ;;  %vm4461_vm11 = vnez %v4460_v17 }
 0x478   : > { %v1869_v36 = vld [vmem:[#allocation6 + $0x8] sm:$0xff]  ;;  %v1905_v32 = vmul.f32 %v2451_v26, %v1870_v38  ;;  %1790 = vst.msk [vmem:[#allocation6 + $0x28] sm:$0xff] %vm4446_vm4, %v1773_v61  ;;  %vm4462_vm4 = vmmov %vm4441_vm0  ;;  %v4467_v61 = vld [vmem:[#allocation65_spill] sm:$0xff] }
 0x479   : > { %v1903_v25 = vmul.f32 %v2453_v14, %v1869_v36  ;;  %v1751_v57 = vpop.xlane.xlu0 %1750  ;;  %1791 = vst.msk [vmem:[#allocation6 + $0x30] sm:$0xff] %vm4447_vm1, %v1774_v46  ;;  %vm4463_vm1 = vmmov %vm4441_vm0  ;;  %v4464_v26 = vld [vmem:[#allocation56_spill] sm:$0xff]  ;;  %v1898_v10 = vmax.f32 %v4467_v61, 1.0  ;;  %v4468_v38 = vld [vmem:[#allocation59_spill] sm:$0xff] }
 0x47a   : > { %v1934_v11 = vsel %vm3534_vm15, %v1905_v32, 0.0  ;;  %v1775_v50 = vadd.f32 %v1751_v57, %v1711_v42  ;;  %v1753_v54 = vpop.xlane.xlu1 %1752  ;;  %vm4451_vm15 = vmmov %vm4441_vm0  ;;  %v1719_v36 = vld [vmem:[#allocation6 + $0x78] sm:$0xff]  ;;  %v2471_v32 = vpop.eup %2470 }
 0x47b   : > { %v1933_v44 = vsel %vm4448_vm13, %v1903_v25, 0.0  ;;  %1950 = vst.msk [vmem:[%s4017_s5 + $0x10] sm:$0xff] %vm4449_vm14, %v1934_v11  ;;  %v1871_v13 = vld [vmem:[#allocation6 + $0x18] sm:$0xff]  ;;  %v1776_v62 = vadd.f32 %v1753_v54, %v1712_v52  ;;  %vm4465_vm13 = vnez %v4464_v26  ;;  %vm4466_vm14 = vmmov %vm4441_vm0  ;;  %2478 = vrcp.f32 %v1898_v10  ;;  %v4476_v11 = vld [vmem:[#allocation61_spill] sm:$0xff] }
 0x47c   : > { %1949 = vst.msk [vmem:[%s4017_s5 + $0x8] sm:$0xff] %vm4450_vm6, %v1933_v44  ;;  %v1872_v53 = vld [vmem:[#allocation6 + $0x20] sm:$0xff]  ;;  %v1907_v60 = vmul.f32 %v2455_v12, %v1871_v13  ;;  %vm4469_vm6 = vnez %v4468_v38  ;;  %v1718_v44 = vld [vmem:[#allocation6 + $0x70] sm:$0xff]  ;;  %v2473_v13 = vpop.eup %2472 }
 0x47d   : > { %1792 = vst.msk [vmem:[#allocation6 + $0x38] sm:$0xff] %vm4451_vm15, %v1775_v50  ;;  %v1909_v51 = vmul.f32 %v2457_v37, %v1872_v53  ;;  %vm4470_vm15 = vmmov %vm4441_vm0  ;;  %v2475_v54 = vpop.eup %2474 }
 0x47e   : > { %v1935_v30 = vsel %vm4452_vm2, %v1907_v60, 0.0  ;;  %1793 = vst.msk [vmem:[#allocation6 + $0x40] sm:$0xff] %vm4453_vm8, %v1776_v62  ;;  %v1757_v6 = vpop.xlane.xlu1 %1756  ;;  %vm4471_vm2 = vmmov %vm4441_vm0 }
 0x47f   : > { %v1936_v49 = vsel %vm4454_vm9, %v1909_v51, 0.0  ;;  %1951 = vst.msk [vmem:[%s4017_s5 + $0x18] sm:$0xff] %vm4455_vm7, %v1935_v30  ;;  %v1873_v19 = vld [vmem:[#allocation6 + $0x28] sm:$0xff]  ;;  %v1778_v5 = vadd.f32 %v1757_v6, %v1714_v8  ;;  %vm4472_vm8 = vmmov %vm4441_vm0  ;;  %vm4474_vm9 = vnez %v4473_v45  ;;  %v2477_v30 = vpop.eup %2476 }
 0x480   : > { %v1755_v35 = vpop.xlane.xlu0 %1754  ;;  %1952 = vst.msk [vmem:[%s4017_s5 + $0x20] sm:$0xff] %vm4456_vm10, %v1936_v49  ;;  %v1911_v16 = vmul.f32 %v2459_v2, %v1873_v19  ;;  %v1874_v3 = vld [vmem:[#allocation6 + $0x30] sm:$0xff]  ;;  %vm4475_vm7 = vmmov %vm4441_vm0  ;;  %vm4477_vm10 = vnez %v4476_v11 }
 0x481   : > { %v1777_v47 = vadd.f32 %v1755_v35, %v1713_v40  ;;  %v1913_v27 = vmul.f32 %v2461_v0, %v1874_v3  ;;  %1795 = vst.msk [vmem:[#allocation6 + $0x50] sm:$0xff] %vm4458_vm5, %v1778_v5  ;;  %v4479_v40 = vld [vmem:[#allocation60_spill] sm:$0xff]  ;;  %v4492_v3 = vld [vmem:[#allocation66_spill] sm:$0xff] }
 0x482   : > { %v1937_v39 = vsel %vm4457_vm3, %v1911_v16, 0.0  ;;  %vm4478_vm3 = vmmov %vm4441_vm0  ;;  %vm4480_vm5 = vnez %v4479_v40 }
 0x483   : > { %1794 = vst.msk [vmem:[#allocation6 + $0x48] sm:$0xff] %vm4441_vm0, %v1777_v47  ;;  %v1938_v43 = vsel %vm4461_vm11, %v1913_v27, 0.0  ;;  %vm4482_vm11 = vmmov %vm4441_vm0  ;;  %v4483_v47 = vld [vmem:[#allocation62_spill] sm:$0xff] }
 0x484   : > { %v1759_v15 = vpop.xlane.xlu0 %1758  ;;  %1953 = vst.msk [vmem:[%s4017_s5 + $0x28] sm:$0xff] %vm4459_vm12, %v1937_v39  ;;  %v1875_v33 = vld [vmem:[#allocation6 + $0x38] sm:$0xff]  ;;  %vm4481_vm12 = vmmov %vm4441_vm0 }
 0x485   : > { %v1779_v34 = vadd.f32 %v1759_v15, %v1715_v9  ;;  %v1915_v24 = vmul.f32 %v2463_v29, %v1875_v33  ;;  %1954 = vst.msk [vmem:[%s4017_s5 + $0x30] sm:$0xff] %vm4463_vm1, %v1938_v43  ;;  %v1876_v22 = vld [vmem:[#allocation6 + $0x40] sm:$0xff]  ;;  %vm4486_vm1 = vnez %v4485_v4  ;;  %v2479_v9 = vpop.eup %2478 }
 0x486   : > { %v1917_v58 = vmul.f32 %v2465_v31, %v1876_v22  ;;  %v1761_v41 = vpop.xlane.xlu1 %1760 }
 0x487   : > { %1796 = vst.msk [vmem:[#allocation6 + $0x58] sm:$0xff] %vm4462_vm4, %v1779_v34  ;;  %v1939_v28 = vsel %vm4465_vm13, %v1915_v24, 0.0  ;;  %v1780_v20 = vadd.f32 %v1761_v41, %v1716_v21  ;;  %vm4484_vm4 = vnez %v4483_v47  ;;  %vm4487_vm13 = vmmov %vm4441_vm0 }
 0x488   : > { %v1763_v1 = vpop.xlane.xlu0 %1762  ;;  %1955 = vst.msk [vmem:[%s4017_s5 + $0x38] sm:$0xff] %vm4466_vm14, %v1939_v28  ;;  %v1940_v7 = vsel %vm4469_vm6, %v1917_v58, 0.0  ;;  %v1878_v46 = vld [vmem:[#allocation6 + $0x50] sm:$0xff]  ;;  %vm4488_vm14 = vmmov %vm4441_vm0  ;;  %vm4490_vm6 = vnez %v4489_v18 }
 0x489   : > { %v1781_v55 = vadd.f32 %v1763_v1, %v1717_v48  ;;  %1956 = vst.msk [vmem:[%s4017_s5 + $0x40] sm:$0xff] %vm4471_vm2, %v1940_v7  ;;  %v1921_v12 = vmul.f32 %v2469_v23, %v1878_v46  ;;  %vm4493_vm2 = vnez %v4492_v3 }
 0x48a   : > { %v1877_v14 = vld [vmem:[#allocation6 + $0x48] sm:$0xff]  ;;  %1797 = vst.msk [vmem:[#allocation6 + $0x60] sm:$0xff] %vm4472_vm8, %v1780_v20  ;;  %vm4494_vm8 = vmmov %vm4441_vm0 }
 0x48b   : > { %v1919_v42 = vmul.f32 %v2467_v63, %v1877_v14  ;;  %1798 = vst.msk [vmem:[#allocation6 + $0x68] sm:$0xff] %vm4470_vm15, %v1781_v55  ;;  %v1942_v50 = vsel %vm4477_vm10, %v1921_v12, 0.0  ;;  %v1765_v60 = vpop.xlane.xlu1 %1764  ;;  %vm4491_vm15 = vmmov %vm4441_vm0 }
 0x48c   : > { %v1767_v52 = vpop.xlane.xlu0 %1766  ;;  %1958 = vst.msk [vmem:[%s4017_s5 + $0x50] sm:$0xff] %vm4441_vm0, %v1942_v50  ;;  %v1782_v62 = vadd.f32 %v1765_v60, %v1718_v44 }
 0x48d   : > { %v1941_v25 = vsel %vm4474_vm9, %v1919_v42, 0.0  ;;  %v1783_v37 = vadd.f32 %v1767_v52, %v1719_v36 }
 0x48e   : > { %1957 = vst.msk [vmem:[%s4017_s5 + $0x48] sm:$0xff] %vm4475_vm7, %v1941_v25  ;;  %v1879_v57 = vld [vmem:[#allocation6 + $0x58] sm:$0xff] }
 0x48f   : > { %v1923_v59 = vmul.f32 %v2471_v32, %v1879_v57  ;;  %1800 = vst.msk [vmem:[#allocation6 + $0x78] sm:$0xff] %vm4478_vm3, %v1783_v37 }
 0x490   : > { %1799 = vst.msk [vmem:[#allocation6 + $0x70] sm:$0xff] %vm4482_vm11, %v1782_v62 }
 0x491   : > { %v1943_v53 = vsel %vm4480_vm5, %v1923_v59, 0.0  ;;  %v1880_v51 = vld [vmem:[#allocation6 + $0x60] sm:$0xff] }
 0x492   : > { %1959 = vst.msk [vmem:[%s4017_s5 + $0x58] sm:$0xff] %vm4481_vm12, %v1943_v53  ;;  %v1881_v2 = vld [vmem:[#allocation6 + $0x68] sm:$0xff]  ;;  %v1925_v35 = vmul.f32 %v2475_v54, %v1880_v51 }
 0x493   : > { %v1927_v8 = vmul.f32 %v2473_v13, %v1881_v2 }
 0x494   : > { %v1944_v49 = vsel %vm4486_vm1, %v1925_v35, 0.0 }
 0x495   : > { %v1945_v0 = vsel %vm4484_vm4, %v1927_v8, 0.0  ;;  %1960 = vst.msk [vmem:[%s4017_s5 + $0x60] sm:$0xff] %vm4488_vm14, %v1944_v49 }
 0x496   : > { %1961 = vst.msk [vmem:[%s4017_s5 + $0x68] sm:$0xff] %vm4487_vm13, %v1945_v0  ;;  %v1883_v19 = vld [vmem:[#allocation6 + $0x78] sm:$0xff] }
 0x497   : > { %v1931_v6 = vmul.f32 %v2477_v30, %v1883_v19  ;;  %v1882_v5 = vld [vmem:[#allocation6 + $0x70] sm:$0xff] }
 0x498   : > { %v1929_v29 = vmul.f32 %v2479_v9, %v1882_v5 }
 0x499   : > { %v1947_v16 = vsel %vm4490_vm6, %v1931_v6, 0.0 }
 0x49a   : > { %1963 = vst.msk [vmem:[%s4017_s5 + $0x78] sm:$0xff] %vm4491_vm15, %v1947_v16  ;;  %v1946_v15 = vsel %vm4493_vm2, %v1929_v29, 0.0 }
 0x49b   : > { %1962 = vst.msk [vmem:[%s4017_s5 + $0x70] sm:$0xff] %vm4494_vm8, %v1946_v15 }
 0x49c PF: > { %s18_s25 = sadd.s32 1, %s2502_s25   ;;  %s4495_s23 = smov %s2498_s24 }
 0x49d   : > { %p15_p7 = scmp.ge.s32.totalorder %s18_s25, 4   ;;  %s4496_s24 = smov %s4498_s4 }
 0x49f   :  { %17 = sbr.rel (!%p15_p7) target bundleno = 2 (0x2), region = 111 }

// kernel: _device.5
= control target key start
LH: loop header
LB: loop body
LE: loop exit
PB: predicated region body
PF: predicated region fallthrough
CT: control target
= control target key end

     0   :  { %s4026_s0 = inlined_call_operand.vmem [shape: bf16[128,128], index: 0, kind: input, shape index: {}, may-alias: {0,1}]   ;;  %s4027_s1 = inlined_call_operand.vmem [shape: bf16[128,128], index: 1, kind: input, shape index: {}, may-alias: {0,1}]   ;;  %s4028_s2 = inlined_call_operand.vmem [shape: f32[128,1], index: 2, kind: input, shape index: {}]   ;;  %s4029_s3 = inlined_call_operand.vmem [shape: f32[1,128], index: 3, kind: input, shape index: {}]   ;;  %s4030_s4 = inlined_call_operand.<no memory space> [shape: f32[1,1], index: 4, kind: input, shape index: {}]   ;;  %s4031_s5 = inlined_call_operand.vmem [shape: f32[128,1], index: 5, kind: output, shape index: {0}]   ;;  %s4032_s6 = inlined_call_operand.hbm [shape: f32[128,1], index: 6, kind: output, shape index: {1}]  }
   0x1   :  { %12 = sst [smem:[#allocation7]] %s4030_s4 }
   0x2   :  { %13 = vsyncpa [#allocation9], 0  ;;  %s2583_s23 = smov 0   ;;  %s2585_s24 = smov 0  }
   0x3   :  { %s2587_s25 = smov 0  }
   0x4 LB: > { %s2176_s4 = sadd.s32 4294967295, %s2532_s25   ;;  %s34_s26 = sadd.s32 1, %s2528_s24  ;;  %s2532_s25 = sphi %s2587_s25, %s19_s25   ;;  %s2528_s24 = sphi %s2585_s24, %s4511_s24   ;;  %s2524_s23 = sphi %s2583_s23, %s4510_s23  }
   0x5   : > { %p36_p0 = scmp.ge.s32.totalorder %s34_s26, 2  ;;  %p2182_p1 = scmp.ge.s32.totalorder %s2532_s25, 1 }
   0x6   : > { %p267_p2 = scmp.lt.s32.totalorder %s2532_s25, 3 }
   0x7   : > { %s4513_s26 = smov (%p36_p0, %s34_s26), 0 }
   0x8   : > { %p268_p3 = pnand %p2182_p1, %p267_p2 }
   0xa   : > { %271 = sbr.rel (%p268_p3) target bundleno = 1209 (0x4b9), region = 40 }
  0x11   : > { %v2332_v0 = vld [vmem:[%s4027_s1] sm:$0xff]   ;;  %v2333_v1 = vld [vmem:[%s4027_s1 + $0x8] sm:$0xff]   ;;  %v2534_v2 = vmov 0   ;;  %v2334_v3 = vld [vmem:[%s4027_s1 + $0x10] sm:$0xff]   ;;  %v598_v33 = vlaneseq  ;;  %v4173_v45 = vmov 0  ;;  %v4175_v47 = vmov 0 }
  0x12   : > { %2331 = vset.pattern.permute.xlu1 %v2534_v2  ;;  %2330 = vset.pattern.permute.xlu0 %v2534_v2  ;;  %v2340_v4 = vld [vmem:[%s4026_s0] sm:$0xff]   ;;  %v2335_v6 = vld [vmem:[%s4027_s1 + $0x18] sm:$0xff]   ;;  %v2627_v7 = vld [vmem:[%s4028_s2 + $0x10] sm:$0xff]  ;;  %v4177_v49 = vmov 0  ;;  %v4179_v51 = vmov 0  ;;  %v4182_v53 = vmov 0 }
  0x13   : > { %2241 = vmatprep.subr.bf16.mxu0 %v2332_v0  ;;  %2273 = vmatprep.subr.bf16.mxu1 %v2332_v0  ;;  %v2341_v5 = vld [vmem:[%s4026_s0 + $0x20] sm:$0xff]   ;;  %4157 = vst [vmem:[#allocation11_spill] sm:$0xff] %v2627_v7  ;;  %v2639_v9 = vld [vmem:[%s4028_s2 + $0x18] sm:$0xff]  ;;  %v2644_v10 = vld [vmem:[%s4028_s2 + $0x8] sm:$0xff]  ;;  %v2753_v35 = vshrl.u32 %v598_v33, 7  ;;  %v2760_v40 = vand.u32 127, %v598_v33 }
  0x14   : > { %2242 = vmatpush3.bf16.xpose.msra.mxu0 %v2332_v0  ;;  %2281 = vmatpush3.bf16.xpose.msra.mxu1 %v2332_v0  ;;  %v2632_v8 = vld [vmem:[%s4028_s2] sm:$0xff]  ;;  %4159 = vst [vmem:[#allocation13_spill] sm:$0xff] %v2639_v9  ;;  %4160 = vst [vmem:[#allocation14_spill] sm:$0xff] %v2644_v10  ;;  %v2651_v11 = vld [vmem:[%s4028_s2 + $0x28] sm:$0xff]  ;;  %v4185_v55 = vmov 0  ;;  %v4187_v57 = vmov 0 }
  0x15   : > { %2243 = vmatprep.subr.bf16.mxu0 %v2333_v1  ;;  %2274 = vmatprep.subr.bf16.mxu1 %v2333_v1  ;;  %4158 = vst [vmem:[#allocation12_spill] sm:$0xff] %v2632_v8  ;;  %4161 = vst [vmem:[#allocation15_spill] sm:$0xff] %v2651_v11  ;;  %v2656_v12 = vld [vmem:[%s4028_s2 + $0x20] sm:$0xff]  ;;  %v2666_v14 = vld [vmem:[%s4028_s2 + $0x38] sm:$0xff]  ;;  %v657_v36 = vsub.s32 0, %v2753_v35  ;;  %v601_v39 = vadd.s32 16, %v2753_v35  ;;  %vm637_vm3 = vcmp.ne.s32.totalorder %v2753_v35, %v2760_v40 }
  0x16   : > { %2257 = vmatprep.mubr.bf16.mxu0 %v2340_v4  ;;  %2265 = vmatprep.mubr.bf16.mxu1 %v2341_v5  ;;  %4162 = vst [vmem:[#allocation16_spill] sm:$0xff] %v2656_v12  ;;  %v2336_v13 = vld [vmem:[%s4027_s1 + $0x20] sm:$0xff]   ;;  %4163 = vst [vmem:[#allocation17_spill] sm:$0xff] %v2666_v14  ;;  %v2671_v15 = vld [vmem:[%s4028_s2 + $0x30] sm:$0xff]  ;;  %v602_v41 = vadd.s32 24, %v2753_v35  ;;  %v600_v43 = vadd.s32 8, %v2753_v35 }
  0x17   : > { %688 = vperm.xlu1 %2331, %v2627_v7   ;;  %678 = vperm.xlu0 %2330, %v2632_v8   ;;  %4164 = vst [vmem:[#allocation18_spill] sm:$0xff] %v2671_v15  ;;  %v2678_v16 = vld [vmem:[%s4028_s2 + $0x48] sm:$0xff]  ;;  %v2683_v17 = vld [vmem:[%s4028_s2 + $0x40] sm:$0xff]  ;;  %v2693_v19 = vld [vmem:[%s4028_s2 + $0x58] sm:$0xff]  ;;  %vm639_vm2 = vcmp.ne.s32.totalorder %v601_v39, %v2760_v40  ;;  %v604_v44 = vadd.s32 40, %v2753_v35  ;;  %v603_v50 = vadd.s32 32, %v2753_v35 }
  0x18   : > { %4165 = vst [vmem:[#allocation19_spill] sm:$0xff] %v2678_v16  ;;  %4166 = vst [vmem:[#allocation20_spill] sm:$0xff] %v2683_v17  ;;  %v2337_v18 = vld [vmem:[%s4027_s1 + $0x28] sm:$0xff]   ;;  %v2698_v20 = vld [vmem:[%s4028_s2 + $0x50] sm:$0xff]  ;;  %vm640_vm4 = vcmp.ne.s32.totalorder %v602_v41, %v2760_v40  ;;  %vm638_vm10 = vcmp.ne.s32.totalorder %v600_v43, %v2760_v40  ;;  %v606_v52 = vadd.s32 56, %v2753_v35  ;;  %v605_v58 = vadd.s32 48, %v2753_v35 }
  0x19   : > { %4167 = vst [vmem:[#allocation21_spill] sm:$0xff] %v2693_v19  ;;  %4168 = vst [vmem:[#allocation22_spill] sm:$0xff] %v2698_v20  ;;  %v2705_v21 = vld [vmem:[%s4028_s2 + $0x68] sm:$0xff]  ;;  %v2710_v22 = vld [vmem:[%s4028_s2 + $0x60] sm:$0xff]  ;;  %vm642_vm12 = vcmp.ne.s32.totalorder %v604_v44, %v2760_v40  ;;  %v4189_v59 = vmov 0  ;;  %v608_v60 = vadd.s32 72, %v2753_v35 }
  0x1a   : > { %4169 = vst [vmem:[#allocation23_spill] sm:$0xff] %v2705_v21  ;;  %4170 = vst [vmem:[#allocation24_spill] sm:$0xff] %v2710_v22  ;;  %v2338_v23 = vld [vmem:[%s4027_s1 + $0x30] sm:$0xff]   ;;  %v2720_v24 = vld [vmem:[%s4028_s2 + $0x78] sm:$0xff]  ;;  %v4191_v61 = vmov 0  ;;  %v4193_v63 = vmov 0 }
  0x1b   : > { %693 = vperm.xlu1 %2331, %v2639_v9   ;;  %683 = vperm.xlu0 %2330, %v2644_v10   ;;  %4171 = vst [vmem:[#allocation25_spill] sm:$0xff] %v2720_v24  ;;  %v2725_v25 = vld [vmem:[%s4028_s2 + $0x70] sm:$0xff]  ;;  %v2339_v26 = vld [vmem:[%s4027_s1 + $0x38] sm:$0xff]   ;;  %v2342_v27 = vld [vmem:[%s4026_s0 + $0x8] sm:$0xff]   ;;  %v610_v4 = vadd.s32 88, %v2753_v35  ;;  %v4199_v5 = vmov 0 }
  0x1c   : > { %2244 = vmatpush3.bf16.xpose.msra.mxu0 %v2333_v1  ;;  %2282 = vmatpush3.bf16.xpose.msra.mxu1 %v2333_v1  ;;  %4172 = vst [vmem:[#allocation26_spill] sm:$0xff] %v2725_v25  ;;  %v2343_v28 = vld [vmem:[%s4026_s0 + $0x28] sm:$0xff]   ;;  %v2344_v29 = vld [vmem:[%s4026_s0 + $0x10] sm:$0xff]   ;;  %v2346_v31 = vld [vmem:[%s4026_s0 + $0x18] sm:$0xff]   ;;  %v4195_v1 = vmov 0  ;;  %v4213_v33 = vmov 0 }
  0x1d   : > { %2245 = vmatprep.subr.bf16.mxu0 %v2334_v3  ;;  %2275 = vmatprep.subr.bf16.mxu1 %v2334_v3  ;;  %v2345_v30 = vld [vmem:[%s4026_s0 + $0x30] sm:$0xff]   ;;  %v2347_v32 = vld [vmem:[%s4026_s0 + $0x38] sm:$0xff]   ;;  %v596_v34 = vld [vmem:[%s4029_s3] sm:$0x1]  ;;  %p794_p4 = scmp.eq.s32.totalorder %s2524_s23, 0  ;;  %v4217_v39 = vmov 0 }
  0x1e   : > { %vm653_vm0 = vcmp.ne.f32.partialorder %v596_v34, -1.0  ;;  %v2765_v42 = vrot.slane %v596_v34, %v657_v36  ;;  %v611_v34 = vadd.s32 96, %v2753_v35  ;;  %v4220_v43 = vmov 0 }
  0x1f   : > { %703 = vperm.xlu1 %2331, %v2651_v11   ;;  %698 = vperm.xlu0 %2330, %v2656_v12   ;;  %v654_v37 = vsel %vm653_vm0, 1, %v2534_v2  ;;  %v607_v2 = vadd.s32 64, %v2753_v35 }
  0x20   : > { %v2757_v38 = vrot.slane %v654_v37, %v657_v36  ;;  %v4215_v36 = vmov 0  ;;  %v614_v37 = vadd.s32 120, %v2753_v35 }
  0x22   : > { %vm659_vm1 = vcmp.eq.s32.totalorder %v2757_v38, 1 }
  0x23   : > { %713 = vperm.xlu1 %2331, %v2666_v14   ;;  %708 = vperm.xlu0 %2330, %v2671_v15   ;;  %vm2774_vm5 = vmand %vm639_vm2, %vm659_vm1 }
  0x24   : > { %2246 = vmatpush3.bf16.xpose.msra.mxu0 %v2334_v3  ;;  %2283 = vmatpush3.bf16.xpose.msra.mxu1 %v2334_v3  ;;  %v4174_v45 = vsel %vm2774_vm5, 4294967295, %v4173_v45  ;;  %vm2780_vm6 = vmand %vm637_vm3, %vm659_vm1  ;;  %vm641_vm3 = vcmp.ne.s32.totalorder %v603_v50, %v2760_v40  ;;  %v4197_v3 = vmov 0  ;;  %v4224_v50 = vmov 0 }
  0x25   : > { %2247 = vmatprep.subr.bf16.mxu0 %v2335_v6  ;;  %2276 = vmatprep.subr.bf16.mxu1 %v2335_v6  ;;  %v4176_v47 = vsel %vm2780_vm6, 4294967295, %v4175_v47  ;;  %vm2788_vm9 = vmand %vm640_vm4, %vm659_vm1 }
  0x26   : > { %v4178_v49 = vsel %vm2788_vm9, 4294967295, %v4177_v49  ;;  %vm2810_vm14 = vmand %vm638_vm10, %vm659_vm1 }
  0x27   : > { %723 = vperm.xlu1 %2331, %v2678_v16   ;;  %718 = vperm.xlu0 %2330, %v2683_v17   ;;  %v4186_v55 = vsel %vm2810_vm14, 4294967295, %v4185_v55  ;;  %vm2818_vm2 = vmand %vm642_vm12, %vm659_vm1 }
  0x28   : > { %v4188_v57 = vsel %vm2818_vm2, 4294967295, %v4187_v57  ;;  %vm2840_vm10 = vmand %vm641_vm3, %vm659_vm1 }
  0x29   : > { %v4194_v63 = vsel %vm2840_vm10, 4294967295, %v4193_v63 }
  0x2b   : > { %733 = vperm.xlu1 %2331, %v2693_v19   ;;  %728 = vperm.xlu0 %2330, %v2698_v20  }
  0x2c   : > { %2248 = vmatpush3.bf16.xpose.msra.mxu0 %v2335_v6  ;;  %2284 = vmatpush3.bf16.xpose.msra.mxu1 %v2335_v6 }
  0x2d   : > { %2249 = vmatprep.subr.bf16.mxu0 %v2336_v13  ;;  %2277 = vmatprep.subr.bf16.mxu1 %v2336_v13 }
  0x2f   : > { %743 = vperm.xlu1 %2331, %v2705_v21   ;;  %738 = vperm.xlu0 %2330, %v2710_v22  }
  0x33   : > { %753 = vperm.xlu1 %2331, %v2720_v24   ;;  %748 = vperm.xlu0 %2330, %v2725_v25  }
  0x34   : > { %2250 = vmatpush3.bf16.xpose.msra.mxu0 %v2336_v13  ;;  %2285 = vmatpush3.bf16.xpose.msra.mxu1 %v2336_v13  ;;  %v4202_v13 = vmov 0 }
  0x35   : > { %2251 = vmatprep.subr.bf16.mxu0 %v2337_v18  ;;  %2278 = vmatprep.subr.bf16.mxu1 %v2337_v18 }
  0x3c   : > { %2252 = vmatpush3.bf16.xpose.msra.mxu0 %v2337_v18  ;;  %2286 = vmatpush3.bf16.xpose.msra.mxu1 %v2337_v18 }
  0x3d   : > { %2253 = vmatprep.subr.bf16.mxu0 %v2338_v23  ;;  %2279 = vmatprep.subr.bf16.mxu1 %v2338_v23 }
  0x44   : > { %2254 = vmatpush3.bf16.xpose.msra.mxu0 %v2338_v23  ;;  %2287 = vmatpush3.bf16.xpose.msra.mxu1 %v2338_v23  ;;  %v4204_v23 = vmov 0 }
  0x45   : > { %2255 = vmatprep.subr.bf16.mxu0 %v2339_v26  ;;  %2280 = vmatprep.subr.bf16.mxu1 %v2339_v26 }
  0x4c   : > { %2256 = vmatpush3.bf16.xpose.msra.mxu0 %v2339_v26  ;;  %2288 = vmatpush3.bf16.xpose.msra.mxu1 %v2339_v26  ;;  %v609_v26 = vadd.s32 80, %v2753_v35 }
  0x53   : > { %2258 = vmatmul.mubr.bf16.vlgmr.msra.gmra.mrb[0].mxu0 %v2342_v27  ;;  %2266 = vmatmul.mubr.bf16.vlgmr.msra.gmra.mrb[0].mxu1 %v2343_v28  ;;  %v4206_v27 = vmov 0  ;;  %v612_v28 = vadd.s32 104, %v2753_v35 }
  0x54   : > { %2261 = vmatprep.mubr.bf16.mxu0 %v2344_v29  ;;  %2269 = vmatprep.mubr.bf16.mxu1 %v2345_v30  ;;  %v4208_v29 = vmov 0 }
  0x5b   : > { %2262 = vmatmul.mubr.bf16.gmra.mrb[4].mxu0 %v2346_v31  ;;  %2270 = vmatmul.mubr.bf16.gmra.mrb[4].mxu1 %v2347_v32  ;;  %v4211_v31 = vmov 0 }
  0x96   : > { %v689_v46 = vpop.permute.xlu1 %688  ;;  %v679_v48 = vpop.permute.xlu0 %678 }
  0x97   : > { %vm764_vm7 = vcmp.eq.f32.partialorder %v689_v46, %v2765_v42  ;;  %vm762_vm8 = vcmp.eq.f32.partialorder %v679_v48, %v2765_v42  ;;  %v4222_v46 = vmov 0  ;;  %v613_v48 = vadd.s32 112, %v2753_v35 }
  0x98   : > { %vm2796_vm11 = vmand %vm764_vm7, %vm2774_vm5  ;;  %vm644_vm7 = vcmp.ne.s32.totalorder %v606_v52, %v2760_v40  ;;  %v4226_v52 = vmov 0 }
  0x99   : > { %v4180_v51 = vsel %vm2796_vm11, 4294967295, %v4179_v51  ;;  %vm2804_vm13 = vmand %vm762_vm8, %vm2780_vm6  ;;  %vm646_vm11 = vcmp.ne.s32.totalorder %v608_v60, %v2760_v40  ;;  %v4232_v60 = vmov 0 }
  0x9a   : > { %4181 = vst [vmem:[#allocation27_spill] sm:$0xff] %v4180_v51  ;;  %v4183_v53 = vsel %vm2804_vm13, 4294967295, %v4182_v53  ;;  %v694_v54 = vpop.permute.xlu1 %693  ;;  %v684_v56 = vpop.permute.xlu0 %683  ;;  %vm2878_vm13 = vmand %vm646_vm11, %vm659_vm1 }
  0x9b   : > { %4184 = vst [vmem:[#allocation28_spill] sm:$0xff] %v4183_v53  ;;  %vm765_vm15 = vcmp.eq.f32.partialorder %v694_v54, %v2765_v42  ;;  %vm763_vm0 = vcmp.eq.f32.partialorder %v684_v56, %v2765_v42  ;;  %v4205_v23 = vsel %vm2878_vm13, 4294967295, %v4204_v23  ;;  %v4228_v56 = vmov 0 }
  0x9c   : > { %vm2826_vm4 = vmand %vm765_vm15, %vm2788_vm9 }
  0x9d   : > { %v4190_v59 = vsel %vm2826_vm4, 4294967295, %v4189_v59  ;;  %vm2834_vm8 = vmand %vm763_vm0, %vm2810_vm14  ;;  %vm643_vm0 = vcmp.ne.s32.totalorder %v605_v58, %v2760_v40  ;;  %v4230_v58 = vmov 0 }
  0x9e   : > { %v4192_v61 = vsel %vm2834_vm8, 4294967295, %v4191_v61  ;;  %v704_v62 = vpop.permute.xlu1 %703  ;;  %v699_v0 = vpop.permute.xlu0 %698  ;;  %vm2848_vm4 = vmand %vm644_vm7, %vm659_vm1 }
  0x9f   : > { %vm767_vm12 = vcmp.eq.f32.partialorder %v704_v62, %v2765_v42  ;;  %vm766_vm15 = vcmp.eq.f32.partialorder %v699_v0, %v2765_v42  ;;  %v4196_v1 = vsel %vm2848_vm4, 4294967295, %v4195_v1  ;;  %vm2870_vm8 = vmand %vm643_vm0, %vm659_vm1 }
  0xa0   : > { %vm2856_vm3 = vmand %vm767_vm12, %vm2818_vm2  ;;  %v4203_v13 = vsel %vm2870_vm8, 4294967295, %v4202_v13 }
  0xa1   : > { %v4198_v3 = vsel %vm2856_vm3, 4294967295, %v4197_v3  ;;  %vm2864_vm7 = vmand %vm766_vm15, %vm2840_vm10  ;;  %vm645_vm15 = vcmp.ne.s32.totalorder %v607_v2, %v2760_v40  ;;  %v4236_v2 = vmov 0 }
  0xa2   : > { %v4200_v5 = vsel %vm2864_vm7, 4294967295, %v4199_v5  ;;  %v714_v6 = vpop.permute.xlu1 %713  ;;  %v709_v18 = vpop.permute.xlu0 %708  ;;  %vm648_vm7 = vcmp.ne.s32.totalorder %v610_v4, %v2760_v40  ;;  %vm2900_vm10 = vmand %vm645_vm15, %vm659_vm1 }
  0xa3   : > { %4201 = vst [vmem:[#allocation29_spill] sm:$0xff] %v4200_v5  ;;  %vm769_vm12 = vcmp.eq.f32.partialorder %v714_v6, %v2765_v42  ;;  %vm768_vm3 = vcmp.eq.f32.partialorder %v709_v18, %v2765_v42  ;;  %v4212_v31 = vsel %vm2900_vm10, 4294967295, %v4211_v31 }
  0xa4   : > { %vm2886_vm0 = vmand %vm769_vm12, %vm2848_vm4 }
  0xa5   : > { %v4207_v27 = vsel %vm2886_vm0, 4294967295, %v4206_v27  ;;  %vm2894_vm11 = vmand %vm768_vm3, %vm2870_vm8  ;;  %vm647_vm3 = vcmp.ne.s32.totalorder %v609_v26, %v2760_v40 }
  0xa6   : > { %v4209_v29 = vsel %vm2894_vm11, 4294967295, %v4208_v29  ;;  %v724_v30 = vpop.permute.xlu1 %723  ;;  %v719_v32 = vpop.permute.xlu0 %718  ;;  %vm2908_vm4 = vmand %vm648_vm7, %vm659_vm1  ;;  %vm650_vm11 = vcmp.ne.s32.totalorder %v612_v28, %v2760_v40 }
  0xa7   : > { %4210 = vst [vmem:[#allocation30_spill] sm:$0xff] %v4209_v29  ;;  %vm771_vm12 = vcmp.eq.f32.partialorder %v724_v30, %v2765_v42  ;;  %vm770_vm0 = vcmp.eq.f32.partialorder %v719_v32, %v2765_v42  ;;  %v4214_v33 = vsel %vm2908_vm4, 4294967295, %v4213_v33  ;;  %vm2931_vm8 = vmand %vm647_vm3, %vm659_vm1 }
  0xa8   : > { %vm2917_vm15 = vmand %vm771_vm12, %vm2878_vm13  ;;  %v4221_v43 = vsel %vm2931_vm8, 4294967295, %v4220_v43 }
  0xa9   : > { %v4216_v36 = vsel %vm2917_vm15, 4294967295, %v4215_v36  ;;  %vm2925_vm7 = vmand %vm770_vm0, %vm2900_vm10  ;;  %vm649_vm0 = vcmp.ne.s32.totalorder %v611_v34, %v2760_v40 }
  0xaa   : > { %v4218_v39 = vsel %vm2925_vm7, 4294967295, %v4217_v39  ;;  %v734_v41 = vpop.permute.xlu1 %733  ;;  %v729_v44 = vpop.permute.xlu0 %728  ;;  %vm2939_vm13 = vmand %vm650_vm11, %vm659_vm1  ;;  %vm652_vm7 = vcmp.ne.s32.totalorder %v614_v37, %v2760_v40 }
  0xab   : > { %4219 = vst [vmem:[#allocation31_spill] sm:$0xff] %v4218_v39  ;;  %vm773_vm12 = vcmp.eq.f32.partialorder %v734_v41, %v2765_v42  ;;  %vm772_vm15 = vcmp.eq.f32.partialorder %v729_v44, %v2765_v42  ;;  %v4223_v46 = vsel %vm2939_vm13, 4294967295, %v4222_v46  ;;  %vm2960_vm11 = vmand %vm649_vm0, %vm659_vm1 }
  0xac   : > { %vm2947_vm3 = vmand %vm773_vm12, %vm2908_vm4  ;;  %v4229_v56 = vsel %vm2960_vm11, 4294967295, %v4228_v56 }
  0xad   : > { %v4225_v50 = vsel %vm2947_vm3, 4294967295, %v4224_v50  ;;  %vm2954_vm10 = vmand %vm772_vm15, %vm2931_vm8  ;;  %vm651_vm15 = vcmp.ne.s32.totalorder %v613_v48, %v2760_v40 }
  0xae   : > { %v4227_v52 = vsel %vm2954_vm10, 4294967295, %v4226_v52  ;;  %v744_v54 = vpop.permute.xlu1 %743  ;;  %v739_v35 = vpop.permute.xlu0 %738  ;;  %vm2968_vm4 = vmand %vm652_vm7, %vm659_vm1 }
  0xaf   : > { %vm775_vm12 = vcmp.eq.f32.partialorder %v744_v54, %v2765_v42  ;;  %vm774_vm3 = vcmp.eq.f32.partialorder %v739_v35, %v2765_v42  ;;  %v4231_v58 = vsel %vm2968_vm4, 4294967295, %v4230_v58  ;;  %vm2987_vm7 = vmand %vm651_vm15, %vm659_vm1  ;;  %vm800_vm1 = vcmask (%p794_p4), 7168  }
  0xb0   : > { %vm2975_vm10 = vmand %vm775_vm12, %vm2939_vm13  ;;  %v4237_v2 = vsel %vm2987_vm7, 4294967295, %v4236_v2 }
  0xb1   : > { %v4233_v60 = vsel %vm2975_vm10, 4294967295, %v4232_v60  ;;  %vm2981_vm0 = vmand %vm774_vm3, %vm2960_vm11 }
  0xb2   : > { %v754_v0 = vpop.permute.xlu1 %753  ;;  %v749_v40 = vpop.permute.xlu0 %748 }
  0xb3   : > { %vm777_vm8 = vcmp.eq.f32.partialorder %v754_v0, %v2765_v42  ;;  %vm776_vm12 = vcmp.eq.f32.partialorder %v749_v40, %v2765_v42 }
  0xb4   : > { %vm2995_vm10 = vmand %vm777_vm8, %vm2968_vm4 }
  0xb5   : > { %vm3001_vm3 = vmand %vm776_vm12, %vm2987_vm7 }
 0x126   : > { %v2259_v38 = vpop.f32.mrb[0].mxu0  ;;  %v2267_v18 = vpop.f32.mrb[0].mxu1 }
 0x127   : > { %v3005_v26 = vmul.f32 14.285714, %v2259_v38  ;;  %v3007_v28 = vmul.f32 14.285714, %v2267_v18  ;;  %v501_v30 = vpop.f32.mrb[1].mxu0  ;;  %v533_v42 = vpop.f32.mrb[1].mxu1 }
 0x128   : > { %v3009_v32 = vmul.f32 14.285714, %v501_v30  ;;  %v3011_v34 = vmul.f32 14.285714, %v533_v42  ;;  %v2260_v37 = vpop.f32.mrb[2].mxu0  ;;  %v2268_v41 = vpop.f32.mrb[2].mxu1 }
 0x129   : > { %v3013_v44 = vmul.f32 14.285714, %v2260_v37  ;;  %v3015_v48 = vmul.f32 14.285714, %v2268_v41  ;;  %v504_v54 = vpop.f32.mrb[3].mxu0  ;;  %v536_v35 = vpop.f32.mrb[3].mxu1 }
 0x12a   : > { %v3017_v0 = vmul.f32 14.285714, %v504_v54  ;;  %v3019_v40 = vmul.f32 14.285714, %v536_v35 }
 0x12c   : > { %799 = sbr.rel (!%p794_p4) target bundleno = 339 (0x153), region = 44 }
 0x12e   : > { %v2263_v38 = vpop.f32.mrb[4].mxu0  ;;  %v2271_v18 = vpop.f32.mrb[4].mxu1 }
 0x12f   : > { %v3021_v25 = vmul.f32 14.285714, %v2263_v38  ;;  %v3023_v30 = vmul.f32 14.285714, %v2271_v18  ;;  %v517_v42 = vpop.f32.mrb[5].mxu0  ;;  %v549_v24 = vpop.f32.mrb[5].mxu1 }
 0x130   : > { %v3025_v22 = vmul.f32 14.285714, %v517_v42  ;;  %v3027_v37 = vmul.f32 14.285714, %v549_v24  ;;  %v2264_v41 = vpop.f32.mrb[6].mxu0  ;;  %v2272_v21 = vpop.f32.mrb[6].mxu1 }
 0x131   : > { %v3029_v20 = vmul.f32 14.285714, %v2264_v41  ;;  %v3031_v54 = vmul.f32 14.285714, %v2272_v21  ;;  %v520_v35 = vpop.f32.mrb[7].mxu0  ;;  %v552_v19 = vpop.f32.mrb[7].mxu1 }
 0x132   : > { %v3033_v17 = vmul.f32 14.285714, %v520_v35  ;;  %v3035_v38 = vmul.f32 14.285714, %v552_v19  ;;  %v2535_v18 = vmov (%p794_p4), -1e+30  }
 0x133   : > { %801 = vst.msk [vmem:[#allocation2] sm:$0xff] %vm800_vm1, %v2535_v18  ;;  %802 = vst.msk [vmem:[#allocation2 + $0x8] sm:$0xff] %vm800_vm1, %v2535_v18  ;;  %v2536_v19 = vmov 0.0   ;;  %v2537_v21 = vmov 1e+30  }
 0x134   : > { %803 = vst.msk [vmem:[#allocation2 + $0x10] sm:$0xff] %vm800_vm1, %v2535_v18  ;;  %804 = vst.msk [vmem:[#allocation2 + $0x18] sm:$0xff] %vm800_vm1, %v2535_v18 }
 0x135   : > { %805 = vst.msk [vmem:[#allocation2 + $0x20] sm:$0xff] %vm800_vm1, %v2535_v18  ;;  %806 = vst.msk [vmem:[#allocation2 + $0x28] sm:$0xff] %vm800_vm1, %v2535_v18 }
 0x136   : > { %807 = vst.msk [vmem:[#allocation2 + $0x30] sm:$0xff] %vm800_vm1, %v2535_v18  ;;  %808 = vst.msk [vmem:[#allocation2 + $0x38] sm:$0xff] %vm800_vm1, %v2535_v18 }
 0x137   : > { %809 = vst.msk [vmem:[#allocation2 + $0x40] sm:$0xff] %vm800_vm1, %v2535_v18  ;;  %810 = vst.msk [vmem:[#allocation2 + $0x48] sm:$0xff] %vm800_vm1, %v2535_v18 }
 0x138   : > { %811 = vst.msk [vmem:[#allocation2 + $0x50] sm:$0xff] %vm800_vm1, %v2535_v18  ;;  %812 = vst.msk [vmem:[#allocation2 + $0x58] sm:$0xff] %vm800_vm1, %v2535_v18 }
 0x139   : > { %813 = vst.msk [vmem:[#allocation2 + $0x60] sm:$0xff] %vm800_vm1, %v2535_v18  ;;  %814 = vst.msk [vmem:[#allocation2 + $0x68] sm:$0xff] %vm800_vm1, %v2535_v18 }
 0x13a   : > { %815 = vst.msk [vmem:[#allocation2 + $0x70] sm:$0xff] %vm800_vm1, %v2535_v18  ;;  %816 = vst.msk [vmem:[#allocation2 + $0x78] sm:$0xff] %vm800_vm1, %v2535_v18 }
 0x13b   : > { %817 = vst.msk [vmem:[#allocation3] sm:$0xff] %vm800_vm1, %v2536_v19  ;;  %818 = vst.msk [vmem:[#allocation3 + $0x8] sm:$0xff] %vm800_vm1, %v2536_v19 }
 0x13c   : > { %819 = vst.msk [vmem:[#allocation3 + $0x10] sm:$0xff] %vm800_vm1, %v2536_v19  ;;  %820 = vst.msk [vmem:[#allocation3 + $0x18] sm:$0xff] %vm800_vm1, %v2536_v19 }
 0x13d   : > { %821 = vst.msk [vmem:[#allocation3 + $0x20] sm:$0xff] %vm800_vm1, %v2536_v19  ;;  %822 = vst.msk [vmem:[#allocation3 + $0x28] sm:$0xff] %vm800_vm1, %v2536_v19 }
 0x13e   : > { %823 = vst.msk [vmem:[#allocation3 + $0x30] sm:$0xff] %vm800_vm1, %v2536_v19  ;;  %824 = vst.msk [vmem:[#allocation3 + $0x38] sm:$0xff] %vm800_vm1, %v2536_v19 }
 0x13f   : > { %825 = vst.msk [vmem:[#allocation3 + $0x40] sm:$0xff] %vm800_vm1, %v2536_v19  ;;  %826 = vst.msk [vmem:[#allocation3 + $0x48] sm:$0xff] %vm800_vm1, %v2536_v19 }
 0x140   : > { %827 = vst.msk [vmem:[#allocation3 + $0x50] sm:$0xff] %vm800_vm1, %v2536_v19  ;;  %828 = vst.msk [vmem:[#allocation3 + $0x58] sm:$0xff] %vm800_vm1, %v2536_v19 }
 0x141   : > { %829 = vst.msk [vmem:[#allocation3 + $0x60] sm:$0xff] %vm800_vm1, %v2536_v19  ;;  %830 = vst.msk [vmem:[#allocation3 + $0x68] sm:$0xff] %vm800_vm1, %v2536_v19 }
 0x142   : > { %831 = vst.msk [vmem:[#allocation3 + $0x70] sm:$0xff] %vm800_vm1, %v2536_v19  ;;  %832 = vst.msk [vmem:[#allocation3 + $0x78] sm:$0xff] %vm800_vm1, %v2536_v19 }
 0x143   : > { %833 = vst.msk [vmem:[#allocation4] sm:$0xff] %vm800_vm1, %v2536_v19  ;;  %834 = vst.msk [vmem:[#allocation4 + $0x8] sm:$0xff] %vm800_vm1, %v2536_v19 }
 0x144   : > { %835 = vst.msk [vmem:[#allocation4 + $0x10] sm:$0xff] %vm800_vm1, %v2536_v19  ;;  %836 = vst.msk [vmem:[#allocation4 + $0x18] sm:$0xff] %vm800_vm1, %v2536_v19 }
 0x145   : > { %837 = vst.msk [vmem:[#allocation4 + $0x20] sm:$0xff] %vm800_vm1, %v2536_v19  ;;  %838 = vst.msk [vmem:[#allocation4 + $0x28] sm:$0xff] %vm800_vm1, %v2536_v19 }
 0x146   : > { %839 = vst.msk [vmem:[#allocation4 + $0x30] sm:$0xff] %vm800_vm1, %v2536_v19  ;;  %840 = vst.msk [vmem:[#allocation4 + $0x38] sm:$0xff] %vm800_vm1, %v2536_v19 }
 0x147   : > { %841 = vst.msk [vmem:[#allocation4 + $0x40] sm:$0xff] %vm800_vm1, %v2536_v19  ;;  %842 = vst.msk [vmem:[#allocation4 + $0x48] sm:$0xff] %vm800_vm1, %v2536_v19 }
 0x148   : > { %843 = vst.msk [vmem:[#allocation4 + $0x50] sm:$0xff] %vm800_vm1, %v2536_v19  ;;  %844 = vst.msk [vmem:[#allocation4 + $0x58] sm:$0xff] %vm800_vm1, %v2536_v19 }
 0x149   : > { %845 = vst.msk [vmem:[#allocation4 + $0x60] sm:$0xff] %vm800_vm1, %v2536_v19  ;;  %846 = vst.msk [vmem:[#allocation4 + $0x68] sm:$0xff] %vm800_vm1, %v2536_v19 }
 0x14a   : > { %847 = vst.msk [vmem:[#allocation4 + $0x70] sm:$0xff] %vm800_vm1, %v2536_v19  ;;  %848 = vst.msk [vmem:[#allocation4 + $0x78] sm:$0xff] %vm800_vm1, %v2536_v19 }
 0x14b   : > { %849 = vst.msk [vmem:[#allocation5] sm:$0xff] %vm800_vm1, %v2537_v21  ;;  %850 = vst.msk [vmem:[#allocation5 + $0x8] sm:$0xff] %vm800_vm1, %v2537_v21 }
 0x14c   : > { %851 = vst.msk [vmem:[#allocation5 + $0x10] sm:$0xff] %vm800_vm1, %v2537_v21  ;;  %852 = vst.msk [vmem:[#allocation5 + $0x18] sm:$0xff] %vm800_vm1, %v2537_v21 }
 0x14d   : > { %853 = vst.msk [vmem:[#allocation5 + $0x20] sm:$0xff] %vm800_vm1, %v2537_v21  ;;  %854 = vst.msk [vmem:[#allocation5 + $0x28] sm:$0xff] %vm800_vm1, %v2537_v21 }
 0x14e   : > { %855 = vst.msk [vmem:[#allocation5 + $0x30] sm:$0xff] %vm800_vm1, %v2537_v21  ;;  %856 = vst.msk [vmem:[#allocation5 + $0x38] sm:$0xff] %vm800_vm1, %v2537_v21 }
 0x14f   : > { %857 = vst.msk [vmem:[#allocation5 + $0x40] sm:$0xff] %vm800_vm1, %v2537_v21  ;;  %858 = vst.msk [vmem:[#allocation5 + $0x48] sm:$0xff] %vm800_vm1, %v2537_v21 }
 0x150   : > { %859 = vst.msk [vmem:[#allocation5 + $0x50] sm:$0xff] %vm800_vm1, %v2537_v21  ;;  %860 = vst.msk [vmem:[#allocation5 + $0x58] sm:$0xff] %vm800_vm1, %v2537_v21 }
 0x151   : > { %861 = vst.msk [vmem:[#allocation5 + $0x60] sm:$0xff] %vm800_vm1, %v2537_v21  ;;  %862 = vst.msk [vmem:[#allocation5 + $0x68] sm:$0xff] %vm800_vm1, %v2537_v21 }
 0x152   : > { %863 = vst.msk [vmem:[#allocation5 + $0x70] sm:$0xff] %vm800_vm1, %v2537_v21  ;;  %864 = vst.msk [vmem:[#allocation5 + $0x78] sm:$0xff] %vm800_vm1, %v2537_v21 }
 0x153 PF: > { %p2200_p5 = scmp.ne.s32.totalorder %s2524_s23, 0 }
 0x155   : > { %867 = sbr.rel (%p2200_p5) target bundleno = 830 (0x33e), region = 48 }
 0x15c   : > { %v870_v24 = vsel %vm2774_vm5, %v3005_v26, -1e+30  ;;  %v868_v42 = vsel %vm2780_vm6, %v3009_v32, -1e+30  ;;  %v871_v41 = vsel %vm2788_vm9, %v3013_v44, -1e+30  ;;  %vm4242_vm8 = vnez %v4194_v63 }
 0x15d   : > { %888 = vmax.xlane.f32.xlu1 %v870_v24  ;;  %884 = vmax.xlane.f32.xlu0 %v868_v42  ;;  %v869_v35 = vsel %vm2810_vm14, %v3017_v0, -1e+30  ;;  %v873_v18 = vsel %vm2818_vm2, %v3033_v17, -1e+30  ;;  %v872_v19 = vsel %vm4242_vm8, %v3025_v22, -1e+30  ;;  %vm4243_vm15 = vnez %v4196_v1 }
 0x15e   : > { %v875_v21 = vsel %vm4243_vm15, %v3029_v20, -1e+30  ;;  %vm4244_vm12 = vnez %v4203_v13  ;;  %vm4245_vm1 = vnez %v4205_v23  ;;  %vm4246_vm2 = vnez %v4212_v31  ;;  %v3243_v16 = vld [vmem:[#allocation2 + $0x20] sm:$0xff]  ;;  %v3262_v11 = vld [vmem:[#allocation2 + $0x30] sm:$0xff]  ;;  %v3279_v15 = vld [vmem:[#allocation2 + $0x48] sm:$0xff] }
 0x15f   : > { %v874_v24 = vsel %vm4244_vm12, %v3021_v25, -1e+30  ;;  %v877_v42 = vsel %vm4245_vm1, %v3019_v40, -1e+30  ;;  %vm4247_vm8 = vnez %v4214_v33  ;;  %vm4248_vm15 = vnez %v4221_v43  ;;  %4268 = vst [vmem:[#allocation38_spill] sm:$0xff] %v3243_v16  ;;  %4272 = vst [vmem:[#allocation42_spill] sm:$0xff] %v3262_v11 }
 0x160   : > { %vm4255_vm1 = vnez %v4209_v29  ;;  %vm4257_vm12 = vnez %v4218_v39  ;;  %vm4258_vm9 = vnez %v4216_v36  ;;  %vm4259_vm5 = vnez %v4227_v52  ;;  %v3222_v29 = vld [vmem:[#allocation2 + $0x18] sm:$0xff]  ;;  %4275 = vst [vmem:[#allocation45_spill] sm:$0xff] %v3279_v15  ;;  %v3281_v7 = vld [vmem:[#allocation2 + $0x40] sm:$0xff] }
 0x161   : > { %890 = vmax.xlane.f32.xlu1 %v871_v41  ;;  %886 = vmax.xlane.f32.xlu0 %v869_v35  ;;  %v876_v41 = vsel %vm4246_vm2, %v3011_v34, -1e+30  ;;  %v879_v35 = vsel %vm4247_vm8, %v3015_v48, -1e+30  ;;  %vm4253_vm8 = vnez %v4200_v5  ;;  %vm4256_vm2 = vnez %v4207_v27  ;;  %4264 = vst [vmem:[#allocation34_spill] sm:$0xff] %v3222_v29  ;;  %v3260_v39 = vld [vmem:[#allocation2 + $0x38] sm:$0xff] }
 0x162   : > { %vm4260_vm14 = vnez %v4225_v50  ;;  %vm4261_vm6 = vnez %v4233_v60  ;;  %4271 = vst [vmem:[#allocation41_spill] sm:$0xff] %v3260_v39  ;;  %4276 = vst [vmem:[#allocation46_spill] sm:$0xff] %v3281_v7 }
 0x165   : > { %894 = vmax.xlane.f32.xlu1 %v873_v18  ;;  %892 = vmax.xlane.f32.xlu0 %v872_v19  ;;  %v878_v18 = vsel %vm4248_vm15, %v3007_v28, -1e+30  ;;  %v2538_v19 = vmov 0   ;;  %vm4254_vm15 = vnez %v4198_v3 }
 0x166   : > { %2349 = vset.pattern.permute.xlu0 %v2538_v19  ;;  %2348 = vset.pattern.permute.xlu1 %v2538_v19 }
 0x169   : > { %898 = vmax.xlane.f32.xlu1 %v875_v21  ;;  %896 = vmax.xlane.f32.xlu0 %v874_v24  ;;  %v881_v21 = vsel %vm2939_vm13, %v3035_v38, -1e+30  ;;  %v880_v24 = vsel %vm2960_vm11, %v3027_v37, -1e+30  ;;  %vm4249_vm13 = vnez %v4183_v53  ;;  %vm4250_vm11 = vnez %v4192_v61 }
 0x16d   : > { %902 = vmax.xlane.f32.xlu1 %v877_v42  ;;  %900 = vmax.xlane.f32.xlu0 %v876_v41  ;;  %v883_v42 = vsel %vm2968_vm4, %v3031_v54, -1e+30  ;;  %v882_v41 = vsel %vm2987_vm7, %v3023_v30, -1e+30  ;;  %vm4251_vm4 = vnez %v4180_v51  ;;  %vm4252_vm7 = vnez %v4190_v59 }
 0x171   : > { %906 = vmax.xlane.f32.xlu1 %v879_v35  ;;  %904 = vmax.xlane.f32.xlu0 %v878_v18  ;;  %v4080_v35 = vmov 0.0  }
 0x172   : > { %v2201_v18 = vsel %vm4249_vm13, 1.0, %v4080_v35  ;;  %v2202_v19 = vsel %vm4250_vm11, 1.0, %v4080_v35 }
 0x175   : > { %910 = vmax.xlane.f32.xlu1 %v881_v21  ;;  %908 = vmax.xlane.f32.xlu0 %v880_v24  ;;  %v2203_v21 = vsel %vm4251_vm4, 1.0, %v4080_v35  ;;  %v2204_v24 = vsel %vm4252_vm7, 1.0, %v4080_v35 }
 0x179   : > { %914 = vmax.xlane.f32.xlu1 %v883_v42  ;;  %912 = vmax.xlane.f32.xlu0 %v882_v41  ;;  %v2205_v42 = vsel %vm4253_vm8, 1.0, %v4080_v35  ;;  %v2206_v41 = vsel %vm4254_vm15, 1.0, %v4080_v35 }
 0x17d   : > { %1301 = vadd.xlane.f32.xlu0 %v2201_v18  ;;  %1303 = vadd.xlane.f32.xlu1 %v2202_v19  ;;  %v2207_v18 = vsel %vm4255_vm1, 1.0, %v4080_v35  ;;  %v2208_v19 = vsel %vm4256_vm2, 1.0, %v4080_v35 }
 0x181   : > { %1305 = vadd.xlane.f32.xlu0 %v2203_v21  ;;  %1307 = vadd.xlane.f32.xlu1 %v2204_v24  ;;  %v2209_v21 = vsel %vm4257_vm12, 1.0, %v4080_v35  ;;  %v2210_v24 = vsel %vm4258_vm9, 1.0, %v4080_v35 }
 0x185   : > { %1309 = vadd.xlane.f32.xlu0 %v2205_v42  ;;  %1311 = vadd.xlane.f32.xlu1 %v2206_v41  ;;  %v2211_v42 = vsel %vm4259_vm5, 1.0, %v4080_v35  ;;  %v2212_v41 = vsel %vm4260_vm14, 1.0, %v4080_v35 }
 0x189   : > { %1313 = vadd.xlane.f32.xlu0 %v2207_v18  ;;  %1315 = vadd.xlane.f32.xlu1 %v2208_v19  ;;  %v2213_v18 = vsel %vm2981_vm0, 1.0, %v4080_v35  ;;  %v2214_v19 = vsel %vm4261_vm6, 1.0, %v4080_v35 }
 0x18d   : > { %1317 = vadd.xlane.f32.xlu0 %v2209_v21  ;;  %1319 = vadd.xlane.f32.xlu1 %v2210_v24  ;;  %v2215_v21 = vsel %vm3001_vm3, 1.0, %v4080_v35  ;;  %v1381_v24 = vsel %vm4249_vm13, %v3009_v32, 1e+30  ;;  %vm1220_vm13 = vcmask 7168  }
 0x191   : > { %1321 = vadd.xlane.f32.xlu0 %v2211_v42  ;;  %1323 = vadd.xlane.f32.xlu1 %v2212_v41  ;;  %v1383_v42 = vsel %vm4251_vm4, %v3005_v26, 1e+30  ;;  %v1385_v41 = vsel %vm4253_vm8, %v3025_v22, 1e+30  ;;  %vm4295_vm4 = vnez %v4188_v57  ;;  %vm4298_vm8 = vnez %v4212_v31 }
 0x195   : > { %1325 = vadd.xlane.f32.xlu0 %v2213_v18  ;;  %1327 = vadd.xlane.f32.xlu1 %v2214_v19  ;;  %v1387_v18 = vsel %vm4255_vm1, %v3021_v25, 1e+30  ;;  %v1389_v19 = vsel %vm4257_vm12, %v3011_v34, 1e+30  ;;  %vm4300_vm12 = vnez %v4221_v43  ;;  %vm4301_vm1 = vnez %v4214_v33 }
 0x199   : > { %1329 = vadd.xlane.f32.xlu0 %v2215_v21  ;;  %v3212_v21 = vld [vmem:[#allocation2 + $0x10] sm:$0xff] }
 0x19a   : > { %4262 = vst [vmem:[#allocation32_spill] sm:$0xff] %v3212_v21 }
 0x19d   : > { %1397 = vmin.xlane.f32.xlu0 %v1381_v24  ;;  %v3214_v24 = vld [vmem:[#allocation2] sm:$0xff] }
 0x1a1   : > { %1401 = vmin.xlane.f32.xlu0 %v1383_v42 }
 0x1a5   : > { %1405 = vmin.xlane.f32.xlu0 %v1385_v41 }
 0x1a9   : > { %1409 = vmin.xlane.f32.xlu0 %v1387_v18  ;;  %v3224_v18 = vld [vmem:[#allocation2 + $0x8] sm:$0xff] }
 0x1ad   : > { %1413 = vmin.xlane.f32.xlu0 %v1389_v19  ;;  %v3241_v19 = vld [vmem:[#allocation2 + $0x28] sm:$0xff] }
 0x1ae   : > { %4267 = vst [vmem:[#allocation37_spill] sm:$0xff] %v3241_v19 }
 0x1ea   : > { %v889_v42 = vpop.xlane.xlu1 %888  ;;  %v885_v35 = vpop.xlane.xlu0 %884 }
 0x1eb   : > { %v3217_v5 = vmax.f32 %v3212_v21, %v889_v42  ;;  %v3220_v41 = vmax.f32 %v3214_v24, %v885_v35  ;;  %v1255_v21 = vld [vmem:[#allocation4 + $0x10] sm:$0xff] }
 0x1ed   : > { %4263 = vst [vmem:[#allocation33_spill] sm:$0xff] %v3217_v5  ;;  %1239 = vst.msk [vmem:[#allocation2 + $0x10] sm:$0xff] %vm1220_vm13, %v3217_v5  ;;  %998 = vperm.xlu0 %2349, %v3220_v41  }
 0x1ee   : > { %1237 = vst.msk [vmem:[#allocation2] sm:$0xff] %vm1220_vm13, %v3220_v41  ;;  %v891_v35 = vpop.xlane.xlu1 %890  ;;  %v887_v42 = vpop.xlane.xlu0 %886 }
 0x1ef   : > { %v3236_v51 = vmax.f32 %v3222_v29, %v891_v35  ;;  %v3239_v53 = vmax.f32 %v3224_v18, %v887_v42 }
 0x1f1   : > { %4265 = vst [vmem:[#allocation35_spill] sm:$0xff] %v3236_v51  ;;  %4266 = vst [vmem:[#allocation36_spill] sm:$0xff] %v3239_v53  ;;  %1003 = vperm.xlu1 %2348, %v3239_v53  }
 0x1f2   : > { %1240 = vst.msk [vmem:[#allocation2 + $0x18] sm:$0xff] %vm1220_vm13, %v3236_v51  ;;  %1238 = vst.msk [vmem:[#allocation2 + $0x8] sm:$0xff] %vm1220_vm13, %v3239_v53  ;;  %v895_v35 = vpop.xlane.xlu1 %894  ;;  %v893_v42 = vpop.xlane.xlu0 %892  ;;  %v1256_v53 = vld [vmem:[#allocation4 + $0x18] sm:$0xff] }
 0x1f3   : > { %v3255_v14 = vmax.f32 %v3241_v19, %v895_v35  ;;  %v3258_v12 = vmax.f32 %v3243_v16, %v893_v42  ;;  %v3298_v19 = vld [vmem:[#allocation2 + $0x58] sm:$0xff] }
 0x1f4   : > { %4279 = vst [vmem:[#allocation49_spill] sm:$0xff] %v3298_v19 }
 0x1f5   : > { %4269 = vst [vmem:[#allocation39_spill] sm:$0xff] %v3255_v14  ;;  %4270 = vst [vmem:[#allocation40_spill] sm:$0xff] %v3258_v12  ;;  %1008 = vperm.xlu1 %2348, %v3217_v5   ;;  %v3320_v5 = vld [vmem:[#allocation2 + $0x60] sm:$0xff] }
 0x1f6   : > { %1242 = vst.msk [vmem:[#allocation2 + $0x28] sm:$0xff] %vm1220_vm13, %v3255_v14  ;;  %1241 = vst.msk [vmem:[#allocation2 + $0x20] sm:$0xff] %vm1220_vm13, %v3258_v12  ;;  %v899_v35 = vpop.xlane.xlu1 %898  ;;  %v897_v42 = vpop.xlane.xlu0 %896 }
 0x1f7   : > { %v3274_v9 = vmax.f32 %v3260_v39, %v899_v35  ;;  %v3277_v8 = vmax.f32 %v3262_v11, %v897_v42  ;;  %v3300_v39 = vld [vmem:[#allocation2 + $0x50] sm:$0xff]  ;;  %4283 = vst [vmem:[#allocation53_spill] sm:$0xff] %v3320_v5 }
 0x1f8   : > { %4280 = vst [vmem:[#allocation50_spill] sm:$0xff] %v3300_v39 }
 0x1f9   : > { %4273 = vst [vmem:[#allocation43_spill] sm:$0xff] %v3274_v9  ;;  %4274 = vst [vmem:[#allocation44_spill] sm:$0xff] %v3277_v8  ;;  %1013 = vperm.xlu1 %2348, %v3236_v51  }
 0x1fa   : > { %1244 = vst.msk [vmem:[#allocation2 + $0x38] sm:$0xff] %vm1220_vm13, %v3274_v9  ;;  %1243 = vst.msk [vmem:[#allocation2 + $0x30] sm:$0xff] %vm1220_vm13, %v3277_v8  ;;  %v903_v35 = vpop.xlane.xlu1 %902  ;;  %v901_v42 = vpop.xlane.xlu0 %900 }
 0x1fb   : > { %v3293_v16 = vmax.f32 %v3279_v15, %v903_v35  ;;  %v3296_v29 = vmax.f32 %v3281_v7, %v901_v42  ;;  %v3318_v15 = vld [vmem:[#allocation2 + $0x68] sm:$0xff] }
 0x1fc   : > { %4282 = vst [vmem:[#allocation52_spill] sm:$0xff] %v3318_v15 }
 0x1fd   : > { %4277 = vst [vmem:[#allocation47_spill] sm:$0xff] %v3293_v16  ;;  %4278 = vst [vmem:[#allocation48_spill] sm:$0xff] %v3296_v29  ;;  %1043 = vperm.xlu0 %2349, %v3293_v16   ;;  %1018 = vperm.xlu1 %2348, %v3258_v12   ;;  %v3340_v12 = vld [vmem:[#allocation2 + $0x70] sm:$0xff] }
 0x1fe   : > { %1246 = vst.msk [vmem:[#allocation2 + $0x48] sm:$0xff] %vm1220_vm13, %v3293_v16  ;;  %1245 = vst.msk [vmem:[#allocation2 + $0x40] sm:$0xff] %vm1220_vm13, %v3296_v29  ;;  %v907_v42 = vpop.xlane.xlu1 %906  ;;  %v905_v10 = vpop.xlane.xlu0 %904 }
 0x1ff   : > { %v3313_v11 = vmax.f32 %v3298_v19, %v907_v42  ;;  %v3316_v51 = vmax.f32 %v3300_v39, %v905_v10  ;;  %v3338_v19 = vld [vmem:[#allocation2 + $0x78] sm:$0xff]  ;;  %4286 = vst [vmem:[#allocation56_spill] sm:$0xff] %v3340_v12 }
 0x200   : > { %4285 = vst [vmem:[#allocation55_spill] sm:$0xff] %v3338_v19 }
 0x201   : > { %4281 = vst [vmem:[#allocation51_spill] sm:$0xff] %v3313_v11  ;;  %1248 = vst.msk [vmem:[#allocation2 + $0x58] sm:$0xff] %vm1220_vm13, %v3313_v11  ;;  %1053 = vperm.xlu0 %2349, %v3313_v11   ;;  %1023 = vperm.xlu1 %2348, %v3255_v14   ;;  %v1254_v14 = vld [vmem:[#allocation4 + $0x8] sm:$0xff] }
 0x202   : > { %1247 = vst.msk [vmem:[#allocation2 + $0x50] sm:$0xff] %vm1220_vm13, %v3316_v51  ;;  %v911_v10 = vpop.xlane.xlu1 %910  ;;  %v909_v35 = vpop.xlane.xlu0 %908 }
 0x203   : > { %v3333_v7 = vmax.f32 %v3318_v15, %v911_v10  ;;  %v3336_v16 = vmax.f32 %v3320_v5, %v909_v35  ;;  %v1253_v15 = vld [vmem:[#allocation4] sm:$0xff] }
 0x204   : > { %v1257_v10 = vld [vmem:[#allocation4 + $0x20] sm:$0xff] }
 0x205   : > { %4284 = vst [vmem:[#allocation54_spill] sm:$0xff] %v3333_v7  ;;  %1250 = vst.msk [vmem:[#allocation2 + $0x68] sm:$0xff] %vm1220_vm13, %v3333_v7  ;;  %1063 = vperm.xlu0 %2349, %v3333_v7   ;;  %1028 = vperm.xlu1 %2348, %v3277_v8  }
 0x206   : > { %1249 = vst.msk [vmem:[#allocation2 + $0x60] sm:$0xff] %vm1220_vm13, %v3336_v16  ;;  %v915_v35 = vpop.xlane.xlu1 %914  ;;  %v913_v42 = vpop.xlane.xlu0 %912 }
 0x207   : > { %v3353_v39 = vmax.f32 %v3338_v19, %v915_v35  ;;  %v3356_v11 = vmax.f32 %v3340_v12, %v913_v42  ;;  %v1258_v12 = vld [vmem:[#allocation4 + $0x28] sm:$0xff] }
 0x209   : > { %4287 = vst [vmem:[#allocation57_spill] sm:$0xff] %v3353_v39  ;;  %4288 = vst [vmem:[#allocation58_spill] sm:$0xff] %v3356_v11  ;;  %1073 = vperm.xlu0 %2349, %v3353_v39   ;;  %1033 = vperm.xlu1 %2348, %v3274_v9  }
 0x20a   : > { %1252 = vst.msk [vmem:[#allocation2 + $0x78] sm:$0xff] %vm1220_vm13, %v3353_v39  ;;  %1251 = vst.msk [vmem:[#allocation2 + $0x70] sm:$0xff] %vm1220_vm13, %v3356_v11  ;;  %v1302_v42 = vpop.xlane.xlu0 %1301  ;;  %v1304_v35 = vpop.xlane.xlu1 %1303 }
 0x20b   : > { %v1333_v5 = vadd.f32 %v1302_v42, %v1253_v15  ;;  %v1334_v8 = vadd.f32 %v1304_v35, %v1254_v14 }
 0x20d   : > { %1038 = vperm.xlu1 %2348, %v3296_v29   ;;  %1349 = vst.msk [vmem:[#allocation4] sm:$0xff] %vm1220_vm13, %v1333_v5  ;;  %1350 = vst.msk [vmem:[#allocation4 + $0x8] sm:$0xff] %vm1220_vm13, %v1334_v8  ;;  %v1259_v29 = vld [vmem:[#allocation4 + $0x30] sm:$0xff]  ;;  %v1260_v5 = vld [vmem:[#allocation4 + $0x38] sm:$0xff] }
 0x20e   : > { %v1306_v7 = vpop.xlane.xlu0 %1305  ;;  %v1308_v39 = vpop.xlane.xlu1 %1307 }
 0x20f   : > { %v1335_v19 = vadd.f32 %v1306_v7, %v1255_v21  ;;  %v1336_v9 = vadd.f32 %v1308_v39, %v1256_v53  ;;  %v1261_v21 = vld [vmem:[#allocation4 + $0x40] sm:$0xff] }
 0x211   : > { %1048 = vperm.xlu1 %2348, %v3316_v51   ;;  %1351 = vst.msk [vmem:[#allocation4 + $0x10] sm:$0xff] %vm1220_vm13, %v1335_v19  ;;  %1352 = vst.msk [vmem:[#allocation4 + $0x18] sm:$0xff] %vm1220_vm13, %v1336_v9  ;;  %v1262_v19 = vld [vmem:[#allocation4 + $0x48] sm:$0xff] }
 0x212   : > { %v1310_v14 = vpop.xlane.xlu0 %1309  ;;  %v1312_v15 = vpop.xlane.xlu1 %1311 }
 0x213   : > { %v1337_v42 = vadd.f32 %v1310_v14, %v1257_v10  ;;  %v1338_v35 = vadd.f32 %v1312_v15, %v1258_v12  ;;  %v1263_v15 = vld [vmem:[#allocation4 + $0x50] sm:$0xff] }
 0x215   : > { %1058 = vperm.xlu1 %2348, %v3336_v16   ;;  %1353 = vst.msk [vmem:[#allocation4 + $0x20] sm:$0xff] %vm1220_vm13, %v1337_v42  ;;  %1354 = vst.msk [vmem:[#allocation4 + $0x28] sm:$0xff] %vm1220_vm13, %v1338_v35  ;;  %v1264_v42 = vld [vmem:[#allocation4 + $0x58] sm:$0xff] }
 0x216   : > { %v1314_v7 = vpop.xlane.xlu0 %1313  ;;  %v1316_v8 = vpop.xlane.xlu1 %1315 }
 0x217   : > { %v1339_v53 = vadd.f32 %v1314_v7, %v1259_v29  ;;  %v1340_v39 = vadd.f32 %v1316_v8, %v1260_v5  ;;  %v1265_v8 = vld [vmem:[#allocation4 + $0x60] sm:$0xff] }
 0x219   : > { %1068 = vperm.xlu1 %2348, %v3356_v11   ;;  %1355 = vst.msk [vmem:[#allocation4 + $0x30] sm:$0xff] %vm1220_vm13, %v1339_v53  ;;  %1356 = vst.msk [vmem:[#allocation4 + $0x38] sm:$0xff] %vm1220_vm13, %v1340_v39  ;;  %v1266_v11 = vld [vmem:[#allocation4 + $0x68] sm:$0xff] }
 0x21a   : > { %v1318_v9 = vpop.xlane.xlu0 %1317  ;;  %v1320_v12 = vpop.xlane.xlu1 %1319 }
 0x21b   : > { %v1341_v10 = vadd.f32 %v1318_v9, %v1261_v21  ;;  %v1342_v14 = vadd.f32 %v1320_v12, %v1262_v19  ;;  %v1267_v9 = vld [vmem:[#allocation4 + $0x70] sm:$0xff]  ;;  %v1391_v12 = vsel %vm4259_vm5, %v3007_v28, 1e+30  ;;  %vm4290_vm5 = vnez %v4176_v47 }
 0x21d   : > { %1357 = vst.msk [vmem:[#allocation4 + $0x40] sm:$0xff] %vm1220_vm13, %v1341_v10  ;;  %1358 = vst.msk [vmem:[#allocation4 + $0x48] sm:$0xff] %vm1220_vm13, %v1342_v14 }
 0x21e   : > { %v1322_v29 = vpop.xlane.xlu0 %1321  ;;  %v1324_v35 = vpop.xlane.xlu1 %1323 }
 0x21f   : > { %v1343_v5 = vadd.f32 %v1322_v29, %v1263_v15  ;;  %v1344_v7 = vadd.f32 %v1324_v35, %v1264_v42  ;;  %v1365_v15 = vld [vmem:[#allocation5] sm:$0xff]  ;;  %v1393_v42 = vsel %vm2981_vm0, %v3027_v37, 1e+30  ;;  %v1367_v35 = vld [vmem:[#allocation5 + $0x10] sm:$0xff] }
 0x221   : > { %1359 = vst.msk [vmem:[#allocation4 + $0x50] sm:$0xff] %vm1220_vm13, %v1343_v5  ;;  %1360 = vst.msk [vmem:[#allocation4 + $0x58] sm:$0xff] %vm1220_vm13, %v1344_v7 }
 0x222   : > { %v1326_v53 = vpop.xlane.xlu0 %1325  ;;  %v1328_v39 = vpop.xlane.xlu1 %1327 }
 0x223   : > { %v1345_v21 = vadd.f32 %v1326_v53, %v1265_v8  ;;  %v1346_v19 = vadd.f32 %v1328_v39, %v1266_v11  ;;  %v1369_v8 = vld [vmem:[#allocation5 + $0x20] sm:$0xff] }
 0x225   : > { %1361 = vst.msk [vmem:[#allocation4 + $0x60] sm:$0xff] %vm1220_vm13, %v1345_v21  ;;  %1362 = vst.msk [vmem:[#allocation4 + $0x68] sm:$0xff] %vm1220_vm13, %v1346_v19  ;;  %v1371_v21 = vld [vmem:[#allocation5 + $0x30] sm:$0xff] }
 0x226   : > { %v1330_v10 = vpop.xlane.xlu0 %1329 }
 0x227   : > { %v1347_v14 = vadd.f32 %v1330_v10, %v1267_v9  ;;  %v4289_v10 = vmov 0.0  }
 0x228   : > { %1417 = vmin.xlane.f32.xlu0 %v1391_v12  ;;  %v1373_v12 = vld [vmem:[#allocation5 + $0x40] sm:$0xff] }
 0x229   : > { %1363 = vst.msk [vmem:[#allocation4 + $0x70] sm:$0xff] %vm1220_vm13, %v1347_v14  ;;  %v2216_v14 = vsel %vm2995_vm10, 1.0, %v4289_v10 }
 0x22a   : > { %v1398_v11 = vpop.xlane.xlu0 %1397 }
 0x22b   : > { %v1429_v29 = vmin.f32 %v1365_v15, %v1398_v11  ;;  %v1382_v11 = vsel %vm4250_vm11, %v3017_v0, 1e+30  ;;  %vm4296_vm11 = vnez %v4203_v13 }
 0x22c   : > { %1421 = vmin.xlane.f32.xlu0 %v1393_v42 }
 0x22d   : > { %1445 = vst.msk [vmem:[#allocation5] sm:$0xff] %vm1220_vm13, %v1429_v29  ;;  %v1384_v29 = vsel %vm4252_vm7, %v3013_v44, 1e+30  ;;  %vm4297_vm7 = vnez %v4196_v1 }
 0x22e   : > { %v1402_v5 = vpop.xlane.xlu0 %1401 }
 0x22f   : > { %v1431_v7 = vmin.f32 %v1367_v35, %v1402_v5  ;;  %v1386_v35 = vsel %vm4254_vm15, %v3033_v17, 1e+30  ;;  %v1388_v5 = vsel %vm4256_vm2, %v3029_v20, 1e+30  ;;  %vm4294_vm2 = vnez %v4194_v63 }
 0x230   : > { %vm4299_vm15 = vnez %v4205_v23 }
 0x231   : > { %1447 = vst.msk [vmem:[#allocation5 + $0x10] sm:$0xff] %vm1220_vm13, %v1431_v7  ;;  %v1390_v7 = vsel %vm4258_vm9, %v3019_v40, 1e+30  ;;  %vm4292_vm9 = vnez %v4174_v45 }
 0x232   : > { %v1406_v53 = vpop.xlane.xlu0 %1405 }
 0x233   : > { %v1433_v39 = vmin.f32 %v1369_v8, %v1406_v53  ;;  %v1392_v8 = vsel %vm4260_vm14, %v3015_v48, 1e+30  ;;  %v1394_v53 = vsel %vm4261_vm6, %v3035_v38, 1e+30  ;;  %vm4291_vm6 = vnez %v4186_v55 }
 0x234   : > { %vm4293_vm14 = vnez %v4178_v49 }
 0x235   : > { %1449 = vst.msk [vmem:[#allocation5 + $0x20] sm:$0xff] %vm1220_vm13, %v1433_v39 }
 0x236   : > { %v1410_v19 = vpop.xlane.xlu0 %1409 }
 0x237   : > { %v1435_v9 = vmin.f32 %v1371_v21, %v1410_v19 }
 0x239   : > { %1451 = vst.msk [vmem:[#allocation5 + $0x30] sm:$0xff] %vm1220_vm13, %v1435_v9 }
 0x23a   : > { %v1414_v15 = vpop.xlane.xlu0 %1413 }
 0x23b   : > { %v1437_v42 = vmin.f32 %v1373_v12, %v1414_v15 }
 0x23d   : > { %1331 = vadd.xlane.f32.xlu1 %v2216_v14  ;;  %1453 = vst.msk [vmem:[#allocation5 + $0x40] sm:$0xff] %vm1220_vm13, %v1437_v42 }
 0x241   : > { %1399 = vmin.xlane.f32.xlu1 %v1382_v11 }
 0x245   : > { %1403 = vmin.xlane.f32.xlu1 %v1384_v29 }
 0x249   : > { %1407 = vmin.xlane.f32.xlu1 %v1386_v35 }
 0x24d   : > { %1411 = vmin.xlane.f32.xlu1 %v1388_v5 }
 0x251   : > { %1415 = vmin.xlane.f32.xlu1 %v1390_v7 }
 0x255   : > { %1419 = vmin.xlane.f32.xlu1 %v1392_v8 }
 0x259   : > { %1423 = vmin.xlane.f32.xlu1 %v1394_v53 }
 0x26c   : > { %v999_v39 = vpop.permute.xlu0 %998 }
 0x26d   : > { %v1076_v21 = vsub.f32 %v3009_v32, %v999_v39 }
 0x26f   : > { %v1092_v19 = vmul.f32 1.442695, %v1076_v21 }
 0x270   : > { %v1004_v9 = vpop.permute.xlu1 %1003 }
 0x271   : > { %2350 = vpow2.f32 %v1092_v19  ;;  %v1077_v12 = vsub.f32 %v3017_v0, %v1004_v9 }
 0x273   : > { %v1094_v10 = vmul.f32 1.442695, %v1077_v12 }
 0x274   : > { %v1009_v14 = vpop.permute.xlu1 %1008 }
 0x275   : > { %2352 = vpow2.f32 %v1094_v10  ;;  %v1078_v15 = vsub.f32 %v3005_v26, %v1009_v14 }
 0x277   : > { %v1096_v42 = vmul.f32 1.442695, %v1078_v15 }
 0x278   : > { %v1014_v11 = vpop.permute.xlu1 %1013 }
 0x279   : > { %2354 = vpow2.f32 %v1096_v42  ;;  %v1079_v29 = vsub.f32 %v3013_v44, %v1014_v11 }
 0x27b   : > { %v2351_v35 = vpop.eup %2350  ;;  %v1098_v5 = vmul.f32 1.442695, %v1079_v29 }
 0x27c   : > { %v1019_v7 = vpop.permute.xlu1 %1018  ;;  %v1124_v8 = vsel %vm4290_vm5, %v2351_v35, 0.0  ;;  %v1044_v39 = vpop.permute.xlu0 %1043  ;;  %vm4302_vm5 = vnez %v4229_v56  ;;  %v1395_v56 = vsel %vm3001_vm3, %v3023_v30, 1e+30 }
 0x27d   : > { %2356 = vpow2.f32 %v1098_v5  ;;  %v1080_v53 = vsub.f32 %v3025_v22, %v1019_v7  ;;  %1172 = vadd.xlane.f32.xlu1 %v1124_v8  ;;  %v1085_v5 = vsub.f32 %v3019_v40, %v1044_v39 }
 0x27f   : > { %v2353_v21 = vpop.eup %2352  ;;  %v1100_v19 = vmul.f32 1.442695, %v1080_v53  ;;  %v1110_v45 = vmul.f32 1.442695, %v1085_v5 }
 0x280   : > { %v1024_v9 = vpop.permute.xlu1 %1023  ;;  %v1125_v12 = vsel %vm4291_vm6, %v2353_v21, 0.0  ;;  %v1054_v42 = vpop.permute.xlu0 %1053  ;;  %vm4303_vm6 = vnez %v4223_v46  ;;  %v1396_v46 = vsel %vm2995_vm10, %v3031_v54, 1e+30 }
 0x281   : > { %2358 = vpow2.f32 %v1100_v19  ;;  %v1081_v10 = vsub.f32 %v3033_v17, %v1024_v9  ;;  %1174 = vadd.xlane.f32.xlu0 %v1125_v12  ;;  %v1087_v9 = vsub.f32 %v3015_v48, %v1054_v42 }
 0x283   : > { %v2355_v14 = vpop.eup %2354  ;;  %v1102_v15 = vmul.f32 1.442695, %v1081_v10 }
 0x284   : > { %v1029_v47 = vpop.permute.xlu1 %1028  ;;  %v1126_v11 = vsel %vm4292_vm9, %v2355_v14, 0.0  ;;  %v1064_v21 = vpop.permute.xlu0 %1063  ;;  %vm4304_vm9 = vnez %v4237_v2  ;;  %v1377_v2 = vld [vmem:[#allocation5 + $0x60] sm:$0xff] }
 0x285   : > { %2360 = vpow2.f32 %v1102_v15  ;;  %v1082_v29 = vsub.f32 %v3021_v25, %v1029_v47  ;;  %1176 = vadd.xlane.f32.xlu0 %v1126_v11  ;;  %v1114_v15 = vmul.f32 1.442695, %v1087_v9  ;;  %v1089_v47 = vsub.f32 %v3035_v38, %v1064_v21 }
 0x287   : > { %v2357_v35 = vpop.eup %2356  ;;  %v1104_v55 = vmul.f32 1.442695, %v1082_v29 }
 0x288   : > { %v1034_v7 = vpop.permute.xlu1 %1033  ;;  %v1127_v8 = vsel %vm4293_vm14, %v2357_v35, 0.0  ;;  %v1074_v29 = vpop.permute.xlu0 %1073  ;;  %vm4305_vm14 = vnez %v4231_v58 }
 0x289   : > { %2362 = vpow2.f32 %v1104_v55  ;;  %v1083_v53 = vsub.f32 %v3029_v20, %v1034_v7  ;;  %1178 = vadd.xlane.f32.xlu1 %v1127_v8  ;;  %v1118_v55 = vmul.f32 1.442695, %v1089_v47  ;;  %v1091_v7 = vsub.f32 %v3031_v54, %v1074_v29 }
 0x28b   : > { %v2359_v19 = vpop.eup %2358  ;;  %v1106_v12 = vmul.f32 1.442695, %v1083_v53 }
 0x28c   : > { %v1039_v10 = vpop.permute.xlu1 %1038  ;;  %v1128_v14 = vsel %vm4294_vm2, %v2359_v19, 0.0 }
 0x28d   : > { %2364 = vpow2.f32 %v1106_v12  ;;  %v1084_v39 = vsub.f32 %v3011_v34, %v1039_v10  ;;  %1180 = vadd.xlane.f32.xlu0 %v1128_v14 }
 0x28e   : > { %2366 = vpow2.f32 %v1110_v45  ;;  %v1122_v45 = vmul.f32 1.442695, %v1091_v7  ;;  %v1375_v7 = vld [vmem:[#allocation5 + $0x50] sm:$0xff] }
 0x28f   : > { %v2361_v49 = vpop.eup %2360  ;;  %v1108_v11 = vmul.f32 1.442695, %v1084_v39 }
 0x290   : > { %v1049_v35 = vpop.permute.xlu1 %1048  ;;  %v1129_v42 = vsel %vm4295_vm4, %v2361_v49, 0.0 }
 0x291   : > { %2368 = vpow2.f32 %v1108_v11  ;;  %v1086_v5 = vsub.f32 %v3007_v28, %v1049_v35  ;;  %1182 = vadd.xlane.f32.xlu1 %v1129_v42 }
 0x292   : > { %2370 = vpow2.f32 %v1114_v15 }
 0x293   : > { %v2363_v63 = vpop.eup %2362  ;;  %v1112_v8 = vmul.f32 1.442695, %v1086_v5 }
 0x294   : > { %v1059_v53 = vpop.permute.xlu1 %1058  ;;  %v1130_v21 = vsel %vm4296_vm11, %v2363_v63, 0.0 }
 0x295   : > { %2372 = vpow2.f32 %v1112_v8  ;;  %v1088_v19 = vsub.f32 %v3027_v37, %v1059_v53  ;;  %1184 = vadd.xlane.f32.xlu0 %v1130_v21 }
 0x296   : > { %2374 = vpow2.f32 %v1118_v55 }
 0x297   : > { %v2365_v57 = vpop.eup %2364  ;;  %v1116_v9 = vmul.f32 1.442695, %v1088_v19  ;;  %v1268_v19 = vld [vmem:[#allocation4 + $0x78] sm:$0xff] }
 0x298   : > { %v1069_v12 = vpop.permute.xlu1 %1068  ;;  %v1131_v10 = vsel %vm4297_vm7, %v2365_v57, 0.0  ;;  %v2367_v14 = vpop.eup %2366 }
 0x299   : > { %2376 = vpow2.f32 %v1116_v9  ;;  %v1090_v39 = vsub.f32 %v3023_v30, %v1069_v12  ;;  %1186 = vadd.xlane.f32.xlu1 %v1131_v10  ;;  %v1133_v47 = vsel %vm4299_vm15, %v2367_v14, 0.0  ;;  %v1366_v9 = vld [vmem:[#allocation5 + $0x8] sm:$0xff]  ;;  %v1368_v14 = vld [vmem:[#allocation5 + $0x18] sm:$0xff] }
 0x29a   : > { %2378 = vpow2.f32 %v1122_v45 }
 0x29b   : > { %v2369_v49 = vpop.eup %2368  ;;  %v1120_v13 = vmul.f32 1.442695, %v1090_v39 }
 0x29c   : > { %v1132_v15 = vsel %vm4298_vm8, %v2369_v49, 0.0  ;;  %v2371_v11 = vpop.eup %2370 }
 0x29d   : > { %2380 = vpow2.f32 %v1120_v13  ;;  %1188 = vadd.xlane.f32.xlu0 %v1132_v15  ;;  %1190 = vadd.xlane.f32.xlu1 %v1133_v47  ;;  %v1135_v35 = vsel %vm4301_vm1, %v2371_v11, 0.0  ;;  %v1370_v13 = vld [vmem:[#allocation5 + $0x28] sm:$0xff]  ;;  %v1372_v11 = vld [vmem:[#allocation5 + $0x38] sm:$0xff] }
 0x29f   : > { %v2373_v1 = vpop.eup %2372 }
 0x2a0   : > { %v1134_v29 = vsel %vm4300_vm12, %v2373_v1, 0.0  ;;  %v2375_v42 = vpop.eup %2374 }
 0x2a1   : > { %1192 = vadd.xlane.f32.xlu0 %v1134_v29  ;;  %1194 = vadd.xlane.f32.xlu1 %v1135_v35  ;;  %v1137_v23 = vsel %vm4303_vm6, %v2375_v42, 0.0  ;;  %v1374_v35 = vld [vmem:[#allocation5 + $0x48] sm:$0xff] }
 0x2a3   : > { %v2377_v5 = vpop.eup %2376 }
 0x2a4   : > { %v1136_v31 = vsel %vm4302_vm5, %v2377_v5, 0.0  ;;  %v2379_v63 = vpop.eup %2378 }
 0x2a5   : > { %1196 = vadd.xlane.f32.xlu0 %v1136_v31  ;;  %1198 = vadd.xlane.f32.xlu1 %v1137_v23  ;;  %v1139_v33 = vsel %vm4305_vm14, %v2379_v63, 0.0  ;;  %v1376_v31 = vld [vmem:[#allocation5 + $0x58] sm:$0xff] }
 0x2a7   : > { %v2381_v55 = vpop.eup %2380 }
 0x2a8   : > { %v1138_v43 = vsel %vm4304_vm9, %v2381_v55, 0.0  ;;  %v1378_v55 = vld [vmem:[#allocation5 + $0x68] sm:$0xff] }
 0x2a9   : > { %1200 = vadd.xlane.f32.xlu0 %v1138_v43  ;;  %1202 = vadd.xlane.f32.xlu1 %v1139_v33 }
 0x2ad   : > { %1425 = vmin.xlane.f32.xlu0 %v1395_v56  ;;  %1427 = vmin.xlane.f32.xlu1 %v1396_v46  ;;  %v4306_v56 = vsub.f32 %v3214_v24, %v3220_v41  ;;  %v4315_v24 = vld [vmem:[#allocation38_spill] sm:$0xff]  ;;  %v4316_v41 = vld [vmem:[#allocation40_spill] sm:$0xff] }
 0x2af   : > { %v964_v46 = vmul.f32 1.442695, %v4306_v56 }
 0x2b1   : > { %2382 = vpow2.f32 %v964_v46 }
 0x2b5   : > { %v1418_v8 = vpop.xlane.xlu0 %1417 }
 0x2b6   : > { %v1439_v53 = vmin.f32 %v1375_v7, %v1418_v8  ;;  %v4307_v7 = vld [vmem:[#allocation36_spill] sm:$0xff] }
 0x2b7   : > { %v4308_v8 = vsub.f32 %v3224_v18, %v4307_v7 }
 0x2b8   : > { %1455 = vst.msk [vmem:[#allocation5 + $0x50] sm:$0xff] %vm1220_vm13, %v1439_v53 }
 0x2b9   : > { %v1422_v58 = vpop.xlane.xlu0 %1421  ;;  %v966_v53 = vmul.f32 1.442695, %v4308_v8 }
 0x2ba   : > { %v1441_v21 = vmin.f32 %v1377_v2, %v1422_v58  ;;  %v4309_v2 = vld [vmem:[#allocation32_spill] sm:$0xff]  ;;  %v4310_v58 = vld [vmem:[#allocation33_spill] sm:$0xff] }
 0x2bb   : > { %2384 = vpow2.f32 %v966_v53 }
 0x2bc   : > { %1457 = vst.msk [vmem:[#allocation5 + $0x60] sm:$0xff] %vm1220_vm13, %v1441_v21  ;;  %v4311_v21 = vsub.f32 %v4309_v2, %v4310_v58  ;;  %v1143_v2 = vld [vmem:[#allocation3 + $0x18] sm:$0xff] }
 0x2ca   : > { %v1332_v57 = vpop.xlane.xlu1 %1331 }
 0x2cb   : > { %v1348_v45 = vadd.f32 %v1332_v57, %v1268_v19  ;;  %v968_v19 = vmul.f32 1.442695, %v4311_v21  ;;  %v4312_v57 = vld [vmem:[#allocation34_spill] sm:$0xff]  ;;  %v4324_v21 = vld [vmem:[#allocation41_spill] sm:$0xff] }
 0x2cd   : > { %1364 = vst.msk [vmem:[#allocation4 + $0x78] sm:$0xff] %vm1220_vm13, %v1348_v45  ;;  %2386 = vpow2.f32 %v968_v19  ;;  %v4313_v45 = vld [vmem:[#allocation35_spill] sm:$0xff] }
 0x2ce   : > { %v1400_v12 = vpop.xlane.xlu1 %1399  ;;  %v4325_v19 = vld [vmem:[#allocation43_spill] sm:$0xff] }
 0x2cf   : > { %v1430_v10 = vmin.f32 %v1366_v9, %v1400_v12  ;;  %v4314_v9 = vsub.f32 %v4312_v57, %v4313_v45  ;;  %v4326_v57 = vsub.f32 %v4324_v21, %v4325_v19 }
 0x2d1   : > { %1446 = vst.msk [vmem:[#allocation5 + $0x8] sm:$0xff] %vm1220_vm13, %v1430_v10  ;;  %v970_v12 = vmul.f32 1.442695, %v4314_v9  ;;  %v2383_v10 = vpop.eup %2382  ;;  %v978_v45 = vmul.f32 1.442695, %v4326_v57 }
 0x2d2   : > { %v1404_v39 = vpop.xlane.xlu1 %1403  ;;  %v2385_v18 = vpop.eup %2384 }
 0x2d3   : > { %v1432_v49 = vmin.f32 %v1368_v14, %v1404_v39  ;;  %v1140_v14 = vld [vmem:[#allocation3] sm:$0xff]  ;;  %2388 = vpow2.f32 %v970_v12  ;;  %v4317_v39 = vsub.f32 %v4315_v24, %v4316_v41  ;;  %v4327_v24 = vld [vmem:[#allocation45_spill] sm:$0xff] }
 0x2d4   : > { %v4328_v41 = vld [vmem:[#allocation47_spill] sm:$0xff] }
 0x2d5   : > { %1448 = vst.msk [vmem:[#allocation5 + $0x18] sm:$0xff] %vm1220_vm13, %v1432_v49  ;;  %v972_v49 = vmul.f32 1.442695, %v4317_v39  ;;  %v4329_v39 = vsub.f32 %v4327_v24, %v4328_v41  ;;  %v1147_v24 = vld [vmem:[#allocation3 + $0x38] sm:$0xff]  ;;  %v4343_v41 = vld [vmem:[#allocation55_spill] sm:$0xff] }
 0x2d6   : > { %v1408_v15 = vpop.xlane.xlu1 %1407 }
 0x2d7   : > { %v1434_v47 = vmin.f32 %v1370_v13, %v1408_v15  ;;  %v1156_v13 = vmul.f32 %v2383_v10, %v1140_v14  ;;  %2390 = vpow2.f32 %v972_v49  ;;  %v1144_v14 = vld [vmem:[#allocation3 + $0x20] sm:$0xff]  ;;  %v982_v49 = vmul.f32 1.442695, %v4329_v39  ;;  %v4344_v39 = vld [vmem:[#allocation57_spill] sm:$0xff] }
 0x2d9   : > { %1450 = vst.msk [vmem:[#allocation5 + $0x28] sm:$0xff] %vm1220_vm13, %v1434_v47  ;;  %v1141_v47 = vld [vmem:[#allocation3 + $0x8] sm:$0xff] }
 0x2da   : > { %v1412_v1 = vpop.xlane.xlu1 %1411 }
 0x2db   : > { %v1436_v29 = vmin.f32 %v1372_v11, %v1412_v1  ;;  %v4318_v1 = vld [vmem:[#allocation37_spill] sm:$0xff] }
 0x2dd   : > { %1452 = vst.msk [vmem:[#allocation5 + $0x38] sm:$0xff] %vm1220_vm13, %v1436_v29  ;;  %v4319_v29 = vld [vmem:[#allocation39_spill] sm:$0xff] }
 0x2de   : > { %v1416_v42 = vpop.xlane.xlu1 %1415 }
 0x2df   : > { %v1438_v5 = vmin.f32 %v1374_v35, %v1416_v42  ;;  %v4320_v35 = vsub.f32 %v4318_v1, %v4319_v29 }
 0x2e1   : > { %1454 = vst.msk [vmem:[#allocation5 + $0x48] sm:$0xff] %vm1220_vm13, %v1438_v5  ;;  %v974_v42 = vmul.f32 1.442695, %v4320_v35  ;;  %v1157_v5 = vmul.f32 %v2385_v18, %v1141_v47  ;;  %v4330_v18 = vld [vmem:[#allocation46_spill] sm:$0xff] }
 0x2e2   : > { %v1420_v23 = vpop.xlane.xlu1 %1419 }
 0x2e3   : > { %v1440_v63 = vmin.f32 %v1376_v31, %v1420_v23  ;;  %v2387_v31 = vpop.eup %2386  ;;  %2392 = vpow2.f32 %v974_v42  ;;  %v1145_v42 = vld [vmem:[#allocation3 + $0x28] sm:$0xff] }
 0x2e4   : > { %v2389_v8 = vpop.eup %2388 }
 0x2e5   : > { %1456 = vst.msk [vmem:[#allocation5 + $0x58] sm:$0xff] %vm1220_vm13, %v1440_v63  ;;  %v1142_v63 = vld [vmem:[#allocation3 + $0x10] sm:$0xff]  ;;  %v1159_v9 = vmul.f32 %v2389_v8, %v1143_v2  ;;  %v2391_v12 = vpop.eup %2390  ;;  %v4338_v2 = vld [vmem:[#allocation52_spill] sm:$0xff] }
 0x2e6   : > { %v1424_v43 = vpop.xlane.xlu1 %1423  ;;  %v1158_v7 = vmul.f32 %v2387_v31, %v1142_v63  ;;  %v1160_v1 = vmul.f32 %v2391_v12, %v1144_v14  ;;  %v4334_v31 = vld [vmem:[#allocation51_spill] sm:$0xff] }
 0x2e7   : > { %v1442_v33 = vmin.f32 %v1378_v55, %v1424_v43  ;;  %v4321_v43 = vld [vmem:[#allocation42_spill] sm:$0xff] }
 0x2e9   : > { %1458 = vst.msk [vmem:[#allocation5 + $0x68] sm:$0xff] %vm1220_vm13, %v1442_v33  ;;  %v4322_v33 = vld [vmem:[#allocation44_spill] sm:$0xff] }
 0x2ea   : > { %v4323_v56 = vsub.f32 %v4321_v43, %v4322_v33  ;;  %v4336_v43 = vld [vmem:[#allocation50_spill] sm:$0xff] }
 0x2eb   : > { %v4337_v33 = vsub.f32 %v4336_v43, %v3316_v51 }
 0x2ec   : > { %v976_v46 = vmul.f32 1.442695, %v4323_v56 }
 0x2ed   : > { %v2393_v29 = vpop.eup %2392  ;;  %v984_v56 = vmul.f32 1.442695, %v4337_v33 }
 0x2ee   : > { %2394 = vpow2.f32 %v976_v46  ;;  %v1161_v46 = vmul.f32 %v2393_v29, %v1145_v42 }
 0x2ef   : > { %2396 = vpow2.f32 %v978_v45  ;;  %v4341_v45 = vld [vmem:[#allocation53_spill] sm:$0xff] }
 0x2f0   : > { %2398 = vpow2.f32 %v982_v49  ;;  %v4345_v49 = vsub.f32 %v4343_v41, %v4344_v39 }
 0x30a   : > { %v1173_v15 = vpop.xlane.xlu1 %1172 }
 0x30b   : > { %v1204_v11 = vadd.f32 %v1173_v15, %v1156_v13  ;;  %v4331_v15 = vld [vmem:[#allocation48_spill] sm:$0xff] }
 0x30c   : > { %v4332_v47 = vsub.f32 %v4330_v18, %v4331_v15  ;;  %v4346_v15 = vld [vmem:[#allocation56_spill] sm:$0xff] }
 0x30d   : > { %1221 = vst.msk [vmem:[#allocation3] sm:$0xff] %vm1220_vm13, %v1204_v11 }
 0x30e   : > { %v1175_v23 = vpop.xlane.xlu0 %1174  ;;  %v980_v11 = vmul.f32 1.442695, %v4332_v47  ;;  %v4347_v47 = vld [vmem:[#allocation58_spill] sm:$0xff] }
 0x30f   : > { %v1205_v55 = vadd.f32 %v1175_v23, %v1157_v5  ;;  %v4333_v5 = vld [vmem:[#allocation49_spill] sm:$0xff] }
 0x310   : > { %v4335_v23 = vsub.f32 %v4333_v5, %v4334_v31  ;;  %2400 = vpow2.f32 %v980_v11  ;;  %v4348_v11 = vsub.f32 %v4346_v15, %v4347_v47  ;;  %v1149_v5 = vld [vmem:[#allocation3 + $0x48] sm:$0xff]  ;;  %v1148_v31 = vld [vmem:[#allocation3 + $0x40] sm:$0xff]  ;;  %v1155_v15 = vld [vmem:[#allocation3 + $0x78] sm:$0xff] }
 0x311   : > { %1222 = vst.msk [vmem:[#allocation3 + $0x8] sm:$0xff] %vm1220_vm13, %v1205_v55  ;;  %v1154_v47 = vld [vmem:[#allocation3 + $0x70] sm:$0xff] }
 0x312   : > { %v1177_v53 = vpop.xlane.xlu0 %1176  ;;  %v986_v63 = vmul.f32 1.442695, %v4335_v23 }
 0x313   : > { %v1206_v58 = vadd.f32 %v1177_v53, %v1158_v7  ;;  %v2395_v7 = vpop.eup %2394  ;;  %v1146_v53 = vld [vmem:[#allocation3 + $0x30] sm:$0xff] }
 0x314   : > { %2402 = vpow2.f32 %v986_v63  ;;  %v1162_v51 = vmul.f32 %v2395_v7, %v1146_v53  ;;  %v1151_v7 = vld [vmem:[#allocation3 + $0x58] sm:$0xff] }
 0x315   : > { %1223 = vst.msk [vmem:[#allocation3 + $0x10] sm:$0xff] %vm1220_vm13, %v1206_v58  ;;  %v4339_v58 = vld [vmem:[#allocation54_spill] sm:$0xff]  ;;  %2404 = vpow2.f32 %v984_v56 }
 0x316   : > { %v1179_v10 = vpop.xlane.xlu1 %1178  ;;  %v4340_v21 = vsub.f32 %v4338_v2, %v4339_v58 }
 0x317   : > { %v1207_v13 = vadd.f32 %v1179_v10, %v1159_v9  ;;  %v4342_v9 = vsub.f32 %v4341_v45, %v3336_v16  ;;  %v2397_v10 = vpop.eup %2396 }
 0x318   : > { %v990_v19 = vmul.f32 1.442695, %v4340_v21  ;;  %v2399_v29 = vpop.eup %2398  ;;  %v1163_v16 = vmul.f32 %v2397_v10, %v1147_v24 }
 0x319   : > { %1224 = vst.msk [vmem:[#allocation3 + $0x18] sm:$0xff] %vm1220_vm13, %v1207_v13  ;;  %v988_v12 = vmul.f32 1.442695, %v4342_v9  ;;  %v994_v13 = vmul.f32 1.442695, %v4345_v49 }
 0x31a   : > { %v1181_v35 = vpop.xlane.xlu0 %1180  ;;  %2406 = vpow2.f32 %v990_v19 }
 0x31b   : > { %v1208_v55 = vadd.f32 %v1181_v35, %v1160_v1  ;;  %2408 = vpow2.f32 %v988_v12  ;;  %v992_v1 = vmul.f32 1.442695, %v4348_v11  ;;  %v2401_v35 = vpop.eup %2400  ;;  %v1153_v12 = vld [vmem:[#allocation3 + $0x68] sm:$0xff] }
 0x31c   : > { %2410 = vpow2.f32 %v994_v13  ;;  %v1164_v43 = vmul.f32 %v2401_v35, %v1148_v31 }
 0x31d   : > { %1225 = vst.msk [vmem:[#allocation3 + $0x20] sm:$0xff] %vm1220_vm13, %v1208_v55  ;;  %2412 = vpow2.f32 %v992_v1  ;;  %v1165_v55 = vmul.f32 %v2399_v29, %v1149_v5 }
 0x31e   : > { %v1183_v8 = vpop.xlane.xlu1 %1182  ;;  %v2403_v63 = vpop.eup %2402 }
 0x31f   : > { %v1209_v57 = vadd.f32 %v1183_v8, %v1161_v46  ;;  %v2405_v33 = vpop.eup %2404  ;;  %v1150_v8 = vld [vmem:[#allocation3 + $0x50] sm:$0xff]  ;;  %v1167_v21 = vmul.f32 %v2403_v63, %v1151_v7 }
 0x320   : > { %v1166_v19 = vmul.f32 %v2405_v33, %v1150_v8  ;;  %v1379_v63 = vld [vmem:[#allocation5 + $0x70] sm:$0xff] }
 0x321   : > { %1226 = vst.msk [vmem:[#allocation3 + $0x28] sm:$0xff] %vm1220_vm13, %v1209_v57 }
 0x322   : > { %v1185_v14 = vpop.xlane.xlu0 %1184 }
 0x323   : > { %v1210_v18 = vadd.f32 %v1185_v14, %v1162_v51  ;;  %v1152_v51 = vld [vmem:[#allocation3 + $0x60] sm:$0xff] }
 0x324   : > { %v2407_v58 = vpop.eup %2406 }
 0x325   : > { %1227 = vst.msk [vmem:[#allocation3 + $0x30] sm:$0xff] %vm1220_vm13, %v1210_v18  ;;  %v2409_v57 = vpop.eup %2408  ;;  %v1169_v41 = vmul.f32 %v2407_v58, %v1153_v12 }
 0x326   : > { %v1187_v42 = vpop.xlane.xlu1 %1186  ;;  %v2411_v24 = vpop.eup %2410  ;;  %v1168_v39 = vmul.f32 %v2409_v57, %v1152_v51 }
 0x327   : > { %v1211_v23 = vadd.f32 %v1187_v42, %v1163_v16  ;;  %v2413_v49 = vpop.eup %2412  ;;  %v1171_v29 = vmul.f32 %v2411_v24, %v1155_v15 }
 0x328   : > { %v1170_v16 = vmul.f32 %v2413_v49, %v1154_v47 }
 0x329   : > { %1228 = vst.msk [vmem:[#allocation3 + $0x38] sm:$0xff] %vm1220_vm13, %v1211_v23  ;;  %v1380_v23 = vld [vmem:[#allocation5 + $0x78] sm:$0xff] }
 0x32a   : > { %v1191_v56 = vpop.xlane.xlu1 %1190  ;;  %v1189_v46 = vpop.xlane.xlu0 %1188 }
 0x32b   : > { %v1213_v53 = vadd.f32 %v1191_v56, %v1165_v55  ;;  %v1212_v2 = vadd.f32 %v1189_v46, %v1164_v43 }
 0x32d   : > { %1230 = vst.msk [vmem:[#allocation3 + $0x48] sm:$0xff] %vm1220_vm13, %v1213_v53  ;;  %1229 = vst.msk [vmem:[#allocation3 + $0x40] sm:$0xff] %vm1220_vm13, %v1212_v2 }
 0x32e   : > { %v1195_v45 = vpop.xlane.xlu1 %1194  ;;  %v1193_v9 = vpop.xlane.xlu0 %1192 }
 0x32f   : > { %v1215_v10 = vadd.f32 %v1195_v45, %v1167_v21  ;;  %v1214_v14 = vadd.f32 %v1193_v9, %v1166_v19 }
 0x331   : > { %1232 = vst.msk [vmem:[#allocation3 + $0x58] sm:$0xff] %vm1220_vm13, %v1215_v10  ;;  %1231 = vst.msk [vmem:[#allocation3 + $0x50] sm:$0xff] %vm1220_vm13, %v1214_v14 }
 0x332   : > { %v1199_v13 = vpop.xlane.xlu1 %1198  ;;  %v1197_v18 = vpop.xlane.xlu0 %1196 }
 0x333   : > { %v1217_v11 = vadd.f32 %v1199_v13, %v1169_v41  ;;  %v1216_v1 = vadd.f32 %v1197_v18, %v1168_v39 }
 0x335   : > { %1234 = vst.msk [vmem:[#allocation3 + $0x68] sm:$0xff] %vm1220_vm13, %v1217_v11  ;;  %1233 = vst.msk [vmem:[#allocation3 + $0x60] sm:$0xff] %vm1220_vm13, %v1216_v1 }
 0x336   : > { %v1203_v35 = vpop.xlane.xlu1 %1202  ;;  %v1201_v42 = vpop.xlane.xlu0 %1200 }
 0x337   : > { %v1219_v5 = vadd.f32 %v1203_v35, %v1171_v29  ;;  %v1218_v31 = vadd.f32 %v1201_v42, %v1170_v16 }
 0x339   : > { %1236 = vst.msk [vmem:[#allocation3 + $0x78] sm:$0xff] %vm1220_vm13, %v1219_v5  ;;  %1235 = vst.msk [vmem:[#allocation3 + $0x70] sm:$0xff] %vm1220_vm13, %v1218_v31 }
 0x33a   : > { %v1428_v55 = vpop.xlane.xlu1 %1427  ;;  %v1426_v43 = vpop.xlane.xlu0 %1425 }
 0x33b   : > { %v1444_v33 = vmin.f32 %v1380_v23, %v1428_v55  ;;  %v1443_v56 = vmin.f32 %v1379_v63, %v1426_v43 }
 0x33d   : > { %1460 = vst.msk [vmem:[#allocation5 + $0x78] sm:$0xff] %vm1220_vm13, %v1444_v33  ;;  %1459 = vst.msk [vmem:[#allocation5 + $0x70] sm:$0xff] %vm1220_vm13, %v1443_v56 }
 0x33e PF: > { %p2217_p6 = scmp.ne.s32.totalorder %s2524_s23, 1 }
 0x340   : > { %1464 = sbr.rel (%p2217_p6) target bundleno = 1183 (0x49f), region = 52 }
 0x347   : > { %v1503_v46 = vld [vmem:[#allocation3 + $0x10] sm:$0xff]  ;;  %v2540_v7 = vmov 0   ;;  %v1501_v8 = vld [vmem:[#allocation3] sm:$0xff]  ;;  %v1504_v53 = vld [vmem:[#allocation3 + $0x18] sm:$0xff]  ;;  %vm4132_vm4 = vcmask 7168   ;;  %s1565_s23 = sld [smem:[#allocation7]] }
 0x348   : > { %2415 = vset.pattern.permute.xlu1 %v2540_v7  ;;  %2414 = vset.pattern.permute.xlu0 %v2540_v7  ;;  %2416 = vlog2.f32 %v1503_v46  ;;  %v1502_v2 = vld [vmem:[#allocation3 + $0x8] sm:$0xff]  ;;  %v1505_v21 = vld [vmem:[#allocation3 + $0x20] sm:$0xff]  ;;  %v1508_v19 = vld [vmem:[#allocation3 + $0x38] sm:$0xff] }
 0x349   : > { %2418 = vlog2.f32 %v1501_v8  ;;  %v1506_v58 = vld [vmem:[#allocation3 + $0x28] sm:$0xff]  ;;  %v1487_v45 = vld [vmem:[#allocation2 + $0x10] sm:$0xff]  ;;  %v1485_v51 = vld [vmem:[#allocation2] sm:$0xff] }
 0x34a   : > { %2420 = vlog2.f32 %v1504_v53  ;;  %v1507_v10 = vld [vmem:[#allocation3 + $0x30] sm:$0xff]  ;;  %v1955_v49 = vld [vmem:[#allocation5] sm:$0xff]  ;;  %v1488_v13 = vld [vmem:[#allocation2 + $0x18] sm:$0xff] }
 0x34b   : > { %2422 = vlog2.f32 %v1502_v2  ;;  %v1957_v14 = vld [vmem:[#allocation5 + $0x10] sm:$0xff]  ;;  %v1510_v18 = vld [vmem:[#allocation3 + $0x48] sm:$0xff]  ;;  %v4349_v47 = vld [vmem:[#allocation11_spill] sm:$0xff] }
 0x34c   : > { %2424 = vlog2.f32 %v1506_v58  ;;  %v3553_v15 = vld [vmem:[#allocation4 + $0x10] sm:$0xff]  ;;  %vm1829_vm13 = vcmp.ne.f32.partialorder %v4349_v47, -1.0  ;;  %v3557_v16 = vld [vmem:[#allocation4] sm:$0xff]  ;;  %v4350_v35 = vld [vmem:[#allocation12_spill] sm:$0xff] }
 0x34d   : > { %2426 = vlog2.f32 %v1505_v21  ;;  %vm1813_vm2 = vcmp.gt.f32.partialorder %v3553_v15, 0.0  ;;  %vm1827_vm11 = vcmp.ne.f32.partialorder %v4350_v35, -1.0  ;;  %v1958_v42 = vld [vmem:[#allocation5 + $0x18] sm:$0xff]  ;;  %v1509_v5 = vld [vmem:[#allocation3 + $0x40] sm:$0xff]  ;;  %vm1811_vm7 = vcmp.gt.f32.partialorder %v3557_v16, 0.0  ;;  %v1486_v55 = vld [vmem:[#allocation2 + $0x8] sm:$0xff] }
 0x34e   : > { %2428 = vlog2.f32 %v1508_v19  ;;  %v3561_v33 = vld [vmem:[#allocation4 + $0x18] sm:$0xff]  ;;  %v4351_v56 = vld [vmem:[#allocation13_spill] sm:$0xff]  ;;  %vm3568_vm15 = vmand %vm1813_vm2, %vm1829_vm13  ;;  %v1875_v62 = vmax.f32 %v3557_v16, 1.0 }
 0x34f   : > { %2430 = vlog2.f32 %v1507_v10  ;;  %vm1830_vm8 = vcmp.ne.f32.partialorder %v4351_v56, -1.0  ;;  %v1512_v7 = vld [vmem:[#allocation3 + $0x58] sm:$0xff]  ;;  %vm1814_vm12 = vcmp.gt.f32.partialorder %v3561_v33, 0.0  ;;  %v1956_v21 = vld [vmem:[#allocation5 + $0x8] sm:$0xff]  ;;  %vm3579_vm1 = vmand %vm1811_vm7, %vm1827_vm11  ;;  %v1878_v4 = vmax.f32 %v3561_v33, 1.0 }
 0x350   : > { %2432 = vlog2.f32 %v1510_v18  ;;  %v1490_v19 = vld [vmem:[#allocation2 + $0x28] sm:$0xff]  ;;  %v1511_v10 = vld [vmem:[#allocation3 + $0x50] sm:$0xff]  ;;  %vm3594_vm6 = vmand %vm1814_vm12, %vm1830_vm8  ;;  %v4357_v18 = vmov 0 }
 0x351   : > { %2434 = vlog2.f32 %v1509_v5  ;;  %v4358_v18 = vsel %vm3594_vm6, 4294967295, %v4357_v18  ;;  %v4359_v5 = vld [vmem:[#allocation15_spill] sm:$0xff] }
 0x352   : > { %v2417_v57 = vpop.eup %2416  ;;  %2436 = vlog2.f32 %v1512_v7  ;;  %vm1832_vm13 = vcmp.ne.f32.partialorder %v4359_v5, -1.0  ;;  %v3606_v56 = vld [vmem:[#allocation4 + $0x20] sm:$0xff]  ;;  %v1514_v7 = vld [vmem:[#allocation3 + $0x68] sm:$0xff] }
 0x353   : > { %v2419_v9 = vpop.eup %2418  ;;  %v1522_v12 = vmul.f32 0.6931472, %v2417_v57  ;;  %2438 = vlog2.f32 %v1511_v10  ;;  %vm1815_vm11 = vcmp.gt.f32.partialorder %v3606_v56, 0.0  ;;  %v3620_v10 = vld [vmem:[#allocation4 + $0x38] sm:$0xff] }
 0x354   : > { %v1518_v24 = vmul.f32 0.6931472, %v2419_v9  ;;  %v2421_v41 = vpop.eup %2420  ;;  %vm1818_vm12 = vcmp.gt.f32.partialorder %v3620_v10, 0.0  ;;  %2440 = vlog2.f32 %v1514_v7  ;;  %v1964_v7 = vld [vmem:[#allocation5 + $0x48] sm:$0xff] }
 0x355   : > { %v1551_v39 = vadd.f32 %v1522_v12, %v1487_v45  ;;  %v1524_v1 = vmul.f32 0.6931472, %v2421_v41  ;;  %v2423_v31 = vpop.eup %2422  ;;  %v4356_v12 = vld [vmem:[#allocation14_spill] sm:$0xff] }
 0x356   : > { %v1549_v11 = vadd.f32 %v1518_v24, %v1485_v51  ;;  %v1520_v46 = vmul.f32 0.6931472, %v2423_v31  ;;  %v2425_v8 = vpop.eup %2424  ;;  %vm1828_vm5 = vcmp.ne.f32.partialorder %v4356_v12, -1.0  ;;  %v1959_v31 = vld [vmem:[#allocation5 + $0x20] sm:$0xff]  ;;  %v1491_v12 = vld [vmem:[#allocation2 + $0x30] sm:$0xff] }
 0x357   : > { %1578 = vperm.xlu1 %2415, %v1551_v39   ;;  %v1973_v29 = vsub.f32 %v1957_v14, %v1551_v39  ;;  %v1552_v63 = vadd.f32 %v1524_v1, %v1488_v13  ;;  %v1528_v51 = vmul.f32 0.6931472, %v2425_v8  ;;  %v2427_v14 = vpop.eup %2426  ;;  %v3587_v39 = vld [vmem:[#allocation4 + $0x8] sm:$0xff]  ;;  %v1489_v13 = vld [vmem:[#allocation2 + $0x20] sm:$0xff] }
 0x358   : > { %1568 = vperm.xlu0 %2414, %v1549_v11   ;;  %v1971_v23 = vsub.f32 %v1955_v49, %v1549_v11  ;;  %v1550_v9 = vadd.f32 %v1520_v46, %v1486_v55  ;;  %v1960_v49 = vld [vmem:[#allocation5 + $0x28] sm:$0xff]  ;;  %vm1812_vm9 = vcmp.gt.f32.partialorder %v3587_v39, 0.0  ;;  %v2429_v35 = vpop.eup %2428 }
 0x359   : > { %v1989_v43 = vmul.f32 -1.0, %v1973_v29  ;;  %v1974_v58 = vsub.f32 %v1958_v42, %v1552_v63  ;;  %v1554_v11 = vadd.f32 %v1528_v51, %v1490_v19  ;;  %v3599_v1 = vld [vmem:[#allocation4 + $0x28] sm:$0xff]  ;;  %v1526_v29 = vmul.f32 0.6931472, %v2427_v14  ;;  %v2431_v8 = vpop.eup %2430  ;;  %vm3612_vm2 = vmand %vm1812_vm9, %vm1828_vm5 }
 0x35a   : > { %v1987_v2 = vmul.f32 -1.0, %v1971_v23  ;;  %v1972_v47 = vsub.f32 %v1956_v21, %v1550_v9  ;;  %vm1816_vm14 = vcmp.gt.f32.partialorder %v3599_v1, 0.0  ;;  %v1492_v23 = vld [vmem:[#allocation2 + $0x38] sm:$0xff]  ;;  %v1532_v46 = vmul.f32 0.6931472, %v2429_v35  ;;  %v2433_v14 = vpop.eup %2432 }
 0x35b   : > { %v2005_v57 = vsel %vm3568_vm15, %v1989_v43, -1e+30  ;;  %1583 = vperm.xlu1 %2415, %v1552_v63   ;;  %v1990_v41 = vmul.f32 -1.0, %v1974_v58  ;;  %v1976_v55 = vsub.f32 %v1960_v49, %v1554_v11  ;;  %v1553_v43 = vadd.f32 %v1526_v29, %v1489_v13  ;;  %v4362_v58 = vld [vmem:[#allocation16_spill] sm:$0xff]  ;;  %v1962_v21 = vld [vmem:[#allocation5 + $0x38] sm:$0xff]  ;;  %vm3627_vm8 = vmand %vm1816_vm14, %vm1832_vm13 }
 0x35c   : > { %2021 = vst.msk [vmem:[#allocation8 + $0x10] sm:$0xff] %vm4132_vm4, %v2005_v57  ;;  %v2003_v24 = vsel %vm3579_vm1, %v1987_v2, -1e+30  ;;  %1573 = vperm.xlu0 %2414, %v1550_v9   ;;  %v1988_v63 = vmul.f32 -1.0, %v1972_v47  ;;  %v4360_v2 = vmov 0  ;;  %vm1831_vm7 = vcmp.ne.f32.partialorder %v4362_v58, -1.0 }
 0x35d   : > { %2019 = vst.msk [vmem:[#allocation8] sm:$0xff] %vm4132_vm4, %v2003_v24  ;;  %v2006_v42 = vsel %vm3594_vm6, %v1990_v41, -1e+30  ;;  %v4361_v2 = vsel %vm3612_vm2, 4294967295, %v4360_v2  ;;  %v1992_v57 = vmul.f32 -1.0, %v1976_v55  ;;  %v1975_v9 = vsub.f32 %v1959_v31, %v1553_v43  ;;  %v4366_v41 = vld [vmem:[#allocation17_spill] sm:$0xff]  ;;  %vm3639_vm9 = vmand %vm1815_vm11, %vm1831_vm7 }
 0x35e   : > { %2022 = vst.msk [vmem:[#allocation8 + $0x18] sm:$0xff] %vm4132_vm4, %v2006_v42  ;;  %v2004_v19 = vsel %vm3612_vm2, %v1988_v63, -1e+30  ;;  %v1556_v51 = vadd.f32 %v1532_v46, %v1492_v23  ;;  %v4363_v24 = vmov 0  ;;  %vm1834_vm5 = vcmp.ne.f32.partialorder %v4366_v41, -1.0  ;;  %v1961_v13 = vld [vmem:[#allocation5 + $0x30] sm:$0xff]  ;;  %v2435_v23 = vpop.eup %2434 }
 0x35f   : > { %1593 = vperm.xlu1 %2415, %v1554_v11   ;;  %2020 = vst.msk [vmem:[#allocation8 + $0x8] sm:$0xff] %vm4132_vm4, %v2004_v19  ;;  %v4364_v24 = vsel %vm3627_vm8, 4294967295, %v4363_v24  ;;  %v1530_v49 = vmul.f32 0.6931472, %v2431_v8  ;;  %v1494_v47 = vld [vmem:[#allocation2 + $0x48] sm:$0xff]  ;;  %v4367_v29 = vmov 0  ;;  %vm3657_vm11 = vmand %vm1818_vm12, %vm1834_vm5 }
 0x360   : > { %1588 = vperm.xlu0 %2414, %v1553_v43   ;;  %4365 = vst [vmem:[#allocation59_spill] sm:$0xff] %v4364_v24  ;;  %v2008_v11 = vsel %vm3627_vm8, %v1992_v57, -1e+30  ;;  %v4368_v29 = vsel %vm3639_vm9, 4294967295, %v4367_v29  ;;  %v1991_v35 = vmul.f32 -1.0, %v1975_v9  ;;  %v1978_v42 = vsub.f32 %v1962_v21, %v1556_v51  ;;  %v1513_v31 = vld [vmem:[#allocation3 + $0x60] sm:$0xff] }
 0x361   : > { %v1536_v5 = vmul.f32 0.6931472, %v2433_v14  ;;  %2024 = vst.msk [vmem:[#allocation8 + $0x28] sm:$0xff] %vm4132_vm4, %v2008_v11  ;;  %v1555_v63 = vadd.f32 %v1530_v49, %v1491_v12  ;;  %v3644_v55 = vld [vmem:[#allocation4 + $0x30] sm:$0xff]  ;;  %v4369_v43 = vld [vmem:[#allocation18_spill] sm:$0xff]  ;;  %v4370_v46 = vld [vmem:[#allocation19_spill] sm:$0xff]  ;;  %2442 = vlog2.f32 %v1513_v31 }
 0x362   : > { %vm1833_vm14 = vcmp.ne.f32.partialorder %v4369_v43, -1.0  ;;  %v1493_v8 = vld [vmem:[#allocation2 + $0x40] sm:$0xff]  ;;  %v2007_v58 = vsel %vm3639_vm9, %v1991_v35, -1e+30  ;;  %v1994_v19 = vmul.f32 -1.0, %v1978_v42  ;;  %v3650_v57 = vld [vmem:[#allocation4 + $0x48] sm:$0xff] }
 0x363   : > { %1603 = vperm.xlu1 %2415, %v1556_v51   ;;  %v1558_v21 = vadd.f32 %v1536_v5, %v1494_v47  ;;  %v1534_v9 = vmul.f32 0.6931472, %v2435_v23  ;;  %v2437_v51 = vpop.eup %2436  ;;  %2023 = vst.msk [vmem:[#allocation8 + $0x20] sm:$0xff] %vm4132_vm4, %v2007_v58  ;;  %v4371_v12 = vmov 0  ;;  %vm1817_vm7 = vcmp.gt.f32.partialorder %v3644_v55, 0.0  ;;  %v1963_v49 = vld [vmem:[#allocation5 + $0x40] sm:$0xff] }
 0x364   : > { %v4372_v12 = vsel %vm3657_vm11, 4294967295, %v4371_v12  ;;  %v1977_v14 = vsub.f32 %v1961_v13, %v1555_v63  ;;  %1598 = vperm.xlu0 %2414, %v1555_v63   ;;  %v1496_v47 = vld [vmem:[#allocation2 + $0x58] sm:$0xff]  ;;  %v2010_v11 = vsel %vm3657_vm11, %v1994_v19, -1e+30  ;;  %v3665_v42 = vld [vmem:[#allocation4 + $0x40] sm:$0xff]  ;;  %v2439_v58 = vpop.eup %2438  ;;  %v4374_v63 = vld [vmem:[#allocation20_spill] sm:$0xff] }
 0x365   : > { %4373 = vst [vmem:[#allocation60_spill] sm:$0xff] %v4372_v12  ;;  %v1980_v35 = vsub.f32 %v1964_v7, %v1558_v21  ;;  %v1557_v41 = vadd.f32 %v1534_v9, %v1493_v8  ;;  %v1540_v5 = vmul.f32 0.6931472, %v2437_v51  ;;  %v1516_v23 = vld [vmem:[#allocation3 + $0x78] sm:$0xff]  ;;  %2026 = vst.msk [vmem:[#allocation8 + $0x38] sm:$0xff] %vm4132_vm4, %v2010_v11  ;;  %v1495_v31 = vld [vmem:[#allocation2 + $0x50] sm:$0xff]  ;;  %v2441_v12 = vpop.eup %2440 }
 0x366   : > { %v1993_v13 = vmul.f32 -1.0, %v1977_v14  ;;  %v1966_v24 = vld [vmem:[#allocation5 + $0x58] sm:$0xff]  ;;  %vm3674_vm13 = vmand %vm1817_vm7, %vm1833_vm14  ;;  %v4375_v7 = vmov 0  ;;  %v1538_v51 = vmul.f32 0.6931472, %v2439_v58  ;;  %vm4377_vm12 = vcmp.ne.f32.partialorder %v4370_v46, -1.0 }
 0x367   : > { %1613 = vperm.xlu1 %2415, %v1558_v21   ;;  %v4376_v7 = vsel %vm3674_vm13, 4294967295, %v4375_v7  ;;  %v1996_v8 = vmul.f32 -1.0, %v1980_v35  ;;  %v1979_v19 = vsub.f32 %v1963_v49, %v1557_v41  ;;  %v1560_v21 = vadd.f32 %v1540_v5, %v1496_v47  ;;  %v3678_v9 = vld [vmem:[#allocation4 + $0x58] sm:$0xff]  ;;  %v4382_v11 = vld [vmem:[#allocation21_spill] sm:$0xff] }
 0x368   : > { %v2009_v14 = vsel %vm3674_vm13, %v1993_v13, -1e+30  ;;  %vm4378_vm5 = vcmp.gt.f32.partialorder %v3650_v57, 0.0  ;;  %v4379_v43 = vmov 0  ;;  %1608 = vperm.xlu0 %2414, %v1557_v41   ;;  %v1965_v49 = vld [vmem:[#allocation5 + $0x50] sm:$0xff]  ;;  %2444 = vlog2.f32 %v1516_v23  ;;  %v4390_v23 = vld [vmem:[#allocation22_spill] sm:$0xff] }
 0x369   : > { %vm3686_vm4 = vmand %vm4378_vm5, %vm4377_vm12  ;;  %vm4383_vm11 = vcmask 7168   ;;  %v1995_v35 = vmul.f32 -1.0, %v1979_v19  ;;  %v1982_v46 = vsub.f32 %v1966_v24, %v1560_v21  ;;  %v1559_v5 = vadd.f32 %v1538_v51, %v1495_v31  ;;  %v3695_v58 = vld [vmem:[#allocation4 + $0x50] sm:$0xff]  ;;  %v1498_v24 = vld [vmem:[#allocation2 + $0x68] sm:$0xff] }
 0x36a   : > { %v4380_v43 = vsel %vm3686_vm4, 4294967295, %v4379_v43  ;;  %2025 = vst.msk [vmem:[#allocation8 + $0x30] sm:$0xff] %vm4383_vm11, %v2009_v14  ;;  %v2012_v47 = vsel %vm3686_vm4, %v1996_v8, -1e+30  ;;  %v1515_v13 = vld [vmem:[#allocation3 + $0x70] sm:$0xff]  ;;  %vm4384_vm12 = vmmov %vm4383_vm11  ;;  %vm4385_vm5 = vcmp.ne.f32.partialorder %v4374_v63, -1.0 }
 0x36b   : > { %4381 = vst [vmem:[#allocation61_spill] sm:$0xff] %v4380_v43  ;;  %1623 = vperm.xlu1 %2415, %v1560_v21   ;;  %2028 = vst.msk [vmem:[#allocation8 + $0x48] sm:$0xff] %vm4384_vm12, %v2012_v47  ;;  %vm4386_vm14 = vcmp.gt.f32.partialorder %v3665_v42, 0.0  ;;  %v4387_v41 = vmov 0  ;;  %vm1837_vm4 = vcmp.ne.f32.partialorder %v4390_v23, -1.0  ;;  %v1998_v8 = vmul.f32 -1.0, %v1982_v46 }
 0x36c   : > { %vm3702_vm7 = vmand %vm4386_vm14, %vm4385_vm5  ;;  %v1981_v19 = vsub.f32 %v1965_v49, %v1559_v5  ;;  %v1544_v21 = vmul.f32 0.6931472, %v2441_v12  ;;  %vm4392_vm13 = vcmp.ne.f32.partialorder %v4382_v11, -1.0  ;;  %vm4393_vm14 = vcmp.gt.f32.partialorder %v3678_v9, 0.0  ;;  %1618 = vperm.xlu0 %2414, %v1559_v5   ;;  %v1968_v51 = vld [vmem:[#allocation5 + $0x68] sm:$0xff]  ;;  %v2443_v49 = vpop.eup %2442  ;;  %v4401_v46 = vld [vmem:[#allocation23_spill] sm:$0xff] }
 0x36d   : > { %v4388_v41 = vsel %vm3702_vm7, 4294967295, %v4387_v41  ;;  %v2011_v31 = vsel %vm3702_vm7, %v1995_v35, -1e+30  ;;  %vm4391_vm12 = vmmov %vm4383_vm11  ;;  %v4394_v63 = vmov 0  ;;  %2446 = vlog2.f32 %v1515_v13  ;;  %v3730_v11 = vld [vmem:[#allocation4 + $0x68] sm:$0xff]  ;;  %v1497_v5 = vld [vmem:[#allocation2 + $0x60] sm:$0xff] }
 0x36e   : > { %4389 = vst [vmem:[#allocation62_spill] sm:$0xff] %v4388_v41  ;;  %2027 = vst.msk [vmem:[#allocation8 + $0x40] sm:$0xff] %vm4391_vm12, %v2011_v31  ;;  %v1997_v47 = vmul.f32 -1.0, %v1981_v19  ;;  %v1562_v35 = vadd.f32 %v1544_v21, %v1498_v24  ;;  %vm4397_vm12 = vcmp.gt.f32.partialorder %v3695_v58, 0.0  ;;  %v4398_v12 = vmov 0  ;;  %v1967_v23 = vld [vmem:[#allocation5 + $0x60] sm:$0xff] }
 0x36f   : > { %vm3715_vm5 = vmand %vm4393_vm14, %vm4392_vm13  ;;  %vm1840_vm13 = vcmp.ne.f32.partialorder %v4401_v46, -1.0  ;;  %vm1824_vm14 = vcmp.gt.f32.partialorder %v3730_v11, 0.0  ;;  %v1542_v31 = vmul.f32 0.6931472, %v2443_v49  ;;  %v3741_v46 = vld [vmem:[#allocation4 + $0x60] sm:$0xff]  ;;  %2448 = vrcp.f32 %v1875_v62 }
 0x370   : > { %v4395_v63 = vsel %vm3715_vm5, 4294967295, %v4394_v63  ;;  %v2014_v14 = vsel %vm3715_vm5, %v1998_v8, -1e+30  ;;  %vm3726_vm7 = vmand %vm4397_vm12, %vm1837_vm4  ;;  %v1984_v24 = vsub.f32 %v1968_v51, %v1562_v35  ;;  %1633 = vperm.xlu1 %2415, %v1562_v35   ;;  %vm1823_vm5 = vcmp.gt.f32.partialorder %v3741_v46, 0.0 }
 0x371   : > { %4396 = vst [vmem:[#allocation63_spill] sm:$0xff] %v4395_v63  ;;  %2030 = vst.msk [vmem:[#allocation8 + $0x58] sm:$0xff] %vm4383_vm11, %v2014_v14  ;;  %v4399_v12 = vsel %vm3726_vm7, 4294967295, %v4398_v12  ;;  %v2013_v13 = vsel %vm3726_vm7, %v1997_v47, -1e+30  ;;  %v1561_v19 = vadd.f32 %v1542_v31, %v1497_v5  ;;  %v4402_v14 = vmov 0 }
 0x372   : > { %4400 = vst [vmem:[#allocation64_spill] sm:$0xff] %v4399_v12  ;;  %2029 = vst.msk [vmem:[#allocation8 + $0x50] sm:$0xff] %vm4383_vm11, %v2013_v13  ;;  %v2000_v8 = vmul.f32 -1.0, %v1984_v24  ;;  %v2445_v21 = vpop.eup %2444  ;;  %v4405_v63 = vld [vmem:[#allocation24_spill] sm:$0xff]  ;;  %v1500_v47 = vld [vmem:[#allocation2 + $0x78] sm:$0xff]  ;;  %v1885_v45 = vmax.f32 %v3695_v58, 1.0 }
 0x373   : > { %vm3737_vm4 = vmand %vm1824_vm14, %vm1840_vm13  ;;  %vm1839_vm12 = vcmp.ne.f32.partialorder %v4405_v63, -1.0  ;;  %v1983_v35 = vsub.f32 %v1967_v23, %v1561_v19  ;;  %1628 = vperm.xlu0 %2414, %v1561_v19   ;;  %v1548_v49 = vmul.f32 0.6931472, %v2445_v21  ;;  %v3748_v5 = vld [vmem:[#allocation4 + $0x78] sm:$0xff]  ;;  %v4406_v12 = vld [vmem:[#allocation25_spill] sm:$0xff] }
 0x374   : > { %v4403_v14 = vsel %vm3737_vm4, 4294967295, %v4402_v14  ;;  %v2016_v51 = vsel %vm3737_vm4, %v2000_v8, -1e+30  ;;  %v1970_v13 = vld [vmem:[#allocation5 + $0x78] sm:$0xff]  ;;  %vm1826_vm13 = vcmp.gt.f32.partialorder %v3748_v5, 0.0  ;;  %vm1842_vm14 = vcmp.ne.f32.partialorder %v4406_v12, -1.0  ;;  %vm3754_vm4 = vmand %vm1823_vm5, %vm1839_vm12 }
 0x375   : > { %4404 = vst [vmem:[#allocation65_spill] sm:$0xff] %v4403_v14  ;;  %2032 = vst.msk [vmem:[#allocation8 + $0x68] sm:$0xff] %vm4383_vm11, %v2016_v51  ;;  %v1999_v24 = vmul.f32 -1.0, %v1983_v35  ;;  %v1564_v31 = vadd.f32 %v1548_v49, %v1500_v47  ;;  %v4407_v8 = vmov 0  ;;  %v1499_v23 = vld [vmem:[#allocation2 + $0x70] sm:$0xff]  ;;  %v4410_v47 = vmov 0 }
 0x376   : > { %v4408_v8 = vsel %vm3754_vm4, 4294967295, %v4407_v8  ;;  %vm3761_vm7 = vmand %vm1826_vm13, %vm1842_vm14  ;;  %v1969_v12 = vld [vmem:[#allocation5 + $0x70] sm:$0xff] }
 0x377   : > { %v2447_v43 = vpop.eup %2446  ;;  %4409 = vst [vmem:[#allocation66_spill] sm:$0xff] %v4408_v8  ;;  %v2015_v19 = vsel %vm3754_vm4, %v1999_v24, -1e+30  ;;  %v1986_v21 = vsub.f32 %v1970_v13, %v1564_v31  ;;  %1643 = vperm.xlu1 %2415, %v1564_v31   ;;  %v4411_v47 = vsel %vm3761_vm7, 4294967295, %v4410_v47  ;;  %v3765_v49 = vld [vmem:[#allocation4 + $0x70] sm:$0xff]  ;;  %v4414_v24 = vld [vmem:[#allocation26_spill] sm:$0xff]  ;;  %vm4415_vm4 = vmmov %vm4383_vm11 }
 0x378   : > { %v1546_v51 = vmul.f32 0.6931472, %v2447_v43  ;;  %2031 = vst.msk [vmem:[#allocation8 + $0x60] sm:$0xff] %vm4383_vm11, %v2015_v19  ;;  %4412 = vst [vmem:[#allocation67_spill] sm:$0xff] %v4411_v47  ;;  %vm1825_vm5 = vcmp.gt.f32.partialorder %v3765_v49, 0.0  ;;  %vm1841_vm12 = vcmp.ne.f32.partialorder %v4414_v24, -1.0 }
 0x379   : > { %v2002_v35 = vmul.f32 -1.0, %v1986_v21  ;;  %4413 = vst [vmem:[#allocation68_spill] sm:$0xff] %v3765_v49  ;;  %vm3772_vm13 = vmand %vm1825_vm5, %vm1841_vm12  ;;  %v4416_v31 = vmov 0  ;;  %vm4424_vm5 = vnez %v4192_v61  ;;  %vm4425_vm12 = vnez %v4190_v59  ;;  %v2449_v33 = vpop.eup %2448 }
 0x37a   : > { %v1563_v63 = vadd.f32 %v1546_v51, %v1499_v23  ;;  %v4417_v31 = vsel %vm3772_vm13, 4294967295, %v4416_v31  ;;  %vm4419_vm14 = vmmov %vm4415_vm4 }
 0x37b   : > { %v2018_v14 = vsel %vm3761_vm7, %v2002_v35, -1e+30  ;;  %4418 = vst [vmem:[#allocation69_spill] sm:$0xff] %v4417_v31 }
 0x37c   : > { %v1985_v13 = vsub.f32 %v1969_v12, %v1563_v63  ;;  %1638 = vperm.xlu0 %2414, %v1563_v63   ;;  %2034 = vst.msk [vmem:[#allocation8 + $0x78] sm:$0xff] %vm4415_vm4, %v2018_v14  ;;  %v3781_v63 = vstv %s1565_s23 }
 0x37e   : > { %v2001_v43 = vmul.f32 -1.0, %v1985_v13 }
 0x380   : > { %v2017_v23 = vsel %vm3772_vm13, %v2001_v43, -1e+30 }
 0x381   : > { %2033 = vst.msk [vmem:[#allocation8 + $0x70] sm:$0xff] %vm4419_vm14, %v2017_v23 }
 0x3d6   : > { %v1579_v19 = vpop.permute.xlu1 %1578 }
 0x3d7   : > { %v1648_v21 = vsub.f32 %v3005_v26, %v1579_v19  ;;  %v1569_v51 = vpop.permute.xlu0 %1568  ;;  %v4420_v26 = vld [vmem:[#allocation28_spill] sm:$0xff] }
 0x3d8   : > { %v1646_v12 = vsub.f32 %v3009_v32, %v1569_v51  ;;  %vm4421_vm4 = vnez %v4420_v26 }
 0x3d9   : > { %v1664_v35 = vmul.f32 -1.0, %v1648_v21 }
 0x3da   : > { %v1662_v14 = vmul.f32 -1.0, %v1646_v12  ;;  %v1584_v24 = vpop.permute.xlu1 %1583  ;;  %v4422_v12 = vld [vmem:[#allocation27_spill] sm:$0xff] }
 0x3db   : > { %v1649_v13 = vsub.f32 %v3013_v44, %v1584_v24  ;;  %v1574_v47 = vpop.permute.xlu0 %1573  ;;  %v1681_v43 = vmax.f32 %v1664_v35, %v3781_v63  ;;  %vm4423_vm11 = vnez %v4422_v12 }
 0x3dc   : > { %v1679_v31 = vmax.f32 %v1662_v14, %v3781_v63  ;;  %v1647_v23 = vsub.f32 %v3017_v0, %v1574_v47 }
 0x3dd   : > { %v1665_v8 = vmul.f32 -1.0, %v1649_v13  ;;  %v1713_v44 = vsel %vm4423_vm11, %v1681_v43, 0.0 }
 0x3de   : > { %v1594_v41 = vpop.permute.xlu1 %1593  ;;  %v1711_v19 = vsel %vm4421_vm4, %v1679_v31, 0.0  ;;  %v1663_v32 = vmul.f32 -1.0, %v1647_v23  ;;  %vm4428_vm4 = vnez %v4198_v3 }
 0x3df   : > { %v1651_v21 = vsub.f32 %v3033_v17, %v1594_v41  ;;  %1727 = vadd.xlane.f32.xlu0 %v1711_v19  ;;  %v1589_v51 = vpop.permute.xlu0 %1588  ;;  %v1682_v0 = vmax.f32 %v1665_v8, %v3781_v63 }
 0x3e0   : > { %v1650_v24 = vsub.f32 %v3025_v22, %v1589_v51  ;;  %v1680_v14 = vmax.f32 %v1663_v32, %v3781_v63 }
 0x3e1   : > { %v1667_v35 = vmul.f32 -1.0, %v1651_v21  ;;  %v1714_v26 = vsel %vm4425_vm12, %v1682_v0, 0.0  ;;  %vm4432_vm12 = vcmask 7168  }
 0x3e2   : > { %v1604_v49 = vpop.permute.xlu1 %1603  ;;  %v1666_v47 = vmul.f32 -1.0, %v1650_v24  ;;  %v1712_v17 = vsel %vm4424_vm5, %v1680_v14, 0.0  ;;  %v4429_v14 = vld [vmem:[#allocation30_spill] sm:$0xff]  ;;  %vm4431_vm5 = vnez %v4207_v27 }
 0x3e3   : > { %v1653_v13 = vsub.f32 %v3029_v20, %v1604_v49  ;;  %1731 = vadd.xlane.f32.xlu0 %v1713_v44  ;;  %1729 = vadd.xlane.f32.xlu1 %v1712_v17  ;;  %v1599_v31 = vpop.permute.xlu0 %1598  ;;  %v1684_v8 = vmax.f32 %v1667_v35, %v3781_v63  ;;  %v4426_v20 = vld [vmem:[#allocation29_spill] sm:$0xff]  ;;  %vm4430_vm11 = vnez %v4429_v14 }
 0x3e4   : > { %v1683_v43 = vmax.f32 %v1666_v47, %v3781_v63  ;;  %v1652_v22 = vsub.f32 %v3021_v25, %v1599_v31  ;;  %vm4427_vm14 = vnez %v4426_v20  ;;  %v4448_v31 = vld [vmem:[#allocation31_spill] sm:$0xff] }
 0x3e5   : > { %v1669_v41 = vmul.f32 -1.0, %v1653_v13  ;;  %v1716_v59 = vsel %vm4428_vm4, %v1684_v8, 0.0  ;;  %v2541_v13 = vmov 0.0   ;;  %vm4434_vm4 = vmmov %vm4432_vm12 }
 0x3e6   : > { %v1614_v23 = vpop.permute.xlu1 %1613  ;;  %v1715_v61 = vsel %vm4427_vm14, %v1683_v43, 0.0  ;;  %v1668_v49 = vmul.f32 -1.0, %v1652_v22  ;;  %1469 = vst.msk [vmem:[#allocation6] sm:$0xff] %vm4432_vm12, %v2541_v13  ;;  %vm4433_vm14 = vmmov %vm4432_vm12 }
 0x3e7   : > { %v1655_v19 = vsub.f32 %v3019_v40, %v1614_v23  ;;  %1733 = vadd.xlane.f32.xlu0 %v1714_v26  ;;  %1735 = vadd.xlane.f32.xlu1 %v1715_v61  ;;  %v1609_v32 = vpop.permute.xlu0 %1608  ;;  %v1686_v21 = vmax.f32 %v1669_v41, %v3781_v63  ;;  %1470 = vst.msk [vmem:[#allocation6 + $0x8] sm:$0xff] %vm4433_vm14, %v2541_v13  ;;  %vm4435_vm13 = vmmov %vm4434_vm4 }
 0x3e8   : > { %v1654_v25 = vsub.f32 %v3011_v34, %v1609_v32  ;;  %v1685_v44 = vmax.f32 %v1668_v49, %v3781_v63  ;;  %1471 = vst.msk [vmem:[#allocation6 + $0x10] sm:$0xff] %vm4434_vm4, %v2541_v13  ;;  %vm4436_vm7 = vmmov %vm4434_vm4 }
 0x3e9   : > { %v1671_v51 = vmul.f32 -1.0, %v1655_v19  ;;  %v1718_v47 = vsel %vm4431_vm5, %v1686_v21, 0.0  ;;  %1472 = vst.msk [vmem:[#allocation6 + $0x18] sm:$0xff] %vm4435_vm13, %v2541_v13  ;;  %vm4437_vm8 = vmmov %vm4434_vm4 }
 0x3ea   : > { %v1624_v12 = vpop.permute.xlu1 %1623  ;;  %v1670_v24 = vmul.f32 -1.0, %v1654_v25  ;;  %v1717_v35 = vsel %vm4430_vm11, %v1685_v44, 0.0  ;;  %1473 = vst.msk [vmem:[#allocation6 + $0x20] sm:$0xff] %vm4436_vm7, %v2541_v13  ;;  %vm4438_vm9 = vmmov %vm4434_vm4 }
 0x3eb   : > { %v1657_v40 = vsub.f32 %v3015_v48, %v1624_v12  ;;  %1737 = vadd.xlane.f32.xlu0 %v1716_v59  ;;  %1739 = vadd.xlane.f32.xlu1 %v1717_v35  ;;  %v1619_v0 = vpop.permute.xlu0 %1618  ;;  %1474 = vst.msk [vmem:[#allocation6 + $0x28] sm:$0xff] %vm4437_vm8, %v2541_v13  ;;  %vm4439_vm11 = vmmov %vm4434_vm4  ;;  %v1688_v48 = vmax.f32 %v1671_v51, %v3781_v63  ;;  %vm4451_vm8 = vnez %v4227_v52 }
 0x3ec   : > { %1475 = vst.msk [vmem:[#allocation6 + $0x30] sm:$0xff] %vm4438_vm9, %v2541_v13  ;;  %vm4440_vm6 = vmmov %vm4434_vm4  ;;  %v1656_v27 = vsub.f32 %v3007_v28, %v1619_v0  ;;  %v1687_v34 = vmax.f32 %v1670_v24, %v3781_v63  ;;  %vm4452_vm9 = vnez %v4225_v50  ;;  %v1877_v24 = vmax.f32 %v3553_v15, 1.0 }
 0x3ed   : > { %1476 = vst.msk [vmem:[#allocation6 + $0x38] sm:$0xff] %vm4439_vm11, %v2541_v13  ;;  %vm4441_vm5 = vmmov %vm4434_vm4  ;;  %v1673_v3 = vmul.f32 -1.0, %v1657_v40  ;;  %vm4453_vm11 = vnez %v4233_v60  ;;  %v1695_v14 = vld [vmem:[#allocation6] sm:$0xff]  ;;  %v1880_v15 = vmax.f32 %v3599_v1, 1.0 }
 0x3ee   : > { %1477 = vst.msk [vmem:[#allocation6 + $0x40] sm:$0xff] %vm4440_vm6, %v2541_v13  ;;  %vm4442_vm2 = vmmov %vm4434_vm4  ;;  %v1672_v17 = vmul.f32 -1.0, %v1656_v27  ;;  %vm4449_vm6 = vnez %v4448_v31  ;;  %2450 = vrcp.f32 %v1877_v24  ;;  %v1696_v6 = vld [vmem:[#allocation6 + $0x8] sm:$0xff]  ;;  %v1882_v31 = vmax.f32 %v3620_v10, 1.0 }
 0x3ef   : > { %1478 = vst.msk [vmem:[#allocation6 + $0x48] sm:$0xff] %vm4441_vm5, %v2541_v13  ;;  %vm4443_vm12 = vmmov %vm4442_vm2  ;;  %1741 = vadd.xlane.f32.xlu0 %v1718_v47  ;;  %v1634_v41 = vpop.permute.xlu1 %1633  ;;  %v1719_v43 = vsel %vm4449_vm6, %v1687_v34, 0.0  ;;  %v1690_v28 = vmax.f32 %v1673_v3, %v3781_v63  ;;  %v1697_v47 = vld [vmem:[#allocation6 + $0x10] sm:$0xff]  ;;  %v1884_v10 = vmax.f32 %v3650_v57, 1.0 }
 0x3f0   : > { %1479 = vst.msk [vmem:[#allocation6 + $0x50] sm:$0xff] %vm4442_vm2, %v2541_v13  ;;  %vm4444_vm14 = vmmov %vm4442_vm2  ;;  %v1659_v22 = vsub.f32 %v3035_v38, %v1634_v41  ;;  %1743 = vadd.xlane.f32.xlu1 %v1719_v43  ;;  %v1689_v26 = vmax.f32 %v1672_v17, %v3781_v63 }
 0x3f1   : > { %1480 = vst.msk [vmem:[#allocation6 + $0x58] sm:$0xff] %vm4443_vm12, %v2541_v13  ;;  %vm4445_vm4 = vmmov %vm4442_vm2  ;;  %v1722_v38 = vsel %vm4452_vm9, %v1690_v28, 0.0  ;;  %v1699_v34 = vld [vmem:[#allocation6 + $0x20] sm:$0xff]  ;;  %v1883_v28 = vmax.f32 %v3665_v42, 1.0  ;;  %vm4468_vm9 = vnez %v4368_v29 }
 0x3f2   : > { %1481 = vst.msk [vmem:[#allocation6 + $0x60] sm:$0xff] %vm4444_vm14, %v2541_v13  ;;  %vm4446_vm13 = vmmov %vm4442_vm2  ;;  %v1675_v8 = vmul.f32 -1.0, %v1659_v22  ;;  %v1629_v19 = vpop.permute.xlu0 %1628  ;;  %v1721_v20 = vsel %vm4451_vm8, %v1689_v26, 0.0  ;;  %v1700_v1 = vld [vmem:[#allocation6 + $0x28] sm:$0xff] }
 0x3f3   : > { %1482 = vst.msk [vmem:[#allocation6 + $0x68] sm:$0xff] %vm4445_vm4, %v2541_v13  ;;  %vm4447_vm7 = vmmov %vm4442_vm2  ;;  %vm4450_vm2 = vnez %v4216_v36  ;;  %v1658_v61 = vsub.f32 %v3027_v37, %v1629_v19 }
 0x3f4   : > { %1483 = vst.msk [vmem:[#allocation6 + $0x70] sm:$0xff] %vm4446_vm13, %v2541_v13  ;;  %v1720_v23 = vsel %vm4450_vm2, %v1688_v48, 0.0  ;;  %1747 = vadd.xlane.f32.xlu1 %v1721_v20  ;;  %v1692_v49 = vmax.f32 %v1675_v8, %v3781_v63  ;;  %v1881_v48 = vmax.f32 %v3644_v55, 1.0  ;;  %v1701_v55 = vld [vmem:[#allocation6 + $0x30] sm:$0xff]  ;;  %v1702_v42 = vld [vmem:[#allocation6 + $0x38] sm:$0xff]  ;;  %vm4462_vm13 = vnez %v4361_v2 }
 0x3f5   : > { %1484 = vst.msk [vmem:[#allocation6 + $0x78] sm:$0xff] %vm4447_vm7, %v2541_v13  ;;  %1745 = vadd.xlane.f32.xlu0 %v1720_v23  ;;  %v1674_v36 = vmul.f32 -1.0, %v1658_v61  ;;  %vm4466_vm2 = vnez %v4358_v18  ;;  %v1887_v18 = vmax.f32 %v3741_v46, 1.0 }
 0x3f6   : > { %v1644_v32 = vpop.permute.xlu1 %1643  ;;  %v1724_v25 = vsel %vm4453_vm11, %v1692_v49, 0.0 }
 0x3f7   : > { %v1661_v21 = vsub.f32 %v3031_v54, %v1644_v32  ;;  %v1691_v51 = vmax.f32 %v1674_v36, %v3781_v63  ;;  %v1705_v24 = vld [vmem:[#allocation6 + $0x50] sm:$0xff] }
 0x3f8   : > { %v2451_v26 = vpop.eup %2450 }
 0x3f9   : > { %1749 = vadd.xlane.f32.xlu0 %v1722_v38  ;;  %v1677_v52 = vmul.f32 -1.0, %v1661_v21  ;;  %v1723_v37 = vsel %vm2981_vm0, %v1691_v51, 0.0  ;;  %vm4455_vm0 = vmmov %vm4445_vm4 }
 0x3fa   : > { %1751 = vadd.xlane.f32.xlu1 %v1723_v37  ;;  %vm4457_vm5 = vmmov %vm4455_vm0 }
 0x3fb   : > { %v1639_v12 = vpop.permute.xlu0 %1638  ;;  %v1694_v59 = vmax.f32 %v1677_v52, %v3781_v63  ;;  %vm4458_vm12 = vmmov %vm4455_vm0  ;;  %v1703_v52 = vld [vmem:[#allocation6 + $0x40] sm:$0xff] }
 0x3fc   : > { %v1660_v50 = vsub.f32 %v3023_v30, %v1639_v12  ;;  %v1876_v30 = vmax.f32 %v3587_v39, 1.0  ;;  %v1698_v39 = vld [vmem:[#allocation6 + $0x18] sm:$0xff]  ;;  %vm4459_vm14 = vmmov %vm4455_vm0 }
 0x3fd   : > { %1753 = vadd.xlane.f32.xlu0 %v1724_v25  ;;  %v1726_v54 = vsel %vm2995_vm10, %v1694_v59, 0.0  ;;  %vm4454_vm10 = vmmov %vm4445_vm4  ;;  %v1886_v59 = vmax.f32 %v3678_v9, 1.0 }
 0x3fe   : > { %v1676_v44 = vmul.f32 -1.0, %v1660_v50  ;;  %2452 = vrcp.f32 %v1876_v30  ;;  %vm4460_vm4 = vmmov %vm4455_vm0 }
 0x3ff   : > { %2454 = vrcp.f32 %v1878_v4  ;;  %vm4463_vm7 = vmmov %vm4455_vm0  ;;  %v1888_v4 = vmax.f32 %v3730_v11, 1.0 }
 0x400   : > { %v1693_v40 = vmax.f32 %v1676_v44, %v3781_v63  ;;  %v1879_v63 = vmax.f32 %v3606_v56, 1.0  ;;  %vm4464_vm6 = vmmov %vm4455_vm0 }
 0x401   : > { %1757 = vadd.xlane.f32.xlu0 %v1726_v54  ;;  %vm4467_vm8 = vmmov %vm4455_vm0 }
 0x402   : > { %v1725_v60 = vsel %vm3001_vm3, %v1693_v40, 0.0  ;;  %2456 = vrcp.f32 %v1879_v63  ;;  %vm4456_vm3 = vmmov %vm4455_vm0  ;;  %v1704_v40 = vld [vmem:[#allocation6 + $0x48] sm:$0xff] }
 0x403   : > { %1755 = vadd.xlane.f32.xlu1 %v1725_v60  ;;  %2458 = vrcp.f32 %v1880_v15  ;;  %vm4469_vm11 = vmmov %vm4455_vm0 }
 0x404   : > { %2460 = vrcp.f32 %v1881_v48 }
 0x405   : > { %2462 = vrcp.f32 %v1882_v31 }
 0x406   : > { %2464 = vrcp.f32 %v1883_v28  ;;  %v4478_v28 = vld [vmem:[#allocation60_spill] sm:$0xff] }
 0x407   : > { %2466 = vrcp.f32 %v1884_v10 }
 0x408   : > { %v2453_v19 = vpop.eup %2452  ;;  %2468 = vrcp.f32 %v1885_v45  ;;  %v4487_v45 = vld [vmem:[#allocation61_spill] sm:$0xff] }
 0x409   : > { %v2455_v51 = vpop.eup %2454  ;;  %2470 = vrcp.f32 %v1886_v59 }
 0x40a   : > { %2472 = vrcp.f32 %v1888_v4  ;;  %v4499_v4 = vld [vmem:[#allocation66_spill] sm:$0xff] }
 0x40b   : > { %2474 = vrcp.f32 %v1887_v18  ;;  %v4503_v18 = vld [vmem:[#allocation67_spill] sm:$0xff] }
 0x40c   : > { %v2457_v37 = vpop.eup %2456 }
 0x40d   : > { %v2459_v2 = vpop.eup %2458 }
 0x46c   : > { %v1728_v35 = vpop.xlane.xlu0 %1727 }
 0x46d   : > { %v1759_v0 = vadd.f32 %v1728_v35, %v1695_v14 }
 0x46f   : > { %1776 = vst.msk [vmem:[#allocation6] sm:$0xff] %vm4454_vm10, %v1759_v0  ;;  %v2461_v0 = vpop.eup %2460  ;;  %vm4470_vm10 = vmmov %vm4455_vm0 }
 0x470   : > { %v1732_v13 = vpop.xlane.xlu0 %1731  ;;  %v1730_v16 = vpop.xlane.xlu1 %1729 }
 0x471   : > { %v1761_v3 = vadd.f32 %v1732_v13, %v1697_v47  ;;  %v1760_v27 = vadd.f32 %v1730_v16, %v1696_v6  ;;  %v1706_v13 = vld [vmem:[#allocation6 + $0x58] sm:$0xff]  ;;  %v2463_v29 = vpop.eup %2462 }
 0x472   : > { %v2465_v46 = vpop.eup %2464 }
 0x473   : > { %1778 = vst.msk [vmem:[#allocation6 + $0x10] sm:$0xff] %vm4455_vm0, %v1761_v3 }
 0x474   : > { %1777 = vst.msk [vmem:[#allocation6 + $0x8] sm:$0xff] %vm4456_vm3, %v1760_v27  ;;  %v1734_v56 = vpop.xlane.xlu0 %1733  ;;  %v1736_v17 = vpop.xlane.xlu1 %1735 }
 0x475   : > { %v1762_v41 = vadd.f32 %v1734_v56, %v1698_v39  ;;  %v1763_v22 = vadd.f32 %v1736_v17, %v1699_v34  ;;  %v4471_v39 = vld [vmem:[#allocation59_spill] sm:$0xff]  ;;  %v1890_v17 = vmax.f32 %v3748_v5, 1.0 }
 0x476   : > { %v1859_v43 = vld [vmem:[#allocation6] sm:$0xff]  ;;  %vm4472_vm3 = vnez %v4471_v39  ;;  %v1708_v56 = vld [vmem:[#allocation6 + $0x68] sm:$0xff] }
 0x477   : > { %v1892_v23 = vmul.f32 %v2449_v33, %v1859_v43  ;;  %1779 = vst.msk [vmem:[#allocation6 + $0x18] sm:$0xff] %vm4457_vm5, %v1762_v41  ;;  %vm4473_vm5 = vmmov %vm4455_vm0  ;;  %v1707_v43 = vld [vmem:[#allocation6 + $0x60] sm:$0xff]  ;;  %2476 = vrcp.f32 %v1890_v17 }
 0x478   : > { %1780 = vst.msk [vmem:[#allocation6 + $0x20] sm:$0xff] %vm4458_vm12, %v1763_v22  ;;  %v1738_v8 = vpop.xlane.xlu0 %1737  ;;  %v1740_v49 = vpop.xlane.xlu1 %1739  ;;  %vm4474_vm12 = vmmov %vm4455_vm0 }
 0x479   : > { %v1923_v20 = vsel %vm3579_vm1, %v1892_v23, 0.0  ;;  %v1764_v61 = vadd.f32 %v1738_v8, %v1700_v1  ;;  %v1765_v21 = vadd.f32 %v1740_v49, %v1701_v55  ;;  %vm4461_vm1 = vmmov %vm4455_vm0  ;;  %v2467_v22 = vpop.eup %2466 }
 0x47a   : > { %1939 = vst.msk [vmem:[%s4031_s5] sm:$0xff] %vm4459_vm14, %v1923_v20  ;;  %v1861_v38 = vld [vmem:[#allocation6 + $0x10] sm:$0xff]  ;;  %vm4475_vm14 = vnez %v4376_v7  ;;  %v2469_v7 = vpop.eup %2468 }
 0x47b   : > { %v1860_v36 = vld [vmem:[#allocation6 + $0x8] sm:$0xff]  ;;  %v1896_v32 = vmul.f32 %v2451_v26, %v1861_v38  ;;  %1781 = vst.msk [vmem:[#allocation6 + $0x28] sm:$0xff] %vm4460_vm4, %v1764_v61  ;;  %vm4476_vm4 = vmmov %vm4455_vm0  ;;  %v4481_v61 = vld [vmem:[#allocation68_spill] sm:$0xff] }
 0x47c   : > { %v1894_v25 = vmul.f32 %v2453_v19, %v1860_v36  ;;  %v1742_v57 = vpop.xlane.xlu0 %1741  ;;  %1782 = vst.msk [vmem:[#allocation6 + $0x30] sm:$0xff] %vm4461_vm1, %v1765_v21  ;;  %vm4477_vm1 = vmmov %vm4455_vm0  ;;  %v1889_v10 = vmax.f32 %v4481_v61, 1.0  ;;  %v4482_v38 = vld [vmem:[#allocation62_spill] sm:$0xff]  ;;  %v1710_v36 = vld [vmem:[#allocation6 + $0x78] sm:$0xff] }
 0x47d   : > { %v1925_v12 = vsel %vm3568_vm15, %v1896_v32, 0.0  ;;  %v1766_v50 = vadd.f32 %v1742_v57, %v1702_v42  ;;  %v1744_v54 = vpop.xlane.xlu1 %1743  ;;  %vm4465_vm15 = vmmov %vm4455_vm0  ;;  %v2471_v32 = vpop.eup %2470 }
 0x47e   : > { %v1924_v44 = vsel %vm4462_vm13, %v1894_v25, 0.0  ;;  %1941 = vst.msk [vmem:[%s4031_s5 + $0x10] sm:$0xff] %vm4463_vm7, %v1925_v12  ;;  %v1862_v58 = vld [vmem:[#allocation6 + $0x18] sm:$0xff]  ;;  %v1767_v62 = vadd.f32 %v1744_v54, %v1703_v52  ;;  %vm4479_vm13 = vnez %v4478_v28  ;;  %vm4480_vm7 = vmmov %vm4455_vm0  ;;  %2478 = vrcp.f32 %v1889_v10  ;;  %v4490_v12 = vld [vmem:[#allocation64_spill] sm:$0xff] }
 0x47f   : > { %1940 = vst.msk [vmem:[%s4031_s5 + $0x8] sm:$0xff] %vm4464_vm6, %v1924_v44  ;;  %v1863_v53 = vld [vmem:[#allocation6 + $0x20] sm:$0xff]  ;;  %v1898_v60 = vmul.f32 %v2455_v51, %v1862_v58  ;;  %vm4483_vm6 = vnez %v4482_v38  ;;  %v1709_v44 = vld [vmem:[#allocation6 + $0x70] sm:$0xff]  ;;  %v2473_v58 = vpop.eup %2472 }
 0x480   : > { %1783 = vst.msk [vmem:[#allocation6 + $0x38] sm:$0xff] %vm4465_vm15, %v1766_v50  ;;  %v1900_v9 = vmul.f32 %v2457_v37, %v1863_v53  ;;  %vm4484_vm15 = vmmov %vm4455_vm0  ;;  %v2475_v54 = vpop.eup %2474 }
 0x481   : > { %v1926_v30 = vsel %vm4466_vm2, %v1898_v60, 0.0  ;;  %1784 = vst.msk [vmem:[#allocation6 + $0x40] sm:$0xff] %vm4467_vm8, %v1767_v62  ;;  %v1748_v6 = vpop.xlane.xlu1 %1747  ;;  %vm4485_vm2 = vmmov %vm4455_vm0 }
 0x482   : > { %v1746_v14 = vpop.xlane.xlu0 %1745  ;;  %v1927_v47 = vsel %vm4468_vm9, %v1900_v9, 0.0  ;;  %1942 = vst.msk [vmem:[%s4031_s5 + $0x18] sm:$0xff] %vm4469_vm11, %v1926_v30  ;;  %v1864_v63 = vld [vmem:[#allocation6 + $0x28] sm:$0xff]  ;;  %v1769_v11 = vadd.f32 %v1748_v6, %v1705_v24  ;;  %vm4486_vm8 = vmmov %vm4455_vm0  ;;  %vm4488_vm9 = vnez %v4487_v45  ;;  %v2477_v30 = vpop.eup %2476 }
 0x483   : > { %v1768_v35 = vadd.f32 %v1746_v14, %v1704_v40  ;;  %1943 = vst.msk [vmem:[%s4031_s5 + $0x20] sm:$0xff] %vm4470_vm10, %v1927_v47  ;;  %v1902_v16 = vmul.f32 %v2459_v2, %v1864_v63  ;;  %v1865_v3 = vld [vmem:[#allocation6 + $0x30] sm:$0xff]  ;;  %vm4489_vm11 = vmmov %vm4455_vm0  ;;  %vm4491_vm10 = vnez %v4490_v12  ;;  %v4493_v40 = vld [vmem:[#allocation63_spill] sm:$0xff] }
 0x484   : > { %v1904_v27 = vmul.f32 %v2461_v0, %v1865_v3  ;;  %1786 = vst.msk [vmem:[#allocation6 + $0x50] sm:$0xff] %vm4473_vm5, %v1769_v11  ;;  %vm4494_vm5 = vnez %v4493_v40  ;;  %v4506_v3 = vld [vmem:[#allocation69_spill] sm:$0xff] }
 0x485   : > { %1785 = vst.msk [vmem:[#allocation6 + $0x48] sm:$0xff] %vm4455_vm0, %v1768_v35  ;;  %v1928_v34 = vsel %vm4472_vm3, %v1902_v16, 0.0  ;;  %vm4492_vm3 = vmmov %vm4455_vm0  ;;  %v4497_v35 = vld [vmem:[#allocation65_spill] sm:$0xff] }
 0x486   : > { %v1750_v15 = vpop.xlane.xlu0 %1749  ;;  %1944 = vst.msk [vmem:[%s4031_s5 + $0x28] sm:$0xff] %vm4474_vm12, %v1928_v34  ;;  %v1929_v41 = vsel %vm4475_vm14, %v1904_v27, 0.0  ;;  %vm4495_vm12 = vmmov %vm4455_vm0 }
 0x487   : > { %v1770_v33 = vadd.f32 %v1750_v15, %v1706_v13  ;;  %v1866_v48 = vld [vmem:[#allocation6 + $0x38] sm:$0xff]  ;;  %1945 = vst.msk [vmem:[%s4031_s5 + $0x30] sm:$0xff] %vm4477_vm1, %v1929_v41  ;;  %v1752_v5 = vpop.xlane.xlu1 %1751  ;;  %vm4496_vm14 = vmmov %vm4455_vm0  ;;  %vm4500_vm1 = vnez %v4499_v4 }
 0x488   : > { %v1906_v31 = vmul.f32 %v2463_v29, %v1866_v48  ;;  %v1867_v1 = vld [vmem:[#allocation6 + $0x40] sm:$0xff]  ;;  %v1771_v20 = vadd.f32 %v1752_v5, %v1707_v43  ;;  %v2479_v13 = vpop.eup %2478 }
 0x489   : > { %1787 = vst.msk [vmem:[#allocation6 + $0x58] sm:$0xff] %vm4476_vm4, %v1770_v33  ;;  %v1908_v26 = vmul.f32 %v2465_v46, %v1867_v1  ;;  %vm4498_vm4 = vnez %v4497_v35 }
 0x48a   : > { %v1754_v23 = vpop.xlane.xlu0 %1753  ;;  %v1930_v55 = vsel %vm4479_vm13, %v1906_v31, 0.0  ;;  %1788 = vst.msk [vmem:[#allocation6 + $0x60] sm:$0xff] %vm4486_vm8, %v1771_v20  ;;  %vm4501_vm13 = vmmov %vm4455_vm0 }
 0x48b   : > { %v1772_v8 = vadd.f32 %v1754_v23, %v1708_v56  ;;  %1946 = vst.msk [vmem:[%s4031_s5 + $0x38] sm:$0xff] %vm4480_vm7, %v1930_v55  ;;  %v1931_v49 = vsel %vm4483_vm6, %v1908_v26, 0.0  ;;  %v1869_v21 = vld [vmem:[#allocation6 + $0x50] sm:$0xff]  ;;  %vm4502_vm7 = vmmov %vm4455_vm0  ;;  %vm4504_vm6 = vnez %v4503_v18 }
 0x48c   : > { %v1868_v19 = vld [vmem:[#allocation6 + $0x48] sm:$0xff]  ;;  %1947 = vst.msk [vmem:[%s4031_s5 + $0x40] sm:$0xff] %vm4485_vm2, %v1931_v49  ;;  %v1912_v51 = vmul.f32 %v2469_v7, %v1869_v21  ;;  %vm4507_vm2 = vnez %v4506_v3  ;;  %vm4508_vm8 = vmmov %vm4455_vm0 }
 0x48d   : > { %v1910_v42 = vmul.f32 %v2467_v22, %v1868_v19  ;;  %1789 = vst.msk [vmem:[#allocation6 + $0x68] sm:$0xff] %vm4484_vm15, %v1772_v8  ;;  %vm4505_vm15 = vmmov %vm4455_vm0 }
 0x48e   : > { %v1758_v52 = vpop.xlane.xlu0 %1757  ;;  %v1933_v50 = vsel %vm4491_vm10, %v1912_v51, 0.0 }
 0x48f   : > { %v1932_v25 = vsel %vm4488_vm9, %v1910_v42, 0.0  ;;  %v1774_v37 = vadd.f32 %v1758_v52, %v1710_v36  ;;  %1949 = vst.msk [vmem:[%s4031_s5 + $0x50] sm:$0xff] %vm4455_vm0, %v1933_v50 }
 0x490   : > { %1948 = vst.msk [vmem:[%s4031_s5 + $0x48] sm:$0xff] %vm4489_vm11, %v1932_v25  ;;  %v1870_v57 = vld [vmem:[#allocation6 + $0x58] sm:$0xff]  ;;  %v1756_v60 = vpop.xlane.xlu1 %1755 }
 0x491   : > { %v1914_v59 = vmul.f32 %v2471_v32, %v1870_v57  ;;  %1791 = vst.msk [vmem:[#allocation6 + $0x78] sm:$0xff] %vm4492_vm3, %v1774_v37  ;;  %v1773_v62 = vadd.f32 %v1756_v60, %v1709_v44  ;;  %v1871_v9 = vld [vmem:[#allocation6 + $0x60] sm:$0xff] }
 0x492   : > { %v1916_v14 = vmul.f32 %v2475_v54, %v1871_v9 }
 0x493   : > { %v1934_v53 = vsel %vm4494_vm5, %v1914_v59, 0.0  ;;  %1790 = vst.msk [vmem:[#allocation6 + $0x70] sm:$0xff] %vm4496_vm14, %v1773_v62 }
 0x494   : > { %1950 = vst.msk [vmem:[%s4031_s5 + $0x58] sm:$0xff] %vm4495_vm12, %v1934_v53  ;;  %v1872_v2 = vld [vmem:[#allocation6 + $0x68] sm:$0xff]  ;;  %v1935_v47 = vsel %vm4500_vm1, %v1916_v14, 0.0 }
 0x495   : > { %v1918_v24 = vmul.f32 %v2473_v58, %v1872_v2  ;;  %1951 = vst.msk [vmem:[%s4031_s5 + $0x60] sm:$0xff] %vm4502_vm7, %v1935_v47 }
 0x497   : > { %v1936_v0 = vsel %vm4498_vm4, %v1918_v24, 0.0 }
 0x498   : > { %1952 = vst.msk [vmem:[%s4031_s5 + $0x68] sm:$0xff] %vm4501_vm13, %v1936_v0  ;;  %v1874_v63 = vld [vmem:[#allocation6 + $0x78] sm:$0xff] }
 0x499   : > { %v1922_v6 = vmul.f32 %v2477_v30, %v1874_v63 }
 0x49a   : > { %v1873_v11 = vld [vmem:[#allocation6 + $0x70] sm:$0xff] }
 0x49b   : > { %v1938_v16 = vsel %vm4504_vm6, %v1922_v6, 0.0  ;;  %v1920_v29 = vmul.f32 %v2479_v13, %v1873_v11 }
 0x49c   : > { %1954 = vst.msk [vmem:[%s4031_s5 + $0x78] sm:$0xff] %vm4505_vm15, %v1938_v16 }
 0x49d   : > { %v1937_v15 = vsel %vm4507_vm2, %v1920_v29, 0.0 }
 0x49e   : > { %1953 = vst.msk [vmem:[%s4031_s5 + $0x70] sm:$0xff] %vm4508_vm8, %v1937_v15 }
 0x49f PF: > { %p3991_p7 = scmp.eq.s32.totalorder %s2176_s4, 1  ;;  %s2542_s21 = smov [#allocation8]  }
 0x4a0   : > { %s2053_s22 = sshll.u32 %s2542_s21, 4  ;;  %s2054_s22 = int_to_ptr.vmem [resolvable:$true] %s2053_s22 }
 0x4a1   : > { %s2480_s27 = scalar_lea.vmem %s2054_s22, 2048  ;;  %p2487_p11 = scmp.lt.s32.totalorder %s2054_s22, %s2054_s22 }
 0x4a2   : > { %p2481_p8 = scmp.ne.s32.totalorder %s2054_s22, %s2480_s27  ;;  %p2488_p12 = scmp.lt.s32.totalorder %s2480_s27, %s2480_s27 }
 0x4a4   : > { %p2482_p9 = pnand %p2481_p8, %p3991_p7  ;;  %p2489_p13 = por %p2488_p12, %p2487_p11 }
 0x4a6   : > { %p2483_p10 = pneg %p2482_p9 }
 0x4a8   : > { %p2490_p0 = pnand %p2489_p13, %p2483_p10 }
 0x4aa   : > { %2493 = shalt.err (!%p2490_p0)
}
 0x4ab   : > { %s2494_s4 = scalar_lea.hbm %s4032_s6, 2048 }
 0x4ac   : > { %p2495_p1 = scmp.ne.s32.totalorder %s4032_s6, %s2494_s4  ;;  %p2500_p4 = scmp.lt.u32.totalorder %s2494_s4, %s4032_s6 }
 0x4ae   : > { %p2496_p2 = pnand %p2495_p1, %p3991_p7 }
 0x4b0   : > { %p2497_p3 = pneg %p2496_p2 }
 0x4b2   : > { %p2502_p5 = pnand %p2500_p4, %p2497_p3 }
 0x4b4   : > { %2505 = shalt.err (!%p2502_p5)
}
 0x4b5   : > { %s2543_s9 = smov 128   ;;  %s2544_s10 = smov 8  }
 0x4b6   : > { %2290 = dma.vmem_to_hbm [thread:$0]  (%p3991_p7), %s2054_s22, 2048, %s4032_s6, [#allocation9], %s2543_s9, %s2543_s9, %s2544_s10  }
 0x4b7   : > { %2519 = dma.done.wait (%p3991_p7), [#allocation9], 2048  }
 0x4b8   : > { %2521 = vsyncadd (%p3991_p7), [#allocation9], 4294965248 }
 0x4b9 PF: > { %s19_s25 = sadd.s32 1, %s2532_s25   ;;  %s4510_s23 = smov %s2528_s24 }
 0x4ba   : > { %p16_p6 = scmp.ge.s32.totalorder %s19_s25, 4   ;;  %s4511_s24 = smov %s4513_s26 }
 0x4bc   :  { %18 = sbr.rel (!%p16_p6) target bundleno = 4 (0x4), region = 109 }
 0x4c3   :  { %2077 = vsyncpa [#allocation9], 1 }
 0x4c4   :  { %2079 = vsyncpa [#allocation9 + $0x1], 1 }

</bundles_post_ra>
